<compile_context>
chip_gen: v5e
topology: v5e:2x2
jax: 0.10.0
libtpu: 0.0.40
codegen_flags: <defaults>
</compile_context>

<pallas_src>
import functools
import math

import numpy as np
import jax
import jax.numpy as jnp
from jax.experimental import pallas as pl
from jax.experimental.pallas import tpu as pltpu


# ----------------------------- fused kernel ---------------------------------

def _fused_kernel(x_ref, t0_ref, t1_ref, t2_ref, t3_ref,
                  w0_ref, b0_ref, w1_ref, b1_ref,
                  wp_ref, bp_ref, wd1_ref, bd1_ref, wd2_ref, bd2_ref,
                  wop_ref, wod1_ref, wod2_ref, bout_ref,
                  wf_ref, bf_ref,
                  o_ref, *, eps, slope):
    f32 = jnp.float32

    def conv3x3(a, t_cat, w_bd, b_t, s_out):
        """3x3 conv (stride/dilation/zero-pad encoded in t_cat) on lane-packed batch.

        a:     (S_in, B*Cin)      activations, batch packed into lanes
        t_cat: (9*S_out, S_in)    0/1 gather matrix for all 9 taps (bf16, exact)
        w_bd:  (9, B*Cin, B*Cout) block-diagonal (per-image) tap weights
        b_t:   (1, B*Cout)        batch-tiled bias
        """
        # ONE gather matmul for all 9 taps.
        g = jnp.dot(t_cat.astype(f32), a, preferred_element_type=f32)  # (9*S_out, B*Cin)
        cols = w_bd.shape[-1]
        acc = jnp.broadcast_to(b_t, (s_out, cols)).astype(f32)
        for k in range(9):                       # 9 sublane-aligned weight matmuls
            acc = acc + jnp.dot(g[k * s_out:(k + 1) * s_out], w_bd[k],
                                preferred_element_type=f32)
        return acc

    def norm_act(a):
        """InstanceNorm2d (affine=False, biased var) + LeakyReLU(slope).

        Columns are (image, channel) pairs, so an axis-0 reduction is exactly
        the per-image per-channel spatial statistic."""
        m = jnp.mean(a, axis=0, keepdims=True)
        v = jnp.mean((a - m) ** 2, axis=0, keepdims=True)
        y = (a - m) * jax.lax.rsqrt(v + eps)
        return jnp.where(y > 0, y, slope * y)

    x = x_ref[0]                                           # (256, B*4) = 16x16xB*4

    # stem: Conv2d(4, 8, 3, stride=2, padding=1) -> 8x8 x (B*8)
    a = conv3x3(x, t0_ref[...], w0_ref[...], b0_ref[...], 64)

    # down block: InstanceNorm -> LeakyReLU -> Conv2d(8, 16, 3, s=2, p=1) -> 4x4 x (B*16)
    a = norm_act(a)
    a = conv3x3(a, t1_ref[...], w1_ref[...], b1_ref[...], 16)

    # ---- ASPP(16, 8, scales=(0, 1, 2)) ----
    # scale 0: AdaptiveAvgPool2d(1) -> 1x1 conv; bilinear(align_corners) upsample
    # from a 1x1 source is an exact broadcast, folded in as a rank-1 term.
    pool = jnp.dot(jnp.mean(a, axis=0, keepdims=True), wp_ref[...],
                   preferred_element_type=f32) + bp_ref[...]               # (1, B*8)
    # scale 1: 1x1 conv
    d1 = jnp.dot(a, wd1_ref[...], preferred_element_type=f32) + bd1_ref[...]
    # scale 2: 3x3 conv, dilation=2, padding=2
    d2 = conv3x3(a, t2_ref[...], wd2_ref[...], bd2_ref[...], 16)
    # channel concat + 1x1 output conv: concat eliminated algebraically by row-
    # splitting the output weight ([pool | d1 | d2] order matches scales (0,1,2)).
    a = (jnp.dot(d1, wod1_ref[...], preferred_element_type=f32)
         + jnp.dot(d2, wod2_ref[...], preferred_element_type=f32)
         + jnp.broadcast_to(jnp.dot(pool, wop_ref[...],
                                    preferred_element_type=f32),
                            (16, d1.shape[-1]))
         + bout_ref[...])

    # final_cov: InstanceNorm -> LeakyReLU -> Conv2d(8, 1, 3, s=1, p=1)
    a = norm_act(a)
    a = conv3x3(a, t3_ref[...], wf_ref[...], bf_ref[...], 16)              # (16, B)

    o_ref[0] = a.astype(o_ref.dtype)                       # lane-dense (16, B) store


# ------------------- host-side constants & wrapper ---------------------------

def _tap_matrices_np(hi, wi, ho, wo, stride, dilation, pad):
    """(9*ho*wo, hi*wi) 0/1 gather matrix encoding shift+stride+dilation+pad,
    row-concatenated over the 9 taps."""
    t = np.zeros((9, ho * wo, hi * wi), np.float32)
    for k in range(9):
        ki, kj = divmod(k, 3)
        for q in range(ho * wo):
            qr, qc = divmod(q, wo)
            r = qr * stride + ki * dilation - pad
            c = qc * stride + kj * dilation - pad
            if 0 <= r < hi and 0 <= c < wi:
                t[k, q, r * wi + c] = 1.0
    return t.reshape(9 * ho * wo, hi * wi)


@functools.lru_cache(maxsize=None)
def _tap_cat(hi, wi, ho, wo, stride, dilation, pad):
    # Built once per shape; 0/1 values are exact in bf16 (halves DMA/VMEM).
    return jnp.asarray(_tap_matrices_np(hi, wi, ho, wo, stride, dilation, pad),
                       dtype=jnp.bfloat16)


def _zero_map(rank):
    return lambda n: (0,) * rank


def _block_diag(w, b):
    """kron(I_b, W) matching the (image-major, channel-minor) lane packing."""
    eye = jnp.eye(b, dtype=w.dtype)
    if w.ndim == 2:
        cin, cout = w.shape
        return jnp.einsum('bd,io->bido', eye, w).reshape(b * cin, b * cout)
    k, cin, cout = w.shape
    return jnp.einsum('bd,kio->kbido', eye, w).reshape(k, b * cin, b * cout)


@functools.partial(jax.jit, static_argnames=("batch_block",))
def _forward_jit(x_nchw, p, *, batch_block):
    N, cin, H, W = x_nchw.shape
    B = batch_block
    nb = -(-N // B)                 # grid length
    n_pad = nb * B
    if n_pad != N:
        x_nchw = jnp.pad(x_nchw, ((0, n_pad - N), (0, 0), (0, 0), (0, 0)))

    # NHWC, flatten spatial, pack B images into the lane axis: (nb, H*W, B*cin)
    x = jnp.transpose(x_nchw, (0, 2, 3, 1)).reshape(n_pad, H * W, cin)
    x = x.reshape(nb, B, H * W, cin).transpose(0, 2, 1, 3).reshape(nb, H * W, B * cin)

    def tb(bias):                   # batch-tile a bias vector -> (1, B*C)
        return jnp.tile(bias, B).reshape(1, -1)

    w0bd, b0t = _block_diag(p['w0'], B), tb(p['b0'])
    w1bd, b1t = _block_diag(p['w1'], B), tb(p['b1'])
    wpbd, bpt = _block_diag(p['wp'], B), tb(p['bp'])
    wd1bd, bd1t = _block_diag(p['wd1'], B), tb(p['bd1'])
    wd2bd, bd2t = _block_diag(p['wd2'], B), tb(p['bd2'])
    wout = p['wout']                                     # (24, 8): [pool|d1|d2]
    wopbd = _block_diag(wout[0:8], B)
    wod1bd = _block_diag(wout[8:16], B)
    wod2bd = _block_diag(wout[16:24], B)
    boutt = tb(p['bout'])
    wfbd, bft = _block_diag(p['wf'], B), tb(p['bf'])

    t0 = _tap_cat(16, 16, 8, 8, 2, 1, 1)   # stem, stride 2
    t1 = _tap_cat(8, 8, 4, 4, 2, 1, 1)     # down, stride 2
    t2 = _tap_cat(4, 4, 4, 4, 1, 2, 2)     # ASPP dilation 2
    t3 = _tap_cat(4, 4, 4, 4, 1, 1, 1)     # final conv

    args = [x, t0, t1, t2, t3,
            w0bd, b0t, w1bd, b1t,
            wpbd, bpt, wd1bd, bd1t, wd2bd, bd2t,
            wopbd, wod1bd, wod2bd, boutt,
            wfbd, bft]

    in_specs = [pl.BlockSpec((1, H * W, B * cin), lambda n: (n, 0, 0))]
    in_specs += [pl.BlockSpec(a.shape, _zero_map(a.ndim)) for a in args[1:]]

    out = pl.pallas_call(
        functools.partial(_fused_kernel, eps=1e-5, slope=0.2),
        out_shape=jax.ShapeDtypeStruct((nb, 16, B), jnp.float32),
        grid=(nb,),
        in_specs=in_specs,
        out_specs=pl.BlockSpec((1, 16, B), lambda n: (n, 0, 0)),
        compiler_params=pltpu.CompilerParams(
            dimension_semantics=("parallel",)),      # batch blocks across TCs (v7x)
    )(*args)

    # (nb, 16, B) -> (N, 1, 4, 4) NCHW
    out = out.transpose(0, 2, 1).reshape(n_pad, 16)[:N]
    return out.reshape(N, 1, 4, 4)


def singlescale_net_forward(x_nchw, params, batch_block=None):
    N, cin, H, W = x_nchw.shape
    assert (cin, H, W) == (4, 16, 16), "fused kernel specialized to this config"
    assert params['dilate_scales'] == (0, 1, 2) and len(params['down']) == 1

    if batch_block is None:
        # B*C_max = 8*16 = 128 output lanes (v5e sweet spot; fine on v6e/v7x too).
        batch_block = int(min(N, 8))

    w0, b0 = params['conv0']
    w1, b1 = params['down'][0]
    aspp = params['aspp']
    wp, bp = aspp['pool']
    wd1, bd1 = aspp['d1']
    wd2, bd2 = aspp['d2']
    wout, bout = aspp['out']
    wf, bf = params['final']

    p = dict(
        w0=w0.reshape(9, 4, 8), b0=b0,
        w1=w1.reshape(9, 8, 16), b1=b1,
        wp=wp, bp=bp,
        wd1=wd1.reshape(16, 8), bd1=bd1,
        wd2=wd2.reshape(9, 16, 8), bd2=bd2,
        wout=wout.reshape(24, 8), bout=bout,
        wf=wf.reshape(9, 8, 1), bf=bf,
    )
    return _forward_jit(x_nchw, p, batch_block=batch_block)


# ---------------- parameters (deterministic, PyTorch-default-like init) ------

def _conv_init(key, kh, kw, cin, cout):
    k1, k2 = jax.random.split(key)
    bound = 1.0 / math.sqrt(cin * kh * kw)
    w = jax.random.uniform(k1, (kh, kw, cin, cout), jnp.float32, -bound, bound)
    b = jax.random.uniform(k2, (cout,), jnp.float32, -bound, bound)
    return w, b


def init_params(key, input_dim=4, ch=8, n_layer=2, dilate_scales=(0, 1, 2)):
    keys = iter(jax.random.split(key, 32))
    params = {'dilate_scales': dilate_scales}
    params['conv0'] = _conv_init(next(keys), 3, 3, input_dim, ch)
    prech = ch
    down = []
    for _ in range(1, n_layer):
        tch = min(prech * 2, ch * 8)
        down.append(_conv_init(next(keys), 3, 3, prech, tch))
        prech = tch
    params['down'] = down
    depth = prech // 2
    aspp = {}
    for d in dilate_scales:
        if d == 0:
            w, b = _conv_init(next(keys), 1, 1, prech, depth)
            aspp['pool'] = (w.reshape(prech, depth), b)   # 1x1 conv as matmul
        elif d == 1:
            aspp['d1'] = _conv_init(next(keys), 1, 1, prech, depth)
        else:
            aspp[f'd{d}'] = _conv_init(next(keys), 3, 3, prech, depth)
    aspp['out'] = _conv_init(next(keys), 1, 1, depth * len(dilate_scales), depth)
    params['aspp'] = aspp
    params['final'] = _conv_init(next(keys), 3, 3, depth, 1)
    return params


# ---------------- pure-JAX reference (for the self-check) --------------------

def _ref_conv(x, w, b, stride=1, dilation=1, padding=0):
    out = jax.lax.conv_general_dilated(
        x, w, window_strides=(stride, stride),
        padding=[(padding, padding), (padding, padding)],
        rhs_dilation=(dilation, dilation),
        dimension_numbers=('NHWC', 'HWIO', 'NHWC'),
        precision=jax.lax.Precision.HIGHEST)
    return out + b.reshape(1, 1, 1, -1)


def _ref_norm_act(x, eps=1e-5, slope=0.2):
    m = jnp.mean(x, axis=(1, 2), keepdims=True)
    v = jnp.mean((x - m) ** 2, axis=(1, 2), keepdims=True)
    y = (x - m) / jnp.sqrt(v + eps)
    return jnp.where(y > 0, y, slope * y)


def ref_forward(x_nchw, params):
    x = jnp.transpose(x_nchw, (0, 2, 3, 1))
    x = _ref_conv(x, *params['conv0'], stride=2, padding=1)
    for (w, b) in params['down']:
        x = _ref_norm_act(x)
        x = _ref_conv(x, w, b, stride=2, padding=1)
    aspp = params['aspp']
    N, H, W, _ = x.shape
    outs = []
    for d in params['dilate_scales']:
        if d == 0:
            wp, bp = aspp['pool']
            m = jnp.mean(x, axis=(1, 2))
            v = jnp.dot(m, wp, precision=jax.lax.Precision.HIGHEST) + bp
            outs.append(jnp.broadcast_to(v[:, None, None, :],
                                         (N, H, W, wp.shape[1])))
        elif d == 1:
            outs.append(_ref_conv(x, *aspp['d1']))
        else:
            outs.append(_ref_conv(x, *aspp[f'd{d}'], padding=d, dilation=d))
    x = jnp.concatenate(outs, axis=-1)
    x = _ref_conv(x, *aspp['out'])
    x = _ref_norm_act(x)
    x = _ref_conv(x, *params['final'], padding=1)
    return jnp.transpose(x, (0, 3, 1, 2))


# ---------------- main ----------------

if __name__ == "__main__":
    key = jax.random.PRNGKey(0)
    kx, kp = jax.random.split(key)
    x = jax.random.normal(kx, (2, 4, 16, 16), jnp.float32)   # NCHW like PyTorch
    params = init_params(kp, input_dim=4, ch=8, n_layer=2, dilate_scales=(0, 1, 2))

    out = jax.block_until_ready(singlescale_net_forward(x, params))
    assert out.shape == (2, 1, 4, 4), out.shape

    ref = jax.block_until_ready(ref_forward(x, params))
    err = float(jnp.max(jnp.abs(out - ref)))
    assert err < 1e-2, f"max abs err {err}"

    print("KERNEL_OK")
</pallas_src>

<mosaic_0001>
module attributes {stable_mosaic.version = 11 : i64} {
  func.func @_fused_kernel(%arg0: i32, %arg1: memref<1x256x8xf32, #tpu.memory_space<vmem>>, %arg2: memref<576x256xbf16, #tpu.memory_space<vmem>>, %arg3: memref<144x64xbf16, #tpu.memory_space<vmem>>, %arg4: memref<144x16xbf16, #tpu.memory_space<vmem>>, %arg5: memref<144x16xbf16, #tpu.memory_space<vmem>>, %arg6: memref<9x8x16xf32, #tpu.memory_space<vmem>>, %arg7: memref<1x16xf32, #tpu.memory_space<vmem>>, %arg8: memref<9x16x32xf32, #tpu.memory_space<vmem>>, %arg9: memref<1x32xf32, #tpu.memory_space<vmem>>, %arg10: memref<32x16xf32, #tpu.memory_space<vmem>>, %arg11: memref<1x16xf32, #tpu.memory_space<vmem>>, %arg12: memref<32x16xf32, #tpu.memory_space<vmem>>, %arg13: memref<1x16xf32, #tpu.memory_space<vmem>>, %arg14: memref<9x32x16xf32, #tpu.memory_space<vmem>>, %arg15: memref<1x16xf32, #tpu.memory_space<vmem>>, %arg16: memref<16x16xf32, #tpu.memory_space<vmem>>, %arg17: memref<16x16xf32, #tpu.memory_space<vmem>>, %arg18: memref<16x16xf32, #tpu.memory_space<vmem>>, %arg19: memref<1x16xf32, #tpu.memory_space<vmem>>, %arg20: memref<9x16x2xf32, #tpu.memory_space<vmem>>, %arg21: memref<1x2xf32, #tpu.memory_space<vmem>>, %arg22: memref<1x16x2xf32, #tpu.memory_space<vmem>>) attributes {dimension_semantics = [#tpu.dimension_semantics<parallel>], iteration_bounds = array<i64: 1>, scalar_prefetch = 0 : i64, scratch_operands = 0 : i64, tpu.core_type = #tpu.core_type<tc>, window_params = [{transform_indices = @transform_0, window_bounds = array<i64: 1, 256, 8>}, {pipeline_mode = #tpu.pipeline_mode<synchronous>, transform_indices = @transform_1, window_bounds = array<i64: 576, 256>}, {pipeline_mode = #tpu.pipeline_mode<synchronous>, transform_indices = @transform_2, window_bounds = array<i64: 144, 64>}, {pipeline_mode = #tpu.pipeline_mode<synchronous>, transform_indices = @transform_3, window_bounds = array<i64: 144, 16>}, {pipeline_mode = #tpu.pipeline_mode<synchronous>, transform_indices = @transform_4, window_bounds = array<i64: 144, 16>}, {pipeline_mode = #tpu.pipeline_mode<synchronous>, transform_indices = @transform_5, window_bounds = array<i64: 9, 8, 16>}, {pipeline_mode = #tpu.pipeline_mode<synchronous>, transform_indices = @transform_6, window_bounds = array<i64: 1, 16>}, {pipeline_mode = #tpu.pipeline_mode<synchronous>, transform_indices = @transform_7, window_bounds = array<i64: 9, 16, 32>}, {pipeline_mode = #tpu.pipeline_mode<synchronous>, transform_indices = @transform_8, window_bounds = array<i64: 1, 32>}, {pipeline_mode = #tpu.pipeline_mode<synchronous>, transform_indices = @transform_9, window_bounds = array<i64: 32, 16>}, {pipeline_mode = #tpu.pipeline_mode<synchronous>, transform_indices = @transform_10, window_bounds = array<i64: 1, 16>}, {pipeline_mode = #tpu.pipeline_mode<synchronous>, transform_indices = @transform_11, window_bounds = array<i64: 32, 16>}, {pipeline_mode = #tpu.pipeline_mode<synchronous>, transform_indices = @transform_12, window_bounds = array<i64: 1, 16>}, {pipeline_mode = #tpu.pipeline_mode<synchronous>, transform_indices = @transform_13, window_bounds = array<i64: 9, 32, 16>}, {pipeline_mode = #tpu.pipeline_mode<synchronous>, transform_indices = @transform_14, window_bounds = array<i64: 1, 16>}, {pipeline_mode = #tpu.pipeline_mode<synchronous>, transform_indices = @transform_15, window_bounds = array<i64: 16, 16>}, {pipeline_mode = #tpu.pipeline_mode<synchronous>, transform_indices = @transform_16, window_bounds = array<i64: 16, 16>}, {pipeline_mode = #tpu.pipeline_mode<synchronous>, transform_indices = @transform_17, window_bounds = array<i64: 16, 16>}, {pipeline_mode = #tpu.pipeline_mode<synchronous>, transform_indices = @transform_18, window_bounds = array<i64: 1, 16>}, {pipeline_mode = #tpu.pipeline_mode<synchronous>, transform_indices = @transform_19, window_bounds = array<i64: 9, 16, 2>}, {pipeline_mode = #tpu.pipeline_mode<synchronous>, transform_indices = @transform_20, window_bounds = array<i64: 1, 2>}, {transform_indices = @transform_21, window_bounds = array<i64: 1, 16, 2>}]} {
    %c0 = arith.constant 0 : index
    %c0_0 = arith.constant 0 : index
    %c0_1 = arith.constant 0 : index
    %0 = vector.load %arg1[%c0, %c0_0, %c0_1] : memref<1x256x8xf32, #tpu.memory_space<vmem>>, vector<1x256x8xf32>
    %1 = vector.shape_cast %0 : vector<1x256x8xf32> to vector<256x8xf32>
    %c0_2 = arith.constant 0 : index
    %c0_3 = arith.constant 0 : index
    %2 = vector.load %arg2[%c0_2, %c0_3] : memref<576x256xbf16, #tpu.memory_space<vmem>>, vector<576x256xbf16>
    %c0_4 = arith.constant 0 : index
    %c0_5 = arith.constant 0 : index
    %c0_6 = arith.constant 0 : index
    %3 = vector.load %arg6[%c0_4, %c0_5, %c0_6] : memref<9x8x16xf32, #tpu.memory_space<vmem>>, vector<9x8x16xf32>
    %c0_7 = arith.constant 0 : index
    %c0_8 = arith.constant 0 : index
    %4 = vector.load %arg7[%c0_7, %c0_8] : memref<1x16xf32, #tpu.memory_space<vmem>>, vector<1x16xf32>
    %5 = arith.extf %2 : vector<576x256xbf16> to vector<576x256xf32>
    %cst = arith.constant dense<0.000000e+00> : vector<576x8xf32>
    %6 = tpu.matmul %5, %1, %cst {dimension_numbers = #tpu.dot_dimension_numbers<[1], [0], [0], [1], [0, 0, 1, 1], [], []>} : vector<576x256xf32>, vector<256x8xf32>, vector<576x8xf32> -> vector<576x8xf32>
    %7 = vector.shape_cast %4 : vector<1x16xf32> to vector<1x16xf32>
    %8 = vector.broadcast %7 : vector<1x16xf32> to vector<64x16xf32>
    %9 = vector.extract_strided_slice %6 {offsets = [0, 0], sizes = [64, 8], strides = [1, 1]} : vector<576x8xf32> to vector<64x8xf32>
    %10 = vector.extract_strided_slice %3 {offsets = [0, 0, 0], sizes = [1, 8, 16], strides = [1, 1, 1]} : vector<9x8x16xf32> to vector<1x8x16xf32>
    %11 = vector.shape_cast %10 : vector<1x8x16xf32> to vector<8x16xf32>
    %cst_9 = arith.constant dense<0.000000e+00> : vector<64x16xf32>
    %12 = tpu.matmul %9, %11, %cst_9 {dimension_numbers = #tpu.dot_dimension_numbers<[1], [0], [0], [1], [0, 0, 1, 1], [], []>} : vector<64x8xf32>, vector<8x16xf32>, vector<64x16xf32> -> vector<64x16xf32>
    %13 = arith.addf %8, %12 : vector<64x16xf32>
    %14 = vector.extract_strided_slice %6 {offsets = [64, 0], sizes = [64, 8], strides = [1, 1]} : vector<576x8xf32> to vector<64x8xf32>
    %15 = vector.extract_strided_slice %3 {offsets = [1, 0, 0], sizes = [1, 8, 16], strides = [1, 1, 1]} : vector<9x8x16xf32> to vector<1x8x16xf32>
    %16 = vector.shape_cast %15 : vector<1x8x16xf32> to vector<8x16xf32>
    %cst_10 = arith.constant dense<0.000000e+00> : vector<64x16xf32>
    %17 = tpu.matmul %14, %16, %cst_10 {dimension_numbers = #tpu.dot_dimension_numbers<[1], [0], [0], [1], [0, 0, 1, 1], [], []>} : vector<64x8xf32>, vector<8x16xf32>, vector<64x16xf32> -> vector<64x16xf32>
    %18 = arith.addf %13, %17 : vector<64x16xf32>
    %19 = vector.extract_strided_slice %6 {offsets = [128, 0], sizes = [64, 8], strides = [1, 1]} : vector<576x8xf32> to vector<64x8xf32>
    %20 = vector.extract_strided_slice %3 {offsets = [2, 0, 0], sizes = [1, 8, 16], strides = [1, 1, 1]} : vector<9x8x16xf32> to vector<1x8x16xf32>
    %21 = vector.shape_cast %20 : vector<1x8x16xf32> to vector<8x16xf32>
    %cst_11 = arith.constant dense<0.000000e+00> : vector<64x16xf32>
    %22 = tpu.matmul %19, %21, %cst_11 {dimension_numbers = #tpu.dot_dimension_numbers<[1], [0], [0], [1], [0, 0, 1, 1], [], []>} : vector<64x8xf32>, vector<8x16xf32>, vector<64x16xf32> -> vector<64x16xf32>
    %23 = arith.addf %18, %22 : vector<64x16xf32>
    %24 = vector.extract_strided_slice %6 {offsets = [192, 0], sizes = [64, 8], strides = [1, 1]} : vector<576x8xf32> to vector<64x8xf32>
    %25 = vector.extract_strided_slice %3 {offsets = [3, 0, 0], sizes = [1, 8, 16], strides = [1, 1, 1]} : vector<9x8x16xf32> to vector<1x8x16xf32>
    %26 = vector.shape_cast %25 : vector<1x8x16xf32> to vector<8x16xf32>
    %cst_12 = arith.constant dense<0.000000e+00> : vector<64x16xf32>
    %27 = tpu.matmul %24, %26, %cst_12 {dimension_numbers = #tpu.dot_dimension_numbers<[1], [0], [0], [1], [0, 0, 1, 1], [], []>} : vector<64x8xf32>, vector<8x16xf32>, vector<64x16xf32> -> vector<64x16xf32>
    %28 = arith.addf %23, %27 : vector<64x16xf32>
    %29 = vector.extract_strided_slice %6 {offsets = [256, 0], sizes = [64, 8], strides = [1, 1]} : vector<576x8xf32> to vector<64x8xf32>
    %30 = vector.extract_strided_slice %3 {offsets = [4, 0, 0], sizes = [1, 8, 16], strides = [1, 1, 1]} : vector<9x8x16xf32> to vector<1x8x16xf32>
    %31 = vector.shape_cast %30 : vector<1x8x16xf32> to vector<8x16xf32>
    %cst_13 = arith.constant dense<0.000000e+00> : vector<64x16xf32>
    %32 = tpu.matmul %29, %31, %cst_13 {dimension_numbers = #tpu.dot_dimension_numbers<[1], [0], [0], [1], [0, 0, 1, 1], [], []>} : vector<64x8xf32>, vector<8x16xf32>, vector<64x16xf32> -> vector<64x16xf32>
    %33 = arith.addf %28, %32 : vector<64x16xf32>
    %34 = vector.extract_strided_slice %6 {offsets = [320, 0], sizes = [64, 8], strides = [1, 1]} : vector<576x8xf32> to vector<64x8xf32>
    %35 = vector.extract_strided_slice %3 {offsets = [5, 0, 0], sizes = [1, 8, 16], strides = [1, 1, 1]} : vector<9x8x16xf32> to vector<1x8x16xf32>
    %36 = vector.shape_cast %35 : vector<1x8x16xf32> to vector<8x16xf32>
    %cst_14 = arith.constant dense<0.000000e+00> : vector<64x16xf32>
    %37 = tpu.matmul %34, %36, %cst_14 {dimension_numbers = #tpu.dot_dimension_numbers<[1], [0], [0], [1], [0, 0, 1, 1], [], []>} : vector<64x8xf32>, vector<8x16xf32>, vector<64x16xf32> -> vector<64x16xf32>
    %38 = arith.addf %33, %37 : vector<64x16xf32>
    %39 = vector.extract_strided_slice %6 {offsets = [384, 0], sizes = [64, 8], strides = [1, 1]} : vector<576x8xf32> to vector<64x8xf32>
    %40 = vector.extract_strided_slice %3 {offsets = [6, 0, 0], sizes = [1, 8, 16], strides = [1, 1, 1]} : vector<9x8x16xf32> to vector<1x8x16xf32>
    %41 = vector.shape_cast %40 : vector<1x8x16xf32> to vector<8x16xf32>
    %cst_15 = arith.constant dense<0.000000e+00> : vector<64x16xf32>
    %42 = tpu.matmul %39, %41, %cst_15 {dimension_numbers = #tpu.dot_dimension_numbers<[1], [0], [0], [1], [0, 0, 1, 1], [], []>} : vector<64x8xf32>, vector<8x16xf32>, vector<64x16xf32> -> vector<64x16xf32>
    %43 = arith.addf %38, %42 : vector<64x16xf32>
    %44 = vector.extract_strided_slice %6 {offsets = [448, 0], sizes = [64, 8], strides = [1, 1]} : vector<576x8xf32> to vector<64x8xf32>
    %45 = vector.extract_strided_slice %3 {offsets = [7, 0, 0], sizes = [1, 8, 16], strides = [1, 1, 1]} : vector<9x8x16xf32> to vector<1x8x16xf32>
    %46 = vector.shape_cast %45 : vector<1x8x16xf32> to vector<8x16xf32>
    %cst_16 = arith.constant dense<0.000000e+00> : vector<64x16xf32>
    %47 = tpu.matmul %44, %46, %cst_16 {dimension_numbers = #tpu.dot_dimension_numbers<[1], [0], [0], [1], [0, 0, 1, 1], [], []>} : vector<64x8xf32>, vector<8x16xf32>, vector<64x16xf32> -> vector<64x16xf32>
    %48 = arith.addf %43, %47 : vector<64x16xf32>
    %49 = vector.extract_strided_slice %6 {offsets = [512, 0], sizes = [64, 8], strides = [1, 1]} : vector<576x8xf32> to vector<64x8xf32>
    %50 = vector.extract_strided_slice %3 {offsets = [8, 0, 0], sizes = [1, 8, 16], strides = [1, 1, 1]} : vector<9x8x16xf32> to vector<1x8x16xf32>
    %51 = vector.shape_cast %50 : vector<1x8x16xf32> to vector<8x16xf32>
    %cst_17 = arith.constant dense<0.000000e+00> : vector<64x16xf32>
    %52 = tpu.matmul %49, %51, %cst_17 {dimension_numbers = #tpu.dot_dimension_numbers<[1], [0], [0], [1], [0, 0, 1, 1], [], []>} : vector<64x8xf32>, vector<8x16xf32>, vector<64x16xf32> -> vector<64x16xf32>
    %53 = arith.addf %48, %52 : vector<64x16xf32>
    %cst_18 = arith.constant dense<0.000000e+00> : vector<16xf32>
    %54 = vector.multi_reduction <add>, %53, %cst_18 [0] : vector<64x16xf32> to vector<16xf32>
    %55 = vector.shape_cast %54 : vector<16xf32> to vector<1x16xf32>
    %cst_19 = arith.constant 6.400000e+01 : f32
    %56 = vector.broadcast %cst_19 : f32 to vector<1x16xf32>
    %57 = arith.divf %55, %56 : vector<1x16xf32>
    %58 = vector.broadcast %57 : vector<1x16xf32> to vector<64x16xf32>
    %59 = arith.subf %53, %58 : vector<64x16xf32>
    %60 = arith.mulf %59, %59 : vector<64x16xf32>
    %cst_20 = arith.constant dense<0.000000e+00> : vector<16xf32>
    %61 = vector.multi_reduction <add>, %60, %cst_20 [0] : vector<64x16xf32> to vector<16xf32>
    %62 = vector.shape_cast %61 : vector<16xf32> to vector<1x16xf32>
    %cst_21 = arith.constant 6.400000e+01 : f32
    %63 = vector.broadcast %cst_21 : f32 to vector<1x16xf32>
    %64 = arith.divf %62, %63 : vector<1x16xf32>
    %65 = vector.broadcast %57 : vector<1x16xf32> to vector<64x16xf32>
    %66 = arith.subf %53, %65 : vector<64x16xf32>
    %cst_22 = arith.constant 9.99999974E-6 : f32
    %67 = vector.broadcast %cst_22 : f32 to vector<1x16xf32>
    %68 = arith.addf %64, %67 : vector<1x16xf32>
    %69 = math.rsqrt %68 : vector<1x16xf32>
    %70 = vector.broadcast %69 : vector<1x16xf32> to vector<64x16xf32>
    %71 = arith.mulf %66, %70 : vector<64x16xf32>
    %cst_23 = arith.constant 0.000000e+00 : f32
    %72 = vector.broadcast %cst_23 : f32 to vector<64x16xf32>
    %73 = arith.cmpf ogt, %71, %72 : vector<64x16xf32>
    %cst_24 = arith.constant 2.000000e-01 : f32
    %74 = vector.broadcast %cst_24 : f32 to vector<64x16xf32>
    %75 = arith.mulf %74, %71 : vector<64x16xf32>
    %76 = arith.select %73, %71, %75 : vector<64x16xi1>, vector<64x16xf32>
    %c0_25 = arith.constant 0 : index
    %c0_26 = arith.constant 0 : index
    %77 = vector.load %arg3[%c0_25, %c0_26] : memref<144x64xbf16, #tpu.memory_space<vmem>>, vector<144x64xbf16>
    %c0_27 = arith.constant 0 : index
    %c0_28 = arith.constant 0 : index
    %c0_29 = arith.constant 0 : index
    %78 = vector.load %arg8[%c0_27, %c0_28, %c0_29] : memref<9x16x32xf32, #tpu.memory_space<vmem>>, vector<9x16x32xf32>
    %c0_30 = arith.constant 0 : index
    %c0_31 = arith.constant 0 : index
    %79 = vector.load %arg9[%c0_30, %c0_31] : memref<1x32xf32, #tpu.memory_space<vmem>>, vector<1x32xf32>
    %80 = arith.extf %77 : vector<144x64xbf16> to vector<144x64xf32>
    %cst_32 = arith.constant dense<0.000000e+00> : vector<144x16xf32>
    %81 = tpu.matmul %80, %76, %cst_32 {dimension_numbers = #tpu.dot_dimension_numbers<[1], [0], [0], [1], [0, 0, 1, 1], [], []>} : vector<144x64xf32>, vector<64x16xf32>, vector<144x16xf32> -> vector<144x16xf32>
    %82 = vector.shape_cast %79 : vector<1x32xf32> to vector<1x32xf32>
    %83 = vector.broadcast %82 : vector<1x32xf32> to vector<16x32xf32>
    %84 = vector.extract_strided_slice %81 {offsets = [0, 0], sizes = [16, 16], strides = [1, 1]} : vector<144x16xf32> to vector<16x16xf32>
    %85 = vector.extract_strided_slice %78 {offsets = [0, 0, 0], sizes = [1, 16, 32], strides = [1, 1, 1]} : vector<9x16x32xf32> to vector<1x16x32xf32>
    %86 = vector.shape_cast %85 : vector<1x16x32xf32> to vector<16x32xf32>
    %cst_33 = arith.constant dense<0.000000e+00> : vector<16x32xf32>
    %87 = tpu.matmul %84, %86, %cst_33 {dimension_numbers = #tpu.dot_dimension_numbers<[1], [0], [0], [1], [0, 0, 1, 1], [], []>} : vector<16x16xf32>, vector<16x32xf32>, vector<16x32xf32> -> vector<16x32xf32>
    %88 = arith.addf %83, %87 : vector<16x32xf32>
    %89 = vector.extract_strided_slice %81 {offsets = [16, 0], sizes = [16, 16], strides = [1, 1]} : vector<144x16xf32> to vector<16x16xf32>
    %90 = vector.extract_strided_slice %78 {offsets = [1, 0, 0], sizes = [1, 16, 32], strides = [1, 1, 1]} : vector<9x16x32xf32> to vector<1x16x32xf32>
    %91 = vector.shape_cast %90 : vector<1x16x32xf32> to vector<16x32xf32>
    %cst_34 = arith.constant dense<0.000000e+00> : vector<16x32xf32>
    %92 = tpu.matmul %89, %91, %cst_34 {dimension_numbers = #tpu.dot_dimension_numbers<[1], [0], [0], [1], [0, 0, 1, 1], [], []>} : vector<16x16xf32>, vector<16x32xf32>, vector<16x32xf32> -> vector<16x32xf32>
    %93 = arith.addf %88, %92 : vector<16x32xf32>
    %94 = vector.extract_strided_slice %81 {offsets = [32, 0], sizes = [16, 16], strides = [1, 1]} : vector<144x16xf32> to vector<16x16xf32>
    %95 = vector.extract_strided_slice %78 {offsets = [2, 0, 0], sizes = [1, 16, 32], strides = [1, 1, 1]} : vector<9x16x32xf32> to vector<1x16x32xf32>
    %96 = vector.shape_cast %95 : vector<1x16x32xf32> to vector<16x32xf32>
    %cst_35 = arith.constant dense<0.000000e+00> : vector<16x32xf32>
    %97 = tpu.matmul %94, %96, %cst_35 {dimension_numbers = #tpu.dot_dimension_numbers<[1], [0], [0], [1], [0, 0, 1, 1], [], []>} : vector<16x16xf32>, vector<16x32xf32>, vector<16x32xf32> -> vector<16x32xf32>
    %98 = arith.addf %93, %97 : vector<16x32xf32>
    %99 = vector.extract_strided_slice %81 {offsets = [48, 0], sizes = [16, 16], strides = [1, 1]} : vector<144x16xf32> to vector<16x16xf32>
    %100 = vector.extract_strided_slice %78 {offsets = [3, 0, 0], sizes = [1, 16, 32], strides = [1, 1, 1]} : vector<9x16x32xf32> to vector<1x16x32xf32>
    %101 = vector.shape_cast %100 : vector<1x16x32xf32> to vector<16x32xf32>
    %cst_36 = arith.constant dense<0.000000e+00> : vector<16x32xf32>
    %102 = tpu.matmul %99, %101, %cst_36 {dimension_numbers = #tpu.dot_dimension_numbers<[1], [0], [0], [1], [0, 0, 1, 1], [], []>} : vector<16x16xf32>, vector<16x32xf32>, vector<16x32xf32> -> vector<16x32xf32>
    %103 = arith.addf %98, %102 : vector<16x32xf32>
    %104 = vector.extract_strided_slice %81 {offsets = [64, 0], sizes = [16, 16], strides = [1, 1]} : vector<144x16xf32> to vector<16x16xf32>
    %105 = vector.extract_strided_slice %78 {offsets = [4, 0, 0], sizes = [1, 16, 32], strides = [1, 1, 1]} : vector<9x16x32xf32> to vector<1x16x32xf32>
    %106 = vector.shape_cast %105 : vector<1x16x32xf32> to vector<16x32xf32>
    %cst_37 = arith.constant dense<0.000000e+00> : vector<16x32xf32>
    %107 = tpu.matmul %104, %106, %cst_37 {dimension_numbers = #tpu.dot_dimension_numbers<[1], [0], [0], [1], [0, 0, 1, 1], [], []>} : vector<16x16xf32>, vector<16x32xf32>, vector<16x32xf32> -> vector<16x32xf32>
    %108 = arith.addf %103, %107 : vector<16x32xf32>
    %109 = vector.extract_strided_slice %81 {offsets = [80, 0], sizes = [16, 16], strides = [1, 1]} : vector<144x16xf32> to vector<16x16xf32>
    %110 = vector.extract_strided_slice %78 {offsets = [5, 0, 0], sizes = [1, 16, 32], strides = [1, 1, 1]} : vector<9x16x32xf32> to vector<1x16x32xf32>
    %111 = vector.shape_cast %110 : vector<1x16x32xf32> to vector<16x32xf32>
    %cst_38 = arith.constant dense<0.000000e+00> : vector<16x32xf32>
    %112 = tpu.matmul %109, %111, %cst_38 {dimension_numbers = #tpu.dot_dimension_numbers<[1], [0], [0], [1], [0, 0, 1, 1], [], []>} : vector<16x16xf32>, vector<16x32xf32>, vector<16x32xf32> -> vector<16x32xf32>
    %113 = arith.addf %108, %112 : vector<16x32xf32>
    %114 = vector.extract_strided_slice %81 {offsets = [96, 0], sizes = [16, 16], strides = [1, 1]} : vector<144x16xf32> to vector<16x16xf32>
    %115 = vector.extract_strided_slice %78 {offsets = [6, 0, 0], sizes = [1, 16, 32], strides = [1, 1, 1]} : vector<9x16x32xf32> to vector<1x16x32xf32>
    %116 = vector.shape_cast %115 : vector<1x16x32xf32> to vector<16x32xf32>
    %cst_39 = arith.constant dense<0.000000e+00> : vector<16x32xf32>
    %117 = tpu.matmul %114, %116, %cst_39 {dimension_numbers = #tpu.dot_dimension_numbers<[1], [0], [0], [1], [0, 0, 1, 1], [], []>} : vector<16x16xf32>, vector<16x32xf32>, vector<16x32xf32> -> vector<16x32xf32>
    %118 = arith.addf %113, %117 : vector<16x32xf32>
    %119 = vector.extract_strided_slice %81 {offsets = [112, 0], sizes = [16, 16], strides = [1, 1]} : vector<144x16xf32> to vector<16x16xf32>
    %120 = vector.extract_strided_slice %78 {offsets = [7, 0, 0], sizes = [1, 16, 32], strides = [1, 1, 1]} : vector<9x16x32xf32> to vector<1x16x32xf32>
    %121 = vector.shape_cast %120 : vector<1x16x32xf32> to vector<16x32xf32>
    %cst_40 = arith.constant dense<0.000000e+00> : vector<16x32xf32>
    %122 = tpu.matmul %119, %121, %cst_40 {dimension_numbers = #tpu.dot_dimension_numbers<[1], [0], [0], [1], [0, 0, 1, 1], [], []>} : vector<16x16xf32>, vector<16x32xf32>, vector<16x32xf32> -> vector<16x32xf32>
    %123 = arith.addf %118, %122 : vector<16x32xf32>
    %124 = vector.extract_strided_slice %81 {offsets = [128, 0], sizes = [16, 16], strides = [1, 1]} : vector<144x16xf32> to vector<16x16xf32>
    %125 = vector.extract_strided_slice %78 {offsets = [8, 0, 0], sizes = [1, 16, 32], strides = [1, 1, 1]} : vector<9x16x32xf32> to vector<1x16x32xf32>
    %126 = vector.shape_cast %125 : vector<1x16x32xf32> to vector<16x32xf32>
    %cst_41 = arith.constant dense<0.000000e+00> : vector<16x32xf32>
    %127 = tpu.matmul %124, %126, %cst_41 {dimension_numbers = #tpu.dot_dimension_numbers<[1], [0], [0], [1], [0, 0, 1, 1], [], []>} : vector<16x16xf32>, vector<16x32xf32>, vector<16x32xf32> -> vector<16x32xf32>
    %128 = arith.addf %123, %127 : vector<16x32xf32>
    %cst_42 = arith.constant dense<0.000000e+00> : vector<32xf32>
    %129 = vector.multi_reduction <add>, %128, %cst_42 [0] : vector<16x32xf32> to vector<32xf32>
    %130 = vector.shape_cast %129 : vector<32xf32> to vector<1x32xf32>
    %cst_43 = arith.constant 1.600000e+01 : f32
    %131 = vector.broadcast %cst_43 : f32 to vector<1x32xf32>
    %132 = arith.divf %130, %131 : vector<1x32xf32>
    %c0_44 = arith.constant 0 : index
    %c0_45 = arith.constant 0 : index
    %133 = vector.load %arg10[%c0_44, %c0_45] : memref<32x16xf32, #tpu.memory_space<vmem>>, vector<32x16xf32>
    %cst_46 = arith.constant dense<0.000000e+00> : vector<1x16xf32>
    %134 = tpu.matmul %132, %133, %cst_46 {dimension_numbers = #tpu.dot_dimension_numbers<[1], [0], [0], [1], [0, 0, 1, 1], [], []>} : vector<1x32xf32>, vector<32x16xf32>, vector<1x16xf32> -> vector<1x16xf32>
    %c0_47 = arith.constant 0 : index
    %c0_48 = arith.constant 0 : index
    %135 = vector.load %arg11[%c0_47, %c0_48] : memref<1x16xf32, #tpu.memory_space<vmem>>, vector<1x16xf32>
    %136 = arith.addf %134, %135 : vector<1x16xf32>
    %c0_49 = arith.constant 0 : index
    %c0_50 = arith.constant 0 : index
    %137 = vector.load %arg12[%c0_49, %c0_50] : memref<32x16xf32, #tpu.memory_space<vmem>>, vector<32x16xf32>
    %cst_51 = arith.constant dense<0.000000e+00> : vector<16x16xf32>
    %138 = tpu.matmul %128, %137, %cst_51 {dimension_numbers = #tpu.dot_dimension_numbers<[1], [0], [0], [1], [0, 0, 1, 1], [], []>} : vector<16x32xf32>, vector<32x16xf32>, vector<16x16xf32> -> vector<16x16xf32>
    %c0_52 = arith.constant 0 : index
    %c0_53 = arith.constant 0 : index
    %139 = vector.load %arg13[%c0_52, %c0_53] : memref<1x16xf32, #tpu.memory_space<vmem>>, vector<1x16xf32>
    %140 = vector.broadcast %139 : vector<1x16xf32> to vector<16x16xf32>
    %141 = arith.addf %138, %140 : vector<16x16xf32>
    %c0_54 = arith.constant 0 : index
    %c0_55 = arith.constant 0 : index
    %142 = vector.load %arg4[%c0_54, %c0_55] : memref<144x16xbf16, #tpu.memory_space<vmem>>, vector<144x16xbf16>
    %c0_56 = arith.constant 0 : index
    %c0_57 = arith.constant 0 : index
    %c0_58 = arith.constant 0 : index
    %143 = vector.load %arg14[%c0_56, %c0_57, %c0_58] : memref<9x32x16xf32, #tpu.memory_space<vmem>>, vector<9x32x16xf32>
    %c0_59 = arith.constant 0 : index
    %c0_60 = arith.constant 0 : index
    %144 = vector.load %arg15[%c0_59, %c0_60] : memref<1x16xf32, #tpu.memory_space<vmem>>, vector<1x16xf32>
    %145 = arith.extf %142 : vector<144x16xbf16> to vector<144x16xf32>
    %cst_61 = arith.constant dense<0.000000e+00> : vector<144x32xf32>
    %146 = tpu.matmul %145, %128, %cst_61 {dimension_numbers = #tpu.dot_dimension_numbers<[1], [0], [0], [1], [0, 0, 1, 1], [], []>} : vector<144x16xf32>, vector<16x32xf32>, vector<144x32xf32> -> vector<144x32xf32>
    %147 = vector.shape_cast %144 : vector<1x16xf32> to vector<1x16xf32>
    %148 = vector.broadcast %147 : vector<1x16xf32> to vector<16x16xf32>
    %149 = vector.extract_strided_slice %146 {offsets = [0, 0], sizes = [16, 32], strides = [1, 1]} : vector<144x32xf32> to vector<16x32xf32>
    %150 = vector.extract_strided_slice %143 {offsets = [0, 0, 0], sizes = [1, 32, 16], strides = [1, 1, 1]} : vector<9x32x16xf32> to vector<1x32x16xf32>
    %151 = vector.shape_cast %150 : vector<1x32x16xf32> to vector<32x16xf32>
    %cst_62 = arith.constant dense<0.000000e+00> : vector<16x16xf32>
    %152 = tpu.matmul %149, %151, %cst_62 {dimension_numbers = #tpu.dot_dimension_numbers<[1], [0], [0], [1], [0, 0, 1, 1], [], []>} : vector<16x32xf32>, vector<32x16xf32>, vector<16x16xf32> -> vector<16x16xf32>
    %153 = arith.addf %148, %152 : vector<16x16xf32>
    %154 = vector.extract_strided_slice %146 {offsets = [16, 0], sizes = [16, 32], strides = [1, 1]} : vector<144x32xf32> to vector<16x32xf32>
    %155 = vector.extract_strided_slice %143 {offsets = [1, 0, 0], sizes = [1, 32, 16], strides = [1, 1, 1]} : vector<9x32x16xf32> to vector<1x32x16xf32>
    %156 = vector.shape_cast %155 : vector<1x32x16xf32> to vector<32x16xf32>
    %cst_63 = arith.constant dense<0.000000e+00> : vector<16x16xf32>
    %157 = tpu.matmul %154, %156, %cst_63 {dimension_numbers = #tpu.dot_dimension_numbers<[1], [0], [0], [1], [0, 0, 1, 1], [], []>} : vector<16x32xf32>, vector<32x16xf32>, vector<16x16xf32> -> vector<16x16xf32>
    %158 = arith.addf %153, %157 : vector<16x16xf32>
    %159 = vector.extract_strided_slice %146 {offsets = [32, 0], sizes = [16, 32], strides = [1, 1]} : vector<144x32xf32> to vector<16x32xf32>
    %160 = vector.extract_strided_slice %143 {offsets = [2, 0, 0], sizes = [1, 32, 16], strides = [1, 1, 1]} : vector<9x32x16xf32> to vector<1x32x16xf32>
    %161 = vector.shape_cast %160 : vector<1x32x16xf32> to vector<32x16xf32>
    %cst_64 = arith.constant dense<0.000000e+00> : vector<16x16xf32>
    %162 = tpu.matmul %159, %161, %cst_64 {dimension_numbers = #tpu.dot_dimension_numbers<[1], [0], [0], [1], [0, 0, 1, 1], [], []>} : vector<16x32xf32>, vector<32x16xf32>, vector<16x16xf32> -> vector<16x16xf32>
    %163 = arith.addf %158, %162 : vector<16x16xf32>
    %164 = vector.extract_strided_slice %146 {offsets = [48, 0], sizes = [16, 32], strides = [1, 1]} : vector<144x32xf32> to vector<16x32xf32>
    %165 = vector.extract_strided_slice %143 {offsets = [3, 0, 0], sizes = [1, 32, 16], strides = [1, 1, 1]} : vector<9x32x16xf32> to vector<1x32x16xf32>
    %166 = vector.shape_cast %165 : vector<1x32x16xf32> to vector<32x16xf32>
    %cst_65 = arith.constant dense<0.000000e+00> : vector<16x16xf32>
    %167 = tpu.matmul %164, %166, %cst_65 {dimension_numbers = #tpu.dot_dimension_numbers<[1], [0], [0], [1], [0, 0, 1, 1], [], []>} : vector<16x32xf32>, vector<32x16xf32>, vector<16x16xf32> -> vector<16x16xf32>
    %168 = arith.addf %163, %167 : vector<16x16xf32>
    %169 = vector.extract_strided_slice %146 {offsets = [64, 0], sizes = [16, 32], strides = [1, 1]} : vector<144x32xf32> to vector<16x32xf32>
    %170 = vector.extract_strided_slice %143 {offsets = [4, 0, 0], sizes = [1, 32, 16], strides = [1, 1, 1]} : vector<9x32x16xf32> to vector<1x32x16xf32>
    %171 = vector.shape_cast %170 : vector<1x32x16xf32> to vector<32x16xf32>
    %cst_66 = arith.constant dense<0.000000e+00> : vector<16x16xf32>
    %172 = tpu.matmul %169, %171, %cst_66 {dimension_numbers = #tpu.dot_dimension_numbers<[1], [0], [0], [1], [0, 0, 1, 1], [], []>} : vector<16x32xf32>, vector<32x16xf32>, vector<16x16xf32> -> vector<16x16xf32>
    %173 = arith.addf %168, %172 : vector<16x16xf32>
    %174 = vector.extract_strided_slice %146 {offsets = [80, 0], sizes = [16, 32], strides = [1, 1]} : vector<144x32xf32> to vector<16x32xf32>
    %175 = vector.extract_strided_slice %143 {offsets = [5, 0, 0], sizes = [1, 32, 16], strides = [1, 1, 1]} : vector<9x32x16xf32> to vector<1x32x16xf32>
    %176 = vector.shape_cast %175 : vector<1x32x16xf32> to vector<32x16xf32>
    %cst_67 = arith.constant dense<0.000000e+00> : vector<16x16xf32>
    %177 = tpu.matmul %174, %176, %cst_67 {dimension_numbers = #tpu.dot_dimension_numbers<[1], [0], [0], [1], [0, 0, 1, 1], [], []>} : vector<16x32xf32>, vector<32x16xf32>, vector<16x16xf32> -> vector<16x16xf32>
    %178 = arith.addf %173, %177 : vector<16x16xf32>
    %179 = vector.extract_strided_slice %146 {offsets = [96, 0], sizes = [16, 32], strides = [1, 1]} : vector<144x32xf32> to vector<16x32xf32>
    %180 = vector.extract_strided_slice %143 {offsets = [6, 0, 0], sizes = [1, 32, 16], strides = [1, 1, 1]} : vector<9x32x16xf32> to vector<1x32x16xf32>
    %181 = vector.shape_cast %180 : vector<1x32x16xf32> to vector<32x16xf32>
    %cst_68 = arith.constant dense<0.000000e+00> : vector<16x16xf32>
    %182 = tpu.matmul %179, %181, %cst_68 {dimension_numbers = #tpu.dot_dimension_numbers<[1], [0], [0], [1], [0, 0, 1, 1], [], []>} : vector<16x32xf32>, vector<32x16xf32>, vector<16x16xf32> -> vector<16x16xf32>
    %183 = arith.addf %178, %182 : vector<16x16xf32>
    %184 = vector.extract_strided_slice %146 {offsets = [112, 0], sizes = [16, 32], strides = [1, 1]} : vector<144x32xf32> to vector<16x32xf32>
    %185 = vector.extract_strided_slice %143 {offsets = [7, 0, 0], sizes = [1, 32, 16], strides = [1, 1, 1]} : vector<9x32x16xf32> to vector<1x32x16xf32>
    %186 = vector.shape_cast %185 : vector<1x32x16xf32> to vector<32x16xf32>
    %cst_69 = arith.constant dense<0.000000e+00> : vector<16x16xf32>
    %187 = tpu.matmul %184, %186, %cst_69 {dimension_numbers = #tpu.dot_dimension_numbers<[1], [0], [0], [1], [0, 0, 1, 1], [], []>} : vector<16x32xf32>, vector<32x16xf32>, vector<16x16xf32> -> vector<16x16xf32>
    %188 = arith.addf %183, %187 : vector<16x16xf32>
    %189 = vector.extract_strided_slice %146 {offsets = [128, 0], sizes = [16, 32], strides = [1, 1]} : vector<144x32xf32> to vector<16x32xf32>
    %190 = vector.extract_strided_slice %143 {offsets = [8, 0, 0], sizes = [1, 32, 16], strides = [1, 1, 1]} : vector<9x32x16xf32> to vector<1x32x16xf32>
    %191 = vector.shape_cast %190 : vector<1x32x16xf32> to vector<32x16xf32>
    %cst_70 = arith.constant dense<0.000000e+00> : vector<16x16xf32>
    %192 = tpu.matmul %189, %191, %cst_70 {dimension_numbers = #tpu.dot_dimension_numbers<[1], [0], [0], [1], [0, 0, 1, 1], [], []>} : vector<16x32xf32>, vector<32x16xf32>, vector<16x16xf32> -> vector<16x16xf32>
    %193 = arith.addf %188, %192 : vector<16x16xf32>
    %c0_71 = arith.constant 0 : index
    %c0_72 = arith.constant 0 : index
    %194 = vector.load %arg17[%c0_71, %c0_72] : memref<16x16xf32, #tpu.memory_space<vmem>>, vector<16x16xf32>
    %cst_73 = arith.constant dense<0.000000e+00> : vector<16x16xf32>
    %195 = tpu.matmul %141, %194, %cst_73 {dimension_numbers = #tpu.dot_dimension_numbers<[1], [0], [0], [1], [0, 0, 1, 1], [], []>} : vector<16x16xf32>, vector<16x16xf32>, vector<16x16xf32> -> vector<16x16xf32>
    %c0_74 = arith.constant 0 : index
    %c0_75 = arith.constant 0 : index
    %196 = vector.load %arg18[%c0_74, %c0_75] : memref<16x16xf32, #tpu.memory_space<vmem>>, vector<16x16xf32>
    %cst_76 = arith.constant dense<0.000000e+00> : vector<16x16xf32>
    %197 = tpu.matmul %193, %196, %cst_76 {dimension_numbers = #tpu.dot_dimension_numbers<[1], [0], [0], [1], [0, 0, 1, 1], [], []>} : vector<16x16xf32>, vector<16x16xf32>, vector<16x16xf32> -> vector<16x16xf32>
    %198 = arith.addf %195, %197 : vector<16x16xf32>
    %c0_77 = arith.constant 0 : index
    %c0_78 = arith.constant 0 : index
    %199 = vector.load %arg16[%c0_77, %c0_78] : memref<16x16xf32, #tpu.memory_space<vmem>>, vector<16x16xf32>
    %cst_79 = arith.constant dense<0.000000e+00> : vector<1x16xf32>
    %200 = tpu.matmul %136, %199, %cst_79 {dimension_numbers = #tpu.dot_dimension_numbers<[1], [0], [0], [1], [0, 0, 1, 1], [], []>} : vector<1x16xf32>, vector<16x16xf32>, vector<1x16xf32> -> vector<1x16xf32>
    %201 = vector.shape_cast %200 : vector<1x16xf32> to vector<1x16xf32>
    %202 = vector.broadcast %201 : vector<1x16xf32> to vector<16x16xf32>
    %203 = arith.addf %198, %202 : vector<16x16xf32>
    %c0_80 = arith.constant 0 : index
    %c0_81 = arith.constant 0 : index
    %204 = vector.load %arg19[%c0_80, %c0_81] : memref<1x16xf32, #tpu.memory_space<vmem>>, vector<1x16xf32>
    %205 = vector.broadcast %204 : vector<1x16xf32> to vector<16x16xf32>
    %206 = arith.addf %203, %205 : vector<16x16xf32>
    %cst_82 = arith.constant dense<0.000000e+00> : vector<16xf32>
    %207 = vector.multi_reduction <add>, %206, %cst_82 [0] : vector<16x16xf32> to vector<16xf32>
    %208 = vector.shape_cast %207 : vector<16xf32> to vector<1x16xf32>
    %cst_83 = arith.constant 1.600000e+01 : f32
    %209 = vector.broadcast %cst_83 : f32 to vector<1x16xf32>
    %210 = arith.divf %208, %209 : vector<1x16xf32>
    %211 = vector.broadcast %210 : vector<1x16xf32> to vector<16x16xf32>
    %212 = arith.subf %206, %211 : vector<16x16xf32>
    %213 = arith.mulf %212, %212 : vector<16x16xf32>
    %cst_84 = arith.constant dense<0.000000e+00> : vector<16xf32>
    %214 = vector.multi_reduction <add>, %213, %cst_84 [0] : vector<16x16xf32> to vector<16xf32>
    %215 = vector.shape_cast %214 : vector<16xf32> to vector<1x16xf32>
    %cst_85 = arith.constant 1.600000e+01 : f32
    %216 = vector.broadcast %cst_85 : f32 to vector<1x16xf32>
    %217 = arith.divf %215, %216 : vector<1x16xf32>
    %218 = vector.broadcast %210 : vector<1x16xf32> to vector<16x16xf32>
    %219 = arith.subf %206, %218 : vector<16x16xf32>
    %cst_86 = arith.constant 9.99999974E-6 : f32
    %220 = vector.broadcast %cst_86 : f32 to vector<1x16xf32>
    %221 = arith.addf %217, %220 : vector<1x16xf32>
    %222 = math.rsqrt %221 : vector<1x16xf32>
    %223 = vector.broadcast %222 : vector<1x16xf32> to vector<16x16xf32>
    %224 = arith.mulf %219, %223 : vector<16x16xf32>
    %cst_87 = arith.constant 0.000000e+00 : f32
    %225 = vector.broadcast %cst_87 : f32 to vector<16x16xf32>
    %226 = arith.cmpf ogt, %224, %225 : vector<16x16xf32>
    %cst_88 = arith.constant 2.000000e-01 : f32
    %227 = vector.broadcast %cst_88 : f32 to vector<16x16xf32>
    %228 = arith.mulf %227, %224 : vector<16x16xf32>
    %229 = arith.select %226, %224, %228 : vector<16x16xi1>, vector<16x16xf32>
    %c0_89 = arith.constant 0 : index
    %c0_90 = arith.constant 0 : index
    %230 = vector.load %arg5[%c0_89, %c0_90] : memref<144x16xbf16, #tpu.memory_space<vmem>>, vector<144x16xbf16>
    %c0_91 = arith.constant 0 : index
    %c0_92 = arith.constant 0 : index
    %c0_93 = arith.constant 0 : index
    %231 = vector.load %arg20[%c0_91, %c0_92, %c0_93] : memref<9x16x2xf32, #tpu.memory_space<vmem>>, vector<9x16x2xf32>
    %c0_94 = arith.constant 0 : index
    %c0_95 = arith.constant 0 : index
    %232 = vector.load %arg21[%c0_94, %c0_95] : memref<1x2xf32, #tpu.memory_space<vmem>>, vector<1x2xf32>
    %233 = arith.extf %230 : vector<144x16xbf16> to vector<144x16xf32>
    %cst_96 = arith.constant dense<0.000000e+00> : vector<144x16xf32>
    %234 = tpu.matmul %233, %229, %cst_96 {dimension_numbers = #tpu.dot_dimension_numbers<[1], [0], [0], [1], [0, 0, 1, 1], [], []>} : vector<144x16xf32>, vector<16x16xf32>, vector<144x16xf32> -> vector<144x16xf32>
    %235 = vector.shape_cast %232 : vector<1x2xf32> to vector<1x2xf32>
    %236 = vector.broadcast %235 : vector<1x2xf32> to vector<16x2xf32>
    %237 = vector.extract_strided_slice %234 {offsets = [0, 0], sizes = [16, 16], strides = [1, 1]} : vector<144x16xf32> to vector<16x16xf32>
    %238 = vector.extract_strided_slice %231 {offsets = [0, 0, 0], sizes = [1, 16, 2], strides = [1, 1, 1]} : vector<9x16x2xf32> to vector<1x16x2xf32>
    %239 = vector.shape_cast %238 : vector<1x16x2xf32> to vector<16x2xf32>
    %cst_97 = arith.constant dense<0.000000e+00> : vector<16x2xf32>
    %240 = tpu.matmul %237, %239, %cst_97 {dimension_numbers = #tpu.dot_dimension_numbers<[1], [0], [0], [1], [0, 0, 1, 1], [], []>} : vector<16x16xf32>, vector<16x2xf32>, vector<16x2xf32> -> vector<16x2xf32>
    %241 = arith.addf %236, %240 : vector<16x2xf32>
    %242 = vector.extract_strided_slice %234 {offsets = [16, 0], sizes = [16, 16], strides = [1, 1]} : vector<144x16xf32> to vector<16x16xf32>
    %243 = vector.extract_strided_slice %231 {offsets = [1, 0, 0], sizes = [1, 16, 2], strides = [1, 1, 1]} : vector<9x16x2xf32> to vector<1x16x2xf32>
    %244 = vector.shape_cast %243 : vector<1x16x2xf32> to vector<16x2xf32>
    %cst_98 = arith.constant dense<0.000000e+00> : vector<16x2xf32>
    %245 = tpu.matmul %242, %244, %cst_98 {dimension_numbers = #tpu.dot_dimension_numbers<[1], [0], [0], [1], [0, 0, 1, 1], [], []>} : vector<16x16xf32>, vector<16x2xf32>, vector<16x2xf32> -> vector<16x2xf32>
    %246 = arith.addf %241, %245 : vector<16x2xf32>
    %247 = vector.extract_strided_slice %234 {offsets = [32, 0], sizes = [16, 16], strides = [1, 1]} : vector<144x16xf32> to vector<16x16xf32>
    %248 = vector.extract_strided_slice %231 {offsets = [2, 0, 0], sizes = [1, 16, 2], strides = [1, 1, 1]} : vector<9x16x2xf32> to vector<1x16x2xf32>
    %249 = vector.shape_cast %248 : vector<1x16x2xf32> to vector<16x2xf32>
    %cst_99 = arith.constant dense<0.000000e+00> : vector<16x2xf32>
    %250 = tpu.matmul %247, %249, %cst_99 {dimension_numbers = #tpu.dot_dimension_numbers<[1], [0], [0], [1], [0, 0, 1, 1], [], []>} : vector<16x16xf32>, vector<16x2xf32>, vector<16x2xf32> -> vector<16x2xf32>
    %251 = arith.addf %246, %250 : vector<16x2xf32>
    %252 = vector.extract_strided_slice %234 {offsets = [48, 0], sizes = [16, 16], strides = [1, 1]} : vector<144x16xf32> to vector<16x16xf32>
    %253 = vector.extract_strided_slice %231 {offsets = [3, 0, 0], sizes = [1, 16, 2], strides = [1, 1, 1]} : vector<9x16x2xf32> to vector<1x16x2xf32>
    %254 = vector.shape_cast %253 : vector<1x16x2xf32> to vector<16x2xf32>
    %cst_100 = arith.constant dense<0.000000e+00> : vector<16x2xf32>
    %255 = tpu.matmul %252, %254, %cst_100 {dimension_numbers = #tpu.dot_dimension_numbers<[1], [0], [0], [1], [0, 0, 1, 1], [], []>} : vector<16x16xf32>, vector<16x2xf32>, vector<16x2xf32> -> vector<16x2xf32>
    %256 = arith.addf %251, %255 : vector<16x2xf32>
    %257 = vector.extract_strided_slice %234 {offsets = [64, 0], sizes = [16, 16], strides = [1, 1]} : vector<144x16xf32> to vector<16x16xf32>
    %258 = vector.extract_strided_slice %231 {offsets = [4, 0, 0], sizes = [1, 16, 2], strides = [1, 1, 1]} : vector<9x16x2xf32> to vector<1x16x2xf32>
    %259 = vector.shape_cast %258 : vector<1x16x2xf32> to vector<16x2xf32>
    %cst_101 = arith.constant dense<0.000000e+00> : vector<16x2xf32>
    %260 = tpu.matmul %257, %259, %cst_101 {dimension_numbers = #tpu.dot_dimension_numbers<[1], [0], [0], [1], [0, 0, 1, 1], [], []>} : vector<16x16xf32>, vector<16x2xf32>, vector<16x2xf32> -> vector<16x2xf32>
    %261 = arith.addf %256, %260 : vector<16x2xf32>
    %262 = vector.extract_strided_slice %234 {offsets = [80, 0], sizes = [16, 16], strides = [1, 1]} : vector<144x16xf32> to vector<16x16xf32>
    %263 = vector.extract_strided_slice %231 {offsets = [5, 0, 0], sizes = [1, 16, 2], strides = [1, 1, 1]} : vector<9x16x2xf32> to vector<1x16x2xf32>
    %264 = vector.shape_cast %263 : vector<1x16x2xf32> to vector<16x2xf32>
    %cst_102 = arith.constant dense<0.000000e+00> : vector<16x2xf32>
    %265 = tpu.matmul %262, %264, %cst_102 {dimension_numbers = #tpu.dot_dimension_numbers<[1], [0], [0], [1], [0, 0, 1, 1], [], []>} : vector<16x16xf32>, vector<16x2xf32>, vector<16x2xf32> -> vector<16x2xf32>
    %266 = arith.addf %261, %265 : vector<16x2xf32>
    %267 = vector.extract_strided_slice %234 {offsets = [96, 0], sizes = [16, 16], strides = [1, 1]} : vector<144x16xf32> to vector<16x16xf32>
    %268 = vector.extract_strided_slice %231 {offsets = [6, 0, 0], sizes = [1, 16, 2], strides = [1, 1, 1]} : vector<9x16x2xf32> to vector<1x16x2xf32>
    %269 = vector.shape_cast %268 : vector<1x16x2xf32> to vector<16x2xf32>
    %cst_103 = arith.constant dense<0.000000e+00> : vector<16x2xf32>
    %270 = tpu.matmul %267, %269, %cst_103 {dimension_numbers = #tpu.dot_dimension_numbers<[1], [0], [0], [1], [0, 0, 1, 1], [], []>} : vector<16x16xf32>, vector<16x2xf32>, vector<16x2xf32> -> vector<16x2xf32>
    %271 = arith.addf %266, %270 : vector<16x2xf32>
    %272 = vector.extract_strided_slice %234 {offsets = [112, 0], sizes = [16, 16], strides = [1, 1]} : vector<144x16xf32> to vector<16x16xf32>
    %273 = vector.extract_strided_slice %231 {offsets = [7, 0, 0], sizes = [1, 16, 2], strides = [1, 1, 1]} : vector<9x16x2xf32> to vector<1x16x2xf32>
    %274 = vector.shape_cast %273 : vector<1x16x2xf32> to vector<16x2xf32>
    %cst_104 = arith.constant dense<0.000000e+00> : vector<16x2xf32>
    %275 = tpu.matmul %272, %274, %cst_104 {dimension_numbers = #tpu.dot_dimension_numbers<[1], [0], [0], [1], [0, 0, 1, 1], [], []>} : vector<16x16xf32>, vector<16x2xf32>, vector<16x2xf32> -> vector<16x2xf32>
    %276 = arith.addf %271, %275 : vector<16x2xf32>
    %277 = vector.extract_strided_slice %234 {offsets = [128, 0], sizes = [16, 16], strides = [1, 1]} : vector<144x16xf32> to vector<16x16xf32>
    %278 = vector.extract_strided_slice %231 {offsets = [8, 0, 0], sizes = [1, 16, 2], strides = [1, 1, 1]} : vector<9x16x2xf32> to vector<1x16x2xf32>
    %279 = vector.shape_cast %278 : vector<1x16x2xf32> to vector<16x2xf32>
    %cst_105 = arith.constant dense<0.000000e+00> : vector<16x2xf32>
    %280 = tpu.matmul %277, %279, %cst_105 {dimension_numbers = #tpu.dot_dimension_numbers<[1], [0], [0], [1], [0, 0, 1, 1], [], []>} : vector<16x16xf32>, vector<16x2xf32>, vector<16x2xf32> -> vector<16x2xf32>
    %281 = arith.addf %276, %280 : vector<16x2xf32>
    %c0_106 = arith.constant 0 : index
    %c0_107 = arith.constant 0 : index
    %c0_108 = arith.constant 0 : index
    %282 = vector.load %arg22[%c0_106, %c0_107, %c0_108] : memref<1x16x2xf32, #tpu.memory_space<vmem>>, vector<1x16x2xf32>
    %283 = vector.shape_cast %282 : vector<1x16x2xf32> to vector<16x2xf32>
    %284 = vector.shape_cast %281 : vector<16x2xf32> to vector<1x16x2xf32>
    tpu.vector_store %arg22[%c0_106, %c0_107, %c0_108], %284 {strides = array<i32>} : memref<1x16x2xf32, #tpu.memory_space<vmem>>, vector<1x16x2xf32>,
    return
  }
  func.func @transform_0(%arg0: i32) -> (i32, i32, i32) {
    %c0_i32 = arith.constant 0 : i32
    %c0_i32_0 = arith.constant 0 : i32
    %c0_i32_1 = arith.constant 0 : i32
    return %arg0, %c0_i32, %c0_i32_0 : i32, i32, i32
  }
  func.func @transform_1(%arg0: i32) -> (i32, i32) {
    %c0_i32 = arith.constant 0 : i32
    %c0_i32_0 = arith.constant 0 : i32
    %c0_i32_1 = arith.constant 0 : i32
    return %c0_i32, %c0_i32_0 : i32, i32
  }
  func.func @transform_2(%arg0: i32) -> (i32, i32) {
    %c0_i32 = arith.constant 0 : i32
    %c0_i32_0 = arith.constant 0 : i32
    %c0_i32_1 = arith.constant 0 : i32
    return %c0_i32, %c0_i32_0 : i32, i32
  }
  func.func @transform_3(%arg0: i32) -> (i32, i32) {
    %c0_i32 = arith.constant 0 : i32
    %c0_i32_0 = arith.constant 0 : i32
    %c0_i32_1 = arith.constant 0 : i32
    return %c0_i32, %c0_i32_0 : i32, i32
  }
  func.func @transform_4(%arg0: i32) -> (i32, i32) {
    %c0_i32 = arith.constant 0 : i32
    %c0_i32_0 = arith.constant 0 : i32
    %c0_i32_1 = arith.constant 0 : i32
    return %c0_i32, %c0_i32_0 : i32, i32
  }
  func.func @transform_5(%arg0: i32) -> (i32, i32, i32) {
    %c0_i32 = arith.constant 0 : i32
    %c0_i32_0 = arith.constant 0 : i32
    %c0_i32_1 = arith.constant 0 : i32
    %c0_i32_2 = arith.constant 0 : i32
    return %c0_i32, %c0_i32_0, %c0_i32_1 : i32, i32, i32
  }
  func.func @transform_6(%arg0: i32) -> (i32, i32) {
    %c0_i32 = arith.constant 0 : i32
    %c0_i32_0 = arith.constant 0 : i32
    %c0_i32_1 = arith.constant 0 : i32
    return %c0_i32, %c0_i32_0 : i32, i32
  }
  func.func @transform_7(%arg0: i32) -> (i32, i32, i32) {
    %c0_i32 = arith.constant 0 : i32
    %c0_i32_0 = arith.constant 0 : i32
    %c0_i32_1 = arith.constant 0 : i32
    %c0_i32_2 = arith.constant 0 : i32
    return %c0_i32, %c0_i32_0, %c0_i32_1 : i32, i32, i32
  }
  func.func @transform_8(%arg0: i32) -> (i32, i32) {
    %c0_i32 = arith.constant 0 : i32
    %c0_i32_0 = arith.constant 0 : i32
    %c0_i32_1 = arith.constant 0 : i32
    return %c0_i32, %c0_i32_0 : i32, i32
  }
  func.func @transform_9(%arg0: i32) -> (i32, i32) {
    %c0_i32 = arith.constant 0 : i32
    %c0_i32_0 = arith.constant 0 : i32
    %c0_i32_1 = arith.constant 0 : i32
    return %c0_i32, %c0_i32_0 : i32, i32
  }
  func.func @transform_10(%arg0: i32) -> (i32, i32) {
    %c0_i32 = arith.constant 0 : i32
    %c0_i32_0 = arith.constant 0 : i32
    %c0_i32_1 = arith.constant 0 : i32
    return %c0_i32, %c0_i32_0 : i32, i32
  }
  func.func @transform_11(%arg0: i32) -> (i32, i32) {
    %c0_i32 = arith.constant 0 : i32
    %c0_i32_0 = arith.constant 0 : i32
    %c0_i32_1 = arith.constant 0 : i32
    return %c0_i32, %c0_i32_0 : i32, i32
  }
  func.func @transform_12(%arg0: i32) -> (i32, i32) {
    %c0_i32 = arith.constant 0 : i32
    %c0_i32_0 = arith.constant 0 : i32
    %c0_i32_1 = arith.constant 0 : i32
    return %c0_i32, %c0_i32_0 : i32, i32
  }
  func.func @transform_13(%arg0: i32) -> (i32, i32, i32) {
    %c0_i32 = arith.constant 0 : i32
    %c0_i32_0 = arith.constant 0 : i32
    %c0_i32_1 = arith.constant 0 : i32
    %c0_i32_2 = arith.constant 0 : i32
    return %c0_i32, %c0_i32_0, %c0_i32_1 : i32, i32, i32
  }
  func.func @transform_14(%arg0: i32) -> (i32, i32) {
    %c0_i32 = arith.constant 0 : i32
    %c0_i32_0 = arith.constant 0 : i32
    %c0_i32_1 = arith.constant 0 : i32
    return %c0_i32, %c0_i32_0 : i32, i32
  }
  func.func @transform_15(%arg0: i32) -> (i32, i32) {
    %c0_i32 = arith.constant 0 : i32
    %c0_i32_0 = arith.constant 0 : i32
    %c0_i32_1 = arith.constant 0 : i32
    return %c0_i32, %c0_i32_0 : i32, i32
  }
  func.func @transform_16(%arg0: i32) -> (i32, i32) {
    %c0_i32 = arith.constant 0 : i32
    %c0_i32_0 = arith.constant 0 : i32
    %c0_i32_1 = arith.constant 0 : i32
    return %c0_i32, %c0_i32_0 : i32, i32
  }
  func.func @transform_17(%arg0: i32) -> (i32, i32) {
    %c0_i32 = arith.constant 0 : i32
    %c0_i32_0 = arith.constant 0 : i32
    %c0_i32_1 = arith.constant 0 : i32
    return %c0_i32, %c0_i32_0 : i32, i32
  }
  func.func @transform_18(%arg0: i32) -> (i32, i32) {
    %c0_i32 = arith.constant 0 : i32
    %c0_i32_0 = arith.constant 0 : i32
    %c0_i32_1 = arith.constant 0 : i32
    return %c0_i32, %c0_i32_0 : i32, i32
  }
  func.func @transform_19(%arg0: i32) -> (i32, i32, i32) {
    %c0_i32 = arith.constant 0 : i32
    %c0_i32_0 = arith.constant 0 : i32
    %c0_i32_1 = arith.constant 0 : i32
    %c0_i32_2 = arith.constant 0 : i32
    return %c0_i32, %c0_i32_0, %c0_i32_1 : i32, i32, i32
  }
  func.func @transform_20(%arg0: i32) -> (i32, i32) {
    %c0_i32 = arith.constant 0 : i32
    %c0_i32_0 = arith.constant 0 : i32
    %c0_i32_1 = arith.constant 0 : i32
    return %c0_i32, %c0_i32_0 : i32, i32
  }
  func.func @transform_21(%arg0: i32) -> (i32, i32, i32) {
    %c0_i32 = arith.constant 0 : i32
    %c0_i32_0 = arith.constant 0 : i32
    %c0_i32_1 = arith.constant 0 : i32
    return %arg0, %c0_i32, %c0_i32_0 : i32, i32, i32
  }
}

</mosaic_0001>

<bundles_post_ra>
// kernel: tile.38
= control target key start
LH: loop header
LB: loop body
LE: loop exit
PB: predicated region body
PF: predicated region fallthrough
CT: control target
= control target key end

     0   :  { %s22_s0 = inlined_call_operand.vmem [shape: f32[8], index: 0, kind: input, shape index: {}]   ;;  %s23_s1 = inlined_call_operand.vmem [shape: f32[2,8], index: 1, kind: output, shape index: {}]  }
   0x1   :  { %v4_v0 = vld [vmem:[%s22_s0] ss:$0 sm:$0xff] }
   0x2   :  { %5 = vst [vmem:[%s23_s1] sm:$0x3] %v4_v0 }

// kernel: tile.39
= control target key start
LH: loop header
LB: loop body
LE: loop exit
PB: predicated region body
PF: predicated region fallthrough
CT: control target
= control target key end

     0   :  { %vm7_vm0 = vcmask 64512   ;;  %vm13_vm1 = vcmask 130112   ;;  %s39_s0 = inlined_call_operand.vmem [shape: f32[2,8], index: 0, kind: input, shape index: {}]   ;;  %s40_s1 = inlined_call_operand.vmem [shape: f32[1,16], index: 1, kind: output, shape index: {}]  }
   0x1   :  { %v4_v0 = vld [vmem:[%s39_s0] sm:$0x3]  ;;  %s22_s0 = smov 8  }
   0x2   :  { %5 = vst [vmem:[#allocation1] sm:$0x3] %v4_v0 }
   0x9   :  { %v10_v1 = vld [vmem:[#allocation1 + $0x1] sm:$0x1]   ;;  %v6_v2 = vld [vmem:[#allocation1] sm:$0x1]  }
   0xa   :  { %11 = vrot.lane.b32.xlu0 %v10_v1, %s22_s0  ;;  %8 = vst.msk [vmem:[#allocation0] sm:$0x1] %vm7_vm0, %v6_v2  }
  0x7c   :  { %v12_v3 = vpop.permute.xlu0 %11  }
  0x7d   :  { %14 = vst.msk [vmem:[#allocation0] sm:$0x1] %vm13_vm1, %v12_v3  }
  0x84   :  { %v17_v4 = vld [vmem:[#allocation0] sm:$0x1] }
  0x85   :  { %20 = vst [vmem:[%s40_s1] sm:$0x1] %v17_v4 }

// kernel: tile.43
= control target key start
LH: loop header
LB: loop body
LE: loop exit
PB: predicated region body
PF: predicated region fallthrough
CT: control target
= control target key end

     0   :  { %s22_s0 = inlined_call_operand.vmem [shape: f32[16], index: 0, kind: input, shape index: {}]   ;;  %s23_s1 = inlined_call_operand.vmem [shape: f32[2,16], index: 1, kind: output, shape index: {}]  }
   0x1   :  { %v4_v0 = vld [vmem:[%s22_s0] ss:$0 sm:$0xff] }
   0x2   :  { %5 = vst [vmem:[%s23_s1] sm:$0x3] %v4_v0 }

// kernel: tile.44
= control target key start
LH: loop header
LB: loop body
LE: loop exit
PB: predicated region body
PF: predicated region fallthrough
CT: control target
= control target key end

     0   :  { %vm7_vm0 = vcmask 130048   ;;  %vm13_vm1 = vcmask 261248   ;;  %s39_s0 = inlined_call_operand.vmem [shape: f32[2,16], index: 0, kind: input, shape index: {}]   ;;  %s40_s1 = inlined_call_operand.vmem [shape: f32[1,32], index: 1, kind: output, shape index: {}]  }
   0x1   :  { %v4_v0 = vld [vmem:[%s39_s0] sm:$0x3]  ;;  %s22_s0 = smov 16  }
   0x2   :  { %5 = vst [vmem:[#allocation1] sm:$0x3] %v4_v0 }
   0x9   :  { %v10_v1 = vld [vmem:[#allocation1 + $0x1] sm:$0x1]   ;;  %v6_v2 = vld [vmem:[#allocation1] sm:$0x1]  }
   0xa   :  { %11 = vrot.lane.b32.xlu0 %v10_v1, %s22_s0  ;;  %8 = vst.msk [vmem:[#allocation0] sm:$0x1] %vm7_vm0, %v6_v2  }
  0x7c   :  { %v12_v3 = vpop.permute.xlu0 %11  }
  0x7d   :  { %14 = vst.msk [vmem:[#allocation0] sm:$0x1] %vm13_vm1, %v12_v3  }
  0x84   :  { %v17_v4 = vld [vmem:[#allocation0] sm:$0x1] }
  0x85   :  { %20 = vst [vmem:[%s40_s1] sm:$0x1] %v17_v4 }

// kernel: _forward_jit.1
= control target key start
LH: loop header
LB: loop body
LE: loop exit
PB: predicated region body
PF: predicated region fallthrough
CT: control target
= control target key end

     0   :  { %vm795_vm0 = vcmask 64512   ;;  %vm1453_vm1 = vcmask 130048   ;;  %vm1619_vm14 = vcmask 523264   ;;  %vm2027_vm15 = vcmask 261120   ;;  %s4818_s0 = inlined_call_operand.vmem [shape: f32[1,256,8], index: 0, kind: input, shape index: {}]   ;;  %s4819_s1 = inlined_call_operand.vmem [shape: bf16[576,256], index: 1, kind: input, shape index: {}]   ;;  %s4820_s5 = inlined_call_operand.vmem [shape: f32[9,8,16], index: 5, kind: input, shape index: {}]   ;;  %s4821_s6 = inlined_call_operand.vmem [shape: f32[1,16], index: 6, kind: input, shape index: {}]   ;;  %s4822_s2 = inlined_call_operand.vmem [shape: bf16[144,64], index: 2, kind: input, shape index: {}]   ;;  %s4823_s7 = inlined_call_operand.vmem [shape: f32[9,16,32], index: 7, kind: input, shape index: {}]   ;;  %s4824_s8 = inlined_call_operand.vmem [shape: f32[1,32], index: 8, kind: input, shape index: {}]   ;;  %s4825_s11 = inlined_call_operand.vmem [shape: f32[32,16], index: 11, kind: input, shape index: {}]   ;;  %s4826_s9 = inlined_call_operand.vmem [shape: f32[32,16], index: 9, kind: input, shape index: {}]   ;;  %s4827_s12 = inlined_call_operand.vmem [shape: f32[1,16], index: 12, kind: input, shape index: {}]   ;;  %s4828_s3 = inlined_call_operand.vmem [shape: bf16[144,16], index: 3, kind: input, shape index: {}]   ;;  %s4829_s13 = inlined_call_operand.vmem [shape: f32[9,32,16], index: 13, kind: input, shape index: {}]   ;;  %s4830_s14 = inlined_call_operand.vmem [shape: f32[1,16], index: 14, kind: input, shape index: {}]   ;;  %s4831_s16 = inlined_call_operand.vmem [shape: f32[16,16], index: 16, kind: input, shape index: {}]   ;;  %s4832_s17 = inlined_call_operand.vmem [shape: f32[16,16], index: 17, kind: input, shape index: {}]   ;;  %s4833_s15 = inlined_call_operand.vmem [shape: f32[16,16], index: 15, kind: input, shape index: {}]   ;;  %s4834_s10 = inlined_call_operand.vmem [shape: f32[1,16], index: 10, kind: input, shape index: {}]   ;;  %s4835_s18 = inlined_call_operand.vmem [shape: f32[1,16], index: 18, kind: input, shape index: {}]   ;;  %s4836_s19 = inlined_call_operand.vmem [shape: f32[9,16,2], index: 19, kind: input, shape index: {}]   ;;  %s4837_s4 = inlined_call_operand.vmem [shape: bf16[144,16], index: 4, kind: input, shape index: {}]   ;;  %s4838_s20 = inlined_call_operand.vmem [shape: f32[1,2], index: 20, kind: input, shape index: {}]   ;;  %s4839_s21 = inlined_call_operand.vmem [shape: f32[1,16,2], index: 21, kind: output, shape index: {}]  }
   0x1   :  { %4845 = sst [smem:[#allocation14_spill]] %s4818_s0 }
   0x2   :  { %4846 = sst [smem:[#allocation15_spill]] %s4819_s1 }
   0x3   :  { %4847 = sst [smem:[#allocation16_spill]] %s4820_s5 }
   0x4   :  { %4848 = sst [smem:[#allocation17_spill]] %s4821_s6 }
   0x5   :  { %4849 = sst [smem:[#allocation18_spill]] %s4822_s2 }
   0x6   :  { %4850 = sst [smem:[#allocation19_spill]] %s4823_s7 }
   0x7   :  { %s4851_s26 = sld [smem:[#allocation14_spill]] }
   0x8   :  { %s4852_s27 = sld [smem:[#allocation15_spill]] }
   0x9   :  { %s4853_s30 = sld [smem:[#allocation16_spill]] }
   0xa   :  { %s4865_s28 = sld [smem:[#allocation17_spill]] }
   0xb   :  { %s4879_s2 = sld [smem:[#allocation18_spill]] }
   0xc   :  { %s4880_s7 = sld [smem:[#allocation19_spill]] }
   0xd   :  { %v83_v0 = vld [vmem:[%s4851_s26 + $0x78] sm:$0xff]  ;;  %v82_v1 = vld [vmem:[%s4851_s26 + $0x70] sm:$0xff]  ;;  %v81_v2 = vld [vmem:[%s4851_s26 + $0x68] sm:$0xff] }
   0xe   :  { %3518 = vmatpush.msra.mxu1 %v83_v0  ;;  %326 = vmatpush.msra.mxu0 %v83_v0  ;;  %v80_v3 = vld [vmem:[%s4851_s26 + $0x60] sm:$0xff]  ;;  %v79_v4 = vld [vmem:[%s4851_s26 + $0x58] sm:$0xff]  ;;  %v78_v5 = vld [vmem:[%s4851_s26 + $0x50] sm:$0xff] }
   0xf   :  { %v77_v6 = vld [vmem:[%s4851_s26 + $0x48] sm:$0xff]  ;;  %v76_v7 = vld [vmem:[%s4851_s26 + $0x40] sm:$0xff]  ;;  %v75_v8 = vld [vmem:[%s4851_s26 + $0x38] sm:$0xff] }
  0x10   :  { %3519 = vmatpush.msra.mxu1 %v82_v1  ;;  %327 = vmatpush.msra.mxu0 %v82_v1  ;;  %v74_v9 = vld [vmem:[%s4851_s26 + $0x30] sm:$0xff]  ;;  %v73_v10 = vld [vmem:[%s4851_s26 + $0x28] sm:$0xff]  ;;  %v72_v11 = vld [vmem:[%s4851_s26 + $0x20] sm:$0xff] }
  0x11   :  { %v71_v12 = vld [vmem:[%s4851_s26 + $0x18] sm:$0xff]  ;;  %v70_v13 = vld [vmem:[%s4851_s26 + $0x10] sm:$0xff]  ;;  %v164_v14 = vld [vmem:[%s4852_s27 + $0x200] sm:$0xff] }
  0x12   :  { %3520 = vmatpush.msra.mxu1 %v81_v2  ;;  %328 = vmatpush.msra.mxu0 %v81_v2  ;;  %v69_v15 = vld [vmem:[%s4851_s26 + $0x8] sm:$0xff]  ;;  %v68_v16 = vld [vmem:[%s4851_s26] sm:$0xff]  ;;  %v310_v17 = vunpack.c.l.bf16 %v164_v14  ;;  %v99_v18 = vld [vmem:[%s4851_s26 + $0xf8] sm:$0xff] }
  0x13   :  { %v98_v19 = vld [vmem:[%s4851_s26 + $0xf0] sm:$0xff]  ;;  %v165_v20 = vld [vmem:[%s4852_s27 + $0x208] sm:$0xff]  ;;  %v96_v23 = vld [vmem:[%s4851_s26 + $0xe0] sm:$0xff] }
  0x14   :  { %3521 = vmatpush.msra.mxu1 %v80_v3  ;;  %329 = vmatpush.msra.mxu0 %v80_v3  ;;  %v97_v21 = vld [vmem:[%s4851_s26 + $0xe8] sm:$0xff]  ;;  %v312_v22 = vunpack.c.l.bf16 %v165_v20  ;;  %v95_v24 = vld [vmem:[%s4851_s26 + $0xd8] sm:$0xff]  ;;  %v94_v25 = vld [vmem:[%s4851_s26 + $0xd0] sm:$0xff] }
  0x15   :  { %v166_v26 = vld [vmem:[%s4852_s27 + $0x210] sm:$0xff]  ;;  %v93_v27 = vld [vmem:[%s4851_s26 + $0xc8] sm:$0xff]  ;;  %v92_v29 = vld [vmem:[%s4851_s26 + $0xc0] sm:$0xff] }
  0x16   :  { %3522 = vmatpush.msra.mxu1 %v79_v4  ;;  %330 = vmatpush.msra.mxu0 %v79_v4  ;;  %v314_v28 = vunpack.c.l.bf16 %v166_v26  ;;  %v91_v30 = vld [vmem:[%s4851_s26 + $0xb8] sm:$0xff]  ;;  %v90_v31 = vld [vmem:[%s4851_s26 + $0xb0] sm:$0xff]  ;;  %v89_v33 = vld [vmem:[%s4851_s26 + $0xa8] sm:$0xff] }
  0x17   :  { %v167_v32 = vld [vmem:[%s4852_s27 + $0x218] sm:$0xff]  ;;  %v88_v35 = vld [vmem:[%s4851_s26 + $0xa0] sm:$0xff]  ;;  %v86_v37 = vld [vmem:[%s4851_s26 + $0x90] sm:$0xff] }
  0x18   :  { %3523 = vmatpush.msra.mxu1 %v78_v5  ;;  %331 = vmatpush.msra.mxu0 %v78_v5  ;;  %v316_v34 = vunpack.c.l.bf16 %v167_v32  ;;  %v87_v36 = vld [vmem:[%s4851_s26 + $0x98] sm:$0xff]  ;;  %v168_v38 = vld [vmem:[%s4852_s27 + $0x220] sm:$0xff]  ;;  %v85_v40 = vld [vmem:[%s4851_s26 + $0x88] sm:$0xff] }
  0x19   :  { %v100_v39 = vld [vmem:[%s4852_s27] sm:$0xff]  ;;  %v318_v42 = vunpack.c.l.bf16 %v168_v38  ;;  %v101_v44 = vld [vmem:[%s4852_s27 + $0x8] sm:$0xff]  ;;  %v102_v48 = vld [vmem:[%s4852_s27 + $0x10] sm:$0xff] }
  0x1a   :  { %3524 = vmatpush.msra.mxu1 %v77_v6  ;;  %332 = vmatpush.msra.mxu0 %v77_v6  ;;  %v182_v41 = vunpack.c.l.bf16 %v100_v39  ;;  %v84_v43 = vld [vmem:[%s4851_s26 + $0x80] sm:$0xff]  ;;  %v169_v45 = vld [vmem:[%s4852_s27 + $0x228] sm:$0xff]  ;;  %v184_v46 = vunpack.c.l.bf16 %v101_v44  ;;  %v170_v49 = vld [vmem:[%s4852_s27 + $0x230] sm:$0xff]  ;;  %v186_v50 = vunpack.c.l.bf16 %v102_v48  ;;  %v183_v58 = vunpack.c.h.bf16 %v100_v39 }
  0x1b   :  { %v320_v47 = vunpack.c.l.bf16 %v169_v45  ;;  %v322_v51 = vunpack.c.l.bf16 %v170_v49  ;;  %v103_v52 = vld [vmem:[%s4852_s27 + $0x18] sm:$0xff]  ;;  %v104_v56 = vld [vmem:[%s4852_s27 + $0x20] sm:$0xff]  ;;  %v105_v59 = vld [vmem:[%s4852_s27 + $0x28] sm:$0xff]  ;;  %v185_v61 = vunpack.c.h.bf16 %v101_v44  ;;  %v187_v0 = vunpack.c.h.bf16 %v102_v48 }
  0x1c   :  { %3525 = vmatpush.msra.mxu1 %v76_v7  ;;  %333 = vmatpush.msra.mxu0 %v76_v7  ;;  %v171_v53 = vld [vmem:[%s4852_s27 + $0x238] sm:$0xff]  ;;  %v188_v54 = vunpack.c.l.bf16 %v103_v52  ;;  %v190_v57 = vunpack.c.l.bf16 %v104_v56  ;;  %v192_v60 = vunpack.c.l.bf16 %v105_v59  ;;  %v106_v62 = vld [vmem:[%s4852_s27 + $0x30] sm:$0xff]  ;;  %v189_v3 = vunpack.c.h.bf16 %v103_v52  ;;  %v108_v5 = vld [vmem:[%s4852_s27 + $0x40] sm:$0xff] }
  0x1d   :  { %v324_v55 = vunpack.c.l.bf16 %v171_v53  ;;  %v194_v63 = vunpack.c.l.bf16 %v106_v62  ;;  %v107_v1 = vld [vmem:[%s4852_s27 + $0x38] sm:$0xff]  ;;  %v191_v4 = vunpack.c.h.bf16 %v104_v56  ;;  %v198_v6 = vunpack.c.l.bf16 %v108_v5  ;;  %v114_v26 = vld [vmem:[%s4852_s27 + $0x70] sm:$0xff]  ;;  %v120_v56 = vld [vmem:[%s4852_s27 + $0xa0] sm:$0xff] }
  0x1e   :  { %3526 = vmatpush.msra.mxu1 %v75_v8  ;;  %334 = vmatpush.msra.mxu0 %v75_v8  ;;  %v196_v2 = vunpack.c.l.bf16 %v107_v1  ;;  %v193_v7 = vunpack.c.h.bf16 %v105_v59  ;;  %v109_v8 = vld [vmem:[%s4852_s27 + $0x48] sm:$0xff]  ;;  %v111_v14 = vld [vmem:[%s4852_s27 + $0x58] sm:$0xff]  ;;  %v211_v44 = vunpack.c.h.bf16 %v114_v26 }
  0x1f   :  { %v201_v20 = vunpack.c.h.bf16 %v109_v8 }
  0x20   :  { %3527 = vmatpush.msra.mxu1 %v74_v9  ;;  %335 = vmatpush.msra.mxu0 %v74_v9  ;;  %v200_v9 = vunpack.c.l.bf16 %v109_v8 }
  0x22   :  { %3528 = vmatpush.msra.mxu1 %v73_v10  ;;  %336 = vmatpush.msra.mxu0 %v73_v10  ;;  %v195_v10 = vunpack.c.h.bf16 %v106_v62  ;;  %v121_v62 = vld [vmem:[%s4852_s27 + $0xa8] sm:$0xff] }
  0x24   :  { %3529 = vmatpush.msra.mxu1 %v72_v11  ;;  %337 = vmatpush.msra.mxu0 %v72_v11  ;;  %v110_v11 = vld [vmem:[%s4852_s27 + $0x50] sm:$0xff] }
  0x26   :  { %3530 = vmatpush.msra.mxu1 %v71_v12  ;;  %338 = vmatpush.msra.mxu0 %v71_v12  ;;  %v202_v12 = vunpack.c.l.bf16 %v110_v11 }
  0x28   :  { %3531 = vmatpush.msra.mxu1 %v70_v13  ;;  %339 = vmatpush.msra.mxu0 %v70_v13  ;;  %v197_v13 = vunpack.c.h.bf16 %v107_v1 }
  0x2a   :  { %3532 = vmatpush.msra.mxu1 %v69_v15  ;;  %340 = vmatpush.msra.mxu0 %v69_v15  ;;  %v204_v15 = vunpack.c.l.bf16 %v111_v14 }
  0x2c   :  { %3533 = vmatpush.msra.mxu1 %v68_v16  ;;  %341 = vmatpush.msra.mxu0 %v68_v16  ;;  %v199_v16 = vunpack.c.h.bf16 %v108_v5 }
  0x2d   :  { %534 = vmatmul.f32.vlgmr.msra.gmra.mxu1 %v310_v17  ;;  %342 = vmatmul.f32.vlgmr.msra.gmra.mxu0 %v182_v41  ;;  %v117_v41 = vld [vmem:[%s4852_s27 + $0x88] sm:$0xff] }
  0x2e   :  { %559 = vmatpush.msrb.mxu1 %v99_v18  ;;  %v112_v18 = vld [vmem:[%s4852_s27 + $0x60] sm:$0xff] }
  0x30   :  { %560 = vmatpush.msrb.mxu1 %v98_v19  ;;  %v206_v19 = vunpack.c.l.bf16 %v112_v18 }
  0x32   :  { %561 = vmatpush.msrb.mxu1 %v97_v21 }
  0x34   :  { %562 = vmatpush.msrb.mxu1 %v96_v23 }
  0x35   :  { %537 = vmatmul.f32.gmra.mxu1 %v312_v22  ;;  %345 = vmatmul.f32.gmra.mxu0 %v184_v46  ;;  %v113_v22 = vld [vmem:[%s4852_s27 + $0x68] sm:$0xff]  ;;  %v118_v46 = vld [vmem:[%s4852_s27 + $0x90] sm:$0xff] }
  0x36   :  { %563 = vmatpush.msrb.mxu1 %v95_v24  ;;  %v208_v23 = vunpack.c.l.bf16 %v113_v22  ;;  %v203_v24 = vunpack.c.h.bf16 %v110_v11  ;;  %v209_v39 = vunpack.c.h.bf16 %v113_v22  ;;  %v225_v22 = vunpack.c.h.bf16 %v121_v62 }
  0x38   :  { %564 = vmatpush.msrb.mxu1 %v94_v25 }
  0x3a   :  { %565 = vmatpush.msrb.mxu1 %v93_v27  ;;  %v210_v27 = vunpack.c.l.bf16 %v114_v26  ;;  %v125_v26 = vld [vmem:[%s4852_s27 + $0xc8] sm:$0xff] }
  0x3c   :  { %566 = vmatpush.msrb.mxu1 %v92_v29 }
  0x3d   :  { %540 = vmatmul.f32.gmra.mxu1 %v314_v28  ;;  %348 = vmatmul.f32.gmra.mxu0 %v186_v50  ;;  %v205_v28 = vunpack.c.h.bf16 %v111_v14 }
  0x3e   :  { %567 = vmatpush.msrb.mxu1 %v91_v30  ;;  %v115_v30 = vld [vmem:[%s4852_s27 + $0x78] sm:$0xff] }
  0x3f   :  { %v213_v49 = vunpack.c.h.bf16 %v115_v30 }
  0x40   :  { %568 = vmatpush.msrb.mxu1 %v90_v31  ;;  %v212_v31 = vunpack.c.l.bf16 %v115_v30 }
  0x42   :  { %569 = vmatpush.msrb.mxu1 %v89_v33  ;;  %v207_v33 = vunpack.c.h.bf16 %v112_v18 }
  0x44   :  { %570 = vmatpush.msrb.mxu1 %v88_v35  ;;  %v116_v35 = vld [vmem:[%s4852_s27 + $0x80] sm:$0xff] }
  0x45   :  { %543 = vmatmul.f32.gmra.mxu1 %v316_v34  ;;  %351 = vmatmul.f32.gmra.mxu0 %v188_v54  ;;  %v215_v54 = vunpack.c.h.bf16 %v116_v35 }
  0x46   :  { %571 = vmatpush.msrb.mxu1 %v87_v36  ;;  %v172_v36 = vld [vmem:[%s4853_s30] sm:$0xff] }
  0x47   :  { %835 = vmatpush.msra.mxu2 %v172_v36 }
  0x48   :  { %572 = vmatpush.msrb.mxu1 %v86_v37  ;;  %v214_v37 = vunpack.c.l.bf16 %v116_v35 }
  0x4a   :  { %573 = vmatpush.msrb.mxu1 %v85_v40 }
  0x4c   :  { %574 = vmatpush.msrb.mxu1 %v84_v43 }
  0x4d   :  { %546 = vmatmul.f32.gmra.mxu1 %v318_v42  ;;  %354 = vmatmul.f32.gmra.mxu0 %v190_v57  ;;  %v216_v42 = vunpack.c.l.bf16 %v117_v41 }
  0x55   :  { %549 = vmatmul.f32.gmra.mxu1 %v320_v47  ;;  %357 = vmatmul.f32.gmra.mxu0 %v192_v60  ;;  %v218_v47 = vunpack.c.l.bf16 %v118_v46  ;;  %v217_v60 = vunpack.c.h.bf16 %v117_v41  ;;  %v127_v41 = vld [vmem:[%s4852_s27 + $0xd8] sm:$0xff] }
  0x5d   :  { %552 = vmatmul.f32.gmra.mxu1 %v322_v51  ;;  %360 = vmatmul.f32.gmra.mxu0 %v194_v63  ;;  %v119_v51 = vld [vmem:[%s4852_s27 + $0x98] sm:$0xff] }
  0x5e   :  { %v220_v52 = vunpack.c.l.bf16 %v119_v51  ;;  %v221_v8 = vunpack.c.h.bf16 %v119_v51 }
  0x65   :  { %555 = vmatmul.f32.gmra.mxu1 %v324_v55  ;;  %363 = vmatmul.f32.gmra.mxu0 %v196_v2  ;;  %v219_v2 = vunpack.c.h.bf16 %v118_v46 }
  0x6d   :  { %575 = vmatmul.f32.vlgmr.msrb.gmra.mxu1 %v183_v58  ;;  %366 = vmatmul.f32.gmra.mxu0 %v198_v6  ;;  %v222_v58 = vunpack.c.l.bf16 %v120_v56 }
  0x75   :  { %578 = vmatmul.f32.gmra.mxu1 %v185_v61  ;;  %369 = vmatmul.f32.gmra.mxu0 %v200_v9 }
  0x7d   :  { %581 = vmatmul.f32.gmra.mxu1 %v187_v0  ;;  %372 = vmatmul.f32.gmra.mxu0 %v202_v12  ;;  %v224_v0 = vunpack.c.l.bf16 %v121_v62 }
  0x85   :  { %584 = vmatmul.f32.gmra.mxu1 %v189_v3  ;;  %375 = vmatmul.f32.gmra.mxu0 %v204_v15 }
  0x8d   :  { %587 = vmatmul.f32.gmra.mxu1 %v191_v4  ;;  %378 = vmatmul.f32.gmra.mxu0 %v206_v19  ;;  %v122_v4 = vld [vmem:[%s4852_s27 + $0xb0] sm:$0xff]  ;;  %v173_v19 = vld [vmem:[%s4853_s30 + $0x8] sm:$0xff] }
  0x8e   :  { %v226_v6 = vunpack.c.l.bf16 %v122_v4  ;;  %908 = vmatpush.msra.mxu3 %v173_v19  ;;  %v227_v30 = vunpack.c.h.bf16 %v122_v4 }
  0x95   :  { %590 = vmatmul.f32.gmra.mxu1 %v193_v7  ;;  %381 = vmatmul.f32.gmra.mxu0 %v208_v23 }
  0x9d   :  { %593 = vmatmul.f32.gmra.mxu1 %v195_v10  ;;  %384 = vmatmul.f32.gmra.mxu0 %v210_v27  ;;  %v123_v10 = vld [vmem:[%s4852_s27 + $0xb8] sm:$0xff] }
  0x9e   :  { %v228_v12 = vunpack.c.l.bf16 %v123_v10 }
  0xa5   :  { %596 = vmatmul.f32.gmra.mxu1 %v197_v13  ;;  %387 = vmatmul.f32.gmra.mxu0 %v212_v31  ;;  %v223_v13 = vunpack.c.h.bf16 %v120_v56 }
  0xaa   :  { %v3826_v17 = vpop.f32.mrf.mxu1  ;;  %v343_v32 = vpop.f32.mrf.mxu0 }
  0xad   :  { %599 = vmatmul.f32.gmra.mxu1 %v199_v16  ;;  %390 = vmatmul.f32.gmra.mxu0 %v214_v37  ;;  %v124_v16 = vld [vmem:[%s4852_s27 + $0xc0] sm:$0xff]  ;;  %v229_v37 = vunpack.c.h.bf16 %v123_v10 }
  0xb2   :  { %v3831_v21 = vpop.f32.mrf.mxu1  ;;  %v346_v38 = vpop.f32.mrf.mxu0 }
  0xb5   :  { %602 = vmatmul.f32.gmra.mxu1 %v201_v20  ;;  %393 = vmatmul.f32.gmra.mxu0 %v216_v42  ;;  %v230_v20 = vunpack.c.l.bf16 %v124_v16 }
  0xba   :  { %v3836_v25 = vpop.f32.mrf.mxu1  ;;  %v349_v43 = vpop.f32.mrf.mxu0 }
  0xbd   :  { %605 = vmatmul.f32.gmra.mxu1 %v203_v24  ;;  %396 = vmatmul.f32.gmra.mxu0 %v218_v47 }
  0xc2   :  { %v3841_v29 = vpop.f32.mrf.mxu1  ;;  %v352_v48 = vpop.f32.mrf.mxu0 }
  0xc5   :  { %608 = vmatmul.f32.gmra.mxu1 %v205_v28  ;;  %399 = vmatmul.f32.gmra.mxu0 %v220_v52  ;;  %v232_v28 = vunpack.c.l.bf16 %v125_v26  ;;  %v233_v52 = vunpack.c.h.bf16 %v125_v26 }
  0xca   :  { %v3846_v34 = vpop.f32.mrf.mxu1  ;;  %v355_v53 = vpop.f32.mrf.mxu0 }
  0xcd   :  { %611 = vmatmul.f32.gmra.mxu1 %v207_v33  ;;  %402 = vmatmul.f32.gmra.mxu0 %v222_v58  ;;  %v126_v33 = vld [vmem:[%s4852_s27 + $0xd0] sm:$0xff] }
  0xce   :  { %v234_v36 = vunpack.c.l.bf16 %v126_v33  ;;  %v235_v58 = vunpack.c.h.bf16 %v126_v33 }
  0xd2   :  { %v3854_v40 = vpop.f32.mrf.mxu1  ;;  %v358_v59 = vpop.f32.mrf.mxu0 }
  0xd5   :  { %614 = vmatmul.f32.gmra.mxu1 %v209_v39  ;;  %405 = vmatmul.f32.gmra.mxu0 %v224_v0  ;;  %v237_v0 = vunpack.c.h.bf16 %v127_v41 }
  0xda   :  { %v3859_v45 = vpop.f32.mrf.mxu1  ;;  %v361_v1 = vpop.f32.mrf.mxu0 }
  0xdd   :  { %617 = vmatmul.f32.gmra.mxu1 %v211_v44  ;;  %408 = vmatmul.f32.gmra.mxu0 %v226_v6  ;;  %v231_v44 = vunpack.c.h.bf16 %v124_v16  ;;  %v133_v16 = vld [vmem:[%s4852_s27 + $0x108] sm:$0xff] }
  0xde   :  { %v248_v19 = vunpack.c.l.bf16 %v133_v16 }
  0xe2   :  { %v3864_v50 = vpop.f32.mrf.mxu1  ;;  %v364_v7 = vpop.f32.mrf.mxu0 }
  0xe5   :  { %620 = vmatmul.f32.gmra.mxu1 %v213_v49  ;;  %411 = vmatmul.f32.gmra.mxu0 %v228_v12 }
  0xea   :  { %v576_v55 = vpop.f32.mrf.mxu1  ;;  %v367_v15 = vpop.f32.mrf.mxu0 }
  0xeb   :  { %v577_v57 = vadd.f32 %v576_v55, %v343_v32  ;;  %v129_v55 = vld [vmem:[%s4852_s27 + $0xe8] sm:$0xff] }
  0xed   :  { %623 = vmatmul.f32.gmra.mxu1 %v215_v54  ;;  %3198 = vmatmul.msk.f32.vlgmr.msra.gmra.mxu2 %vm795_vm0, %v577_v57  ;;  %v240_v57 = vunpack.c.l.bf16 %v129_v55 }
  0xee   :  { %414 = vmatmul.f32.gmra.mxu0 %v230_v20 }
  0xf2   :  { %v579_v61 = vpop.f32.mrf.mxu1  ;;  %v370_v24 = vpop.f32.mrf.mxu0 }
  0xf3   :  { %v580_v63 = vadd.f32 %v579_v61, %v346_v38  ;;  %v130_v61 = vld [vmem:[%s4852_s27 + $0xf0] sm:$0xff] }
  0xf4   :  { %v243_v20 = vunpack.c.h.bf16 %v130_v61 }
  0xf5   :  { %626 = vmatmul.f32.gmra.mxu1 %v217_v60  ;;  %3199 = vmatmul.msk.f32.gmra.mxu2 %vm795_vm0, %v580_v63  ;;  %v242_v63 = vunpack.c.l.bf16 %v130_v61 }
  0xf6   :  { %417 = vmatmul.f32.gmra.mxu0 %v232_v28 }
  0xfa   :  { %v582_v3 = vpop.f32.mrf.mxu1  ;;  %v373_v32 = vpop.f32.mrf.mxu0 }
  0xfb   :  { %v583_v5 = vadd.f32 %v582_v3, %v349_v43  ;;  %v236_v43 = vunpack.c.l.bf16 %v127_v41  ;;  %v131_v3 = vld [vmem:[%s4852_s27 + $0xf8] sm:$0xff] }
  0xfc   :  { %v245_v28 = vunpack.c.h.bf16 %v131_v3 }
  0xfd   :  { %629 = vmatmul.f32.gmra.mxu1 %v219_v2  ;;  %3200 = vmatmul.msk.f32.gmra.mxu2 %vm795_vm0, %v583_v5  ;;  %v244_v5 = vunpack.c.l.bf16 %v131_v3 }
  0xfe   :  { %420 = vmatmul.f32.gmra.mxu0 %v234_v36 }
 0x102   :  { %v585_v9 = vpop.f32.mrf.mxu1  ;;  %v376_v39 = vpop.f32.mrf.mxu0 }
 0x103   :  { %v586_v11 = vadd.f32 %v585_v9, %v352_v48  ;;  %v128_v48 = vld [vmem:[%s4852_s27 + $0xe0] sm:$0xff] }
 0x104   :  { %v238_v51 = vunpack.c.l.bf16 %v128_v48  ;;  %v239_v6 = vunpack.c.h.bf16 %v128_v48  ;;  %v132_v9 = vld [vmem:[%s4852_s27 + $0x100] sm:$0xff] }
 0x105   :  { %632 = vmatmul.f32.gmra.mxu1 %v221_v8  ;;  %3201 = vmatmul.msk.f32.gmra.mxu2 %vm795_vm0, %v586_v11  ;;  %v174_v11 = vld [vmem:[%s4853_s30 + $0x10] sm:$0xff]  ;;  %v246_v12 = vunpack.c.l.bf16 %v132_v9  ;;  %v247_v36 = vunpack.c.h.bf16 %v132_v9 }
 0x106   :  { %423 = vmatmul.f32.gmra.mxu0 %v236_v43  ;;  %981 = vmatpush.msrb.mxu2 %v174_v11  ;;  %v249_v43 = vunpack.c.h.bf16 %v133_v16 }
 0x10a   :  { %v588_v14 = vpop.f32.mrf.mxu1  ;;  %v379_v47 = vpop.f32.mrf.mxu0 }
 0x10b   :  { %v589_v18 = vadd.f32 %v588_v14, %v355_v53 }
 0x10d   :  { %635 = vmatmul.f32.gmra.mxu1 %v223_v13  ;;  %3202 = vmatmul.msk.f32.gmra.mxu2 %vm795_vm0, %v589_v18  ;;  %v241_v13 = vunpack.c.h.bf16 %v129_v55 }
 0x10e   :  { %426 = vmatmul.f32.gmra.mxu0 %v238_v51 }
 0x112   :  { %v591_v23 = vpop.f32.mrf.mxu1  ;;  %v382_v54 = vpop.f32.mrf.mxu0 }
 0x113   :  { %v592_v27 = vadd.f32 %v591_v23, %v358_v59 }
 0x115   :  { %638 = vmatmul.f32.gmra.mxu1 %v225_v22  ;;  %3203 = vmatmul.msk.f32.gmra.mxu2 %vm795_vm0, %v592_v27 }
 0x116   :  { %429 = vmatmul.f32.gmra.mxu0 %v240_v57 }
 0x11a   :  { %v594_v31 = vpop.f32.mrf.mxu1  ;;  %v385_v60 = vpop.f32.mrf.mxu0 }
 0x11b   :  { %v595_v35 = vadd.f32 %v594_v31, %v361_v1 }
 0x11d   :  { %641 = vmatmul.f32.gmra.mxu1 %v227_v30  ;;  %3204 = vmatmul.msk.f32.gmra.mxu2 %vm795_vm0, %v595_v35 }
 0x11e   :  { %432 = vmatmul.f32.gmra.mxu0 %v242_v63 }
 0x122   :  { %v597_v38 = vpop.f32.mrf.mxu1  ;;  %v388_v2 = vpop.f32.mrf.mxu0 }
 0x123   :  { %v598_v42 = vadd.f32 %v597_v38, %v364_v7  ;;  %v136_v38 = vld [vmem:[%s4852_s27 + $0x120] sm:$0xff] }
 0x124   :  { %v255_v63 = vunpack.c.h.bf16 %v136_v38 }
 0x125   :  { %644 = vmatmul.f32.gmra.mxu1 %v229_v37  ;;  %3205 = vmatmul.msk.f32.gmra.mxu2 %vm795_vm0, %v598_v42  ;;  %v254_v42 = vunpack.c.l.bf16 %v136_v38 }
 0x126   :  { %435 = vmatmul.f32.gmra.mxu0 %v244_v5 }
 0x12a   :  { %v600_v46 = vpop.f32.mrf.mxu1  ;;  %v391_v8 = vpop.f32.mrf.mxu0 }
 0x12b   :  { %v601_v49 = vadd.f32 %v600_v46, %v367_v15  ;;  %v137_v46 = vld [vmem:[%s4852_s27 + $0x128] sm:$0xff] }
 0x12d   :  { %647 = vmatmul.f32.gmra.mxu1 %v231_v44  ;;  %3206 = vmatmul.msk.f32.vlgmr.msra.gmra.mxu3 %vm795_vm0, %v601_v49  ;;  %v256_v49 = vunpack.c.l.bf16 %v137_v46 }
 0x12e   :  { %438 = vmatmul.f32.gmra.mxu0 %v246_v12 }
 0x132   :  { %v603_v53 = vpop.f32.mrf.mxu1  ;;  %v394_v15 = vpop.f32.mrf.mxu0 }
 0x133   :  { %v604_v56 = vadd.f32 %v603_v53, %v370_v24  ;;  %v134_v24 = vld [vmem:[%s4852_s27 + $0x110] sm:$0xff] }
 0x134   :  { %v250_v27 = vunpack.c.l.bf16 %v134_v24  ;;  %v251_v51 = vunpack.c.h.bf16 %v134_v24  ;;  %v138_v53 = vld [vmem:[%s4852_s27 + $0x130] sm:$0xff] }
 0x135   :  { %650 = vmatmul.f32.gmra.mxu1 %v233_v52  ;;  %3207 = vmatmul.msk.f32.gmra.mxu3 %vm795_vm0, %v604_v56  ;;  %v258_v56 = vunpack.c.l.bf16 %v138_v53  ;;  %v259_v12 = vunpack.c.h.bf16 %v138_v53 }
 0x136   :  { %441 = vmatmul.f32.gmra.mxu0 %v248_v19 }
 0x13a   :  { %v606_v59 = vpop.f32.mrf.mxu1  ;;  %v397_v23 = vpop.f32.mrf.mxu0 }
 0x13b   :  { %v607_v62 = vadd.f32 %v606_v59, %v373_v32  ;;  %v135_v32 = vld [vmem:[%s4852_s27 + $0x118] sm:$0xff] }
 0x13c   :  { %v252_v35 = vunpack.c.l.bf16 %v135_v32  ;;  %v253_v57 = vunpack.c.h.bf16 %v135_v32  ;;  %v139_v59 = vld [vmem:[%s4852_s27 + $0x138] sm:$0xff] }
 0x13d   :  { %653 = vmatmul.f32.gmra.mxu1 %v235_v58  ;;  %3208 = vmatmul.msk.f32.gmra.mxu3 %vm795_vm0, %v607_v62  ;;  %v260_v62 = vunpack.c.l.bf16 %v139_v59  ;;  %v261_v19 = vunpack.c.h.bf16 %v139_v59 }
 0x13e   :  { %444 = vmatmul.f32.gmra.mxu0 %v250_v27 }
 0x142   :  { %v609_v1 = vpop.f32.mrf.mxu1  ;;  %v400_v31 = vpop.f32.mrf.mxu0 }
 0x143   :  { %v610_v4 = vadd.f32 %v609_v1, %v376_v39  ;;  %v140_v1 = vld [vmem:[%s4852_s27 + $0x140] sm:$0xff] }
 0x144   :  { %v262_v5 = vunpack.c.l.bf16 %v140_v1  ;;  %v263_v27 = vunpack.c.h.bf16 %v140_v1  ;;  %v149_v1 = vld [vmem:[%s4852_s27 + $0x188] sm:$0xff] }
 0x145   :  { %656 = vmatmul.f32.gmra.mxu1 %v237_v0  ;;  %3209 = vmatmul.msk.f32.gmra.mxu3 %vm795_vm0, %v610_v4  ;;  %v175_v4 = vld [vmem:[%s4853_s30 + $0x18] sm:$0xff] }
 0x146   :  { %447 = vmatmul.f32.gmra.mxu0 %v252_v35  ;;  %1054 = vmatpush.msrb.mxu3 %v175_v4  ;;  %v280_v4 = vunpack.c.l.bf16 %v149_v1 }
 0x14a   :  { %v612_v7 = vpop.f32.mrf.mxu1  ;;  %v403_v41 = vpop.f32.mrf.mxu0 }
 0x14b   :  { %v613_v10 = vadd.f32 %v612_v7, %v379_v47 }
 0x14d   :  { %659 = vmatmul.f32.gmra.mxu1 %v239_v6  ;;  %3210 = vmatmul.msk.f32.gmra.mxu3 %vm795_vm0, %v613_v10  ;;  %v257_v6 = vunpack.c.h.bf16 %v137_v46 }
 0x14e   :  { %450 = vmatmul.f32.gmra.mxu0 %v254_v42 }
 0x152   :  { %v615_v14 = vpop.f32.mrf.mxu1  ;;  %v406_v48 = vpop.f32.mrf.mxu0 }
 0x153   :  { %v616_v18 = vadd.f32 %v615_v14, %v382_v54  ;;  %v142_v14 = vld [vmem:[%s4852_s27 + $0x150] sm:$0xff] }
 0x154   :  { %v267_v42 = vunpack.c.h.bf16 %v142_v14 }
 0x155   :  { %662 = vmatmul.f32.gmra.mxu1 %v241_v13  ;;  %3211 = vmatmul.msk.f32.gmra.mxu3 %vm795_vm0, %v616_v18  ;;  %v266_v18 = vunpack.c.l.bf16 %v142_v14 }
 0x156   :  { %453 = vmatmul.f32.gmra.mxu0 %v256_v49 }
 0x15a   :  { %v618_v22 = vpop.f32.mrf.mxu1  ;;  %v409_v55 = vpop.f32.mrf.mxu0 }
 0x15b   :  { %v619_v26 = vadd.f32 %v618_v22, %v385_v60  ;;  %v143_v22 = vld [vmem:[%s4852_s27 + $0x158] sm:$0xff] }
 0x15c   :  { %v269_v49 = vunpack.c.h.bf16 %v143_v22 }
 0x15d   :  { %665 = vmatmul.f32.gmra.mxu1 %v243_v20  ;;  %3212 = vmatmul.msk.f32.gmra.mxu3 %vm795_vm0, %v619_v26  ;;  %v268_v26 = vunpack.c.l.bf16 %v143_v22 }
 0x15e   :  { %456 = vmatmul.f32.gmra.mxu0 %v258_v56 }
 0x162   :  { %v621_v30 = vpop.f32.mrf.mxu1  ;;  %v412_v61 = vpop.f32.mrf.mxu0 }
 0x163   :  { %v622_v33 = vadd.f32 %v621_v30, %v388_v2  ;;  %v144_v30 = vld [vmem:[%s4852_s27 + $0x160] sm:$0xff] }
 0x164   :  { %v271_v56 = vunpack.c.h.bf16 %v144_v30 }
 0x165   :  { %668 = vmatmul.f32.gmra.mxu1 %v245_v28  ;;  %3213 = vmatmul.msk.f32.gmra.mxu3 %vm795_vm0, %v622_v33  ;;  %v270_v33 = vunpack.c.l.bf16 %v144_v30 }
 0x166   :  { %459 = vmatmul.f32.gmra.mxu0 %v260_v62 }
 0x16a   :  { %v624_v37 = vpop.f32.mrf.mxu1 }
 0x16b   :  { %v625_v39 = vadd.f32 %v624_v37, %v391_v8  ;;  %v415_v3 = vpop.f32.mrf.mxu0  ;;  %v141_v8 = vld [vmem:[%s4852_s27 + $0x148] sm:$0xff] }
 0x16c   :  { %v264_v11 = vunpack.c.l.bf16 %v141_v8  ;;  %v265_v35 = vunpack.c.h.bf16 %v141_v8  ;;  %v145_v37 = vld [vmem:[%s4852_s27 + $0x168] sm:$0xff] }
 0x16d   :  { %671 = vmatmul.f32.gmra.mxu1 %v247_v36  ;;  %3214 = vmatmul.msk.f32.vlgmr.msrb.gmra.mxu2 %vm795_vm0, %v625_v39 }
 0x16e   :  { %462 = vmatmul.f32.gmra.mxu0 %v262_v5 }
 0x172   :  { %v627_v44 = vpop.f32.mrf.mxu1 }
 0x173   :  { %v628_v47 = vadd.f32 %v627_v44, %v394_v15  ;;  %v418_v10 = vpop.f32.mrf.mxu0  ;;  %v146_v44 = vld [vmem:[%s4852_s27 + $0x170] sm:$0xff] }
 0x174   :  { %v275_v5 = vunpack.c.h.bf16 %v146_v44 }
 0x175   :  { %674 = vmatmul.f32.gmra.mxu1 %v249_v43  ;;  %3215 = vmatmul.msk.f32.gmra.mxu2 %vm795_vm0, %v628_v47 }
 0x176   :  { %465 = vmatmul.f32.gmra.mxu0 %v264_v11 }
 0x17a   :  { %v630_v52 = vpop.f32.mrf.mxu1 }
 0x17b   :  { %v631_v54 = vadd.f32 %v630_v52, %v397_v23  ;;  %v421_v16 = vpop.f32.mrf.mxu0  ;;  %v147_v52 = vld [vmem:[%s4852_s27 + $0x178] sm:$0xff] }
 0x17c   :  { %v277_v11 = vunpack.c.h.bf16 %v147_v52 }
 0x17d   :  { %677 = vmatmul.f32.gmra.mxu1 %v251_v51  ;;  %3216 = vmatmul.msk.f32.gmra.mxu2 %vm795_vm0, %v631_v54 }
 0x17e   :  { %468 = vmatmul.f32.gmra.mxu0 %v266_v18 }
 0x182   :  { %v633_v58 = vpop.f32.mrf.mxu1 }
 0x183   :  { %v634_v60 = vadd.f32 %v633_v58, %v400_v31  ;;  %v424_v24 = vpop.f32.mrf.mxu0  ;;  %v148_v58 = vld [vmem:[%s4852_s27 + $0x180] sm:$0xff] }
 0x184   :  { %v278_v62 = vunpack.c.l.bf16 %v148_v58  ;;  %v279_v18 = vunpack.c.h.bf16 %v148_v58  ;;  %v157_v58 = vld [vmem:[%s4852_s27 + $0x1c8] sm:$0xff] }
 0x185   :  { %680 = vmatmul.f32.gmra.mxu1 %v253_v57  ;;  %3217 = vmatmul.msk.f32.gmra.mxu2 %vm795_vm0, %v634_v60 }
 0x186   :  { %471 = vmatmul.f32.gmra.mxu0 %v268_v26  ;;  %v281_v26 = vunpack.c.h.bf16 %v149_v1 }
 0x18a   :  { %v636_v0 = vpop.f32.mrf.mxu1 }
 0x18b   :  { %v637_v2 = vadd.f32 %v636_v0, %v403_v41  ;;  %v427_v32 = vpop.f32.mrf.mxu0  ;;  %v272_v41 = vunpack.c.l.bf16 %v145_v37 }
 0x18d   :  { %683 = vmatmul.f32.gmra.mxu1 %v255_v63  ;;  %3218 = vmatmul.msk.f32.gmra.mxu2 %vm795_vm0, %v637_v2  ;;  %v273_v63 = vunpack.c.h.bf16 %v145_v37 }
 0x18e   :  { %474 = vmatmul.f32.gmra.mxu0 %v270_v33 }
 0x192   :  { %v639_v7 = vpop.f32.mrf.mxu1 }
 0x193   :  { %v640_v9 = vadd.f32 %v639_v7, %v406_v48  ;;  %v430_v39 = vpop.f32.mrf.mxu0  ;;  %v274_v48 = vunpack.c.l.bf16 %v146_v44  ;;  %v150_v7 = vld [vmem:[%s4852_s27 + $0x190] sm:$0xff] }
 0x194   :  { %v283_v33 = vunpack.c.h.bf16 %v150_v7 }
 0x195   :  { %686 = vmatmul.f32.gmra.mxu1 %v257_v6  ;;  %3219 = vmatmul.msk.f32.gmra.mxu2 %vm795_vm0, %v640_v9 }
 0x196   :  { %477 = vmatmul.f32.gmra.mxu0 %v272_v41 }
 0x19a   :  { %v642_v13 = vpop.f32.mrf.mxu1 }
 0x19b   :  { %v643_v15 = vadd.f32 %v642_v13, %v409_v55  ;;  %v433_v47 = vpop.f32.mrf.mxu0  ;;  %v276_v55 = vunpack.c.l.bf16 %v147_v52  ;;  %v151_v13 = vld [vmem:[%s4852_s27 + $0x198] sm:$0xff] }
 0x19c   :  { %v285_v41 = vunpack.c.h.bf16 %v151_v13 }
 0x19d   :  { %689 = vmatmul.f32.gmra.mxu1 %v259_v12  ;;  %3220 = vmatmul.msk.f32.gmra.mxu2 %vm795_vm0, %v643_v15 }
 0x19e   :  { %480 = vmatmul.f32.gmra.mxu0 %v274_v48 }
 0x1a2   :  { %v645_v20 = vpop.f32.mrf.mxu1 }
 0x1a3   :  { %v646_v23 = vadd.f32 %v645_v20, %v412_v61  ;;  %v436_v54 = vpop.f32.mrf.mxu0  ;;  %v176_v61 = vld [vmem:[%s4853_s30 + $0x20] sm:$0xff] }
 0x1a4   :  { %1127 = vmatpush.msra.mxu2 %v176_v61  ;;  %v152_v20 = vld [vmem:[%s4852_s27 + $0x1a0] sm:$0xff]  ;;  %v296_v61 = vunpack.c.l.bf16 %v157_v58 }
 0x1a5   :  { %692 = vmatmul.f32.gmra.mxu1 %v261_v19  ;;  %3221 = vmatmul.msk.f32.gmra.mxu2 %vm795_vm0, %v646_v23  ;;  %v287_v48 = vunpack.c.h.bf16 %v152_v20 }
 0x1a6   :  { %483 = vmatmul.f32.gmra.mxu0 %v276_v55 }
 0x1aa   :  { %v648_v28 = vpop.f32.mrf.mxu1 }
 0x1ab   :  { %v649_v31 = vadd.f32 %v648_v28, %v415_v3  ;;  %v439_v60 = vpop.f32.mrf.mxu0  ;;  %v153_v28 = vld [vmem:[%s4852_s27 + $0x1a8] sm:$0xff] }
 0x1ad   :  { %695 = vmatmul.f32.gmra.mxu1 %v263_v27  ;;  %3222 = vmatmul.msk.f32.vlgmr.msrb.gmra.mxu3 %vm795_vm0, %v649_v31 }
 0x1ae   :  { %486 = vmatmul.f32.gmra.mxu0 %v278_v62 }
 0x1b2   :  { %v651_v36 = vpop.f32.mrf.mxu1 }
 0x1b3   :  { %v652_v38 = vadd.f32 %v651_v36, %v418_v10  ;;  %v442_v3 = vpop.f32.mrf.mxu0  ;;  %v282_v10 = vunpack.c.l.bf16 %v150_v7  ;;  %v154_v36 = vld [vmem:[%s4852_s27 + $0x1b0] sm:$0xff] }
 0x1b4   :  { %v291_v62 = vunpack.c.h.bf16 %v154_v36 }
 0x1b5   :  { %698 = vmatmul.f32.gmra.mxu1 %v265_v35  ;;  %3223 = vmatmul.msk.f32.gmra.mxu3 %vm795_vm0, %v652_v38 }
 0x1b6   :  { %489 = vmatmul.f32.gmra.mxu0 %v280_v4 }
 0x1ba   :  { %v654_v43 = vpop.f32.mrf.mxu1 }
 0x1bb   :  { %v655_v46 = vadd.f32 %v654_v43, %v421_v16  ;;  %v445_v9 = vpop.f32.mrf.mxu0  ;;  %v284_v16 = vunpack.c.l.bf16 %v151_v13  ;;  %v155_v43 = vld [vmem:[%s4852_s27 + $0x1b8] sm:$0xff] }
 0x1bc   :  { %v293_v4 = vunpack.c.h.bf16 %v155_v43 }
 0x1bd   :  { %701 = vmatmul.f32.gmra.mxu1 %v267_v42  ;;  %3224 = vmatmul.msk.f32.gmra.mxu3 %vm795_vm0, %v655_v46 }
 0x1be   :  { %492 = vmatmul.f32.gmra.mxu0 %v282_v10 }
 0x1c2   :  { %v657_v51 = vpop.f32.mrf.mxu1 }
 0x1c3   :  { %v658_v53 = vadd.f32 %v657_v51, %v424_v24  ;;  %v448_v15 = vpop.f32.mrf.mxu0  ;;  %v286_v24 = vunpack.c.l.bf16 %v152_v20  ;;  %v156_v51 = vld [vmem:[%s4852_s27 + $0x1c0] sm:$0xff] }
 0x1c4   :  { %v294_v55 = vunpack.c.l.bf16 %v156_v51  ;;  %v295_v10 = vunpack.c.h.bf16 %v156_v51 }
 0x1c5   :  { %704 = vmatmul.f32.gmra.mxu1 %v269_v49  ;;  %3225 = vmatmul.msk.f32.gmra.mxu3 %vm795_vm0, %v658_v53 }
 0x1c6   :  { %495 = vmatmul.f32.gmra.mxu0 %v284_v16  ;;  %v297_v16 = vunpack.c.h.bf16 %v157_v58 }
 0x1ca   :  { %v660_v57 = vpop.f32.mrf.mxu1 }
 0x1cb   :  { %v661_v59 = vadd.f32 %v660_v57, %v427_v32  ;;  %v451_v23 = vpop.f32.mrf.mxu0  ;;  %v288_v32 = vunpack.c.l.bf16 %v153_v28 }
 0x1cd   :  { %707 = vmatmul.f32.gmra.mxu1 %v271_v56  ;;  %3226 = vmatmul.msk.f32.gmra.mxu3 %vm795_vm0, %v661_v59  ;;  %v289_v56 = vunpack.c.h.bf16 %v153_v28  ;;  %v162_v28 = vld [vmem:[%s4852_s27 + $0x1f0] sm:$0xff] }
 0x1ce   :  { %498 = vmatmul.f32.gmra.mxu0 %v286_v24  ;;  %v4052_v24 = vpop.f32.mrf.mxu2 }
 0x1d2   :  { %v663_v0 = vpop.f32.mrf.mxu1 }
 0x1d3   :  { %v664_v2 = vadd.f32 %v663_v0, %v430_v39  ;;  %v454_v31 = vpop.f32.mrf.mxu0  ;;  %v290_v39 = vunpack.c.l.bf16 %v154_v36  ;;  %v158_v0 = vld [vmem:[%s4852_s27 + $0x1d0] sm:$0xff] }
 0x1d5   :  { %710 = vmatmul.f32.gmra.mxu1 %v273_v63  ;;  %3227 = vmatmul.msk.f32.gmra.mxu3 %vm795_vm0, %v664_v2 }
 0x1d6   :  { %501 = vmatmul.f32.gmra.mxu0 %v288_v32  ;;  %v306_v32 = vunpack.c.l.bf16 %v162_v28 }
 0x1da   :  { %v666_v6 = vpop.f32.mrf.mxu1 }
 0x1db   :  { %v667_v8 = vadd.f32 %v666_v6, %v433_v47  ;;  %v457_v38 = vpop.f32.mrf.mxu0  ;;  %v292_v47 = vunpack.c.l.bf16 %v155_v43  ;;  %v159_v6 = vld [vmem:[%s4852_s27 + $0x1d8] sm:$0xff] }
 0x1dd   :  { %713 = vmatmul.f32.gmra.mxu1 %v275_v5  ;;  %3228 = vmatmul.msk.f32.gmra.mxu3 %vm795_vm0, %v667_v8 }
 0x1de   :  { %504 = vmatmul.f32.gmra.mxu0 %v290_v39 }
 0x1e2   :  { %v669_v12 = vpop.f32.mrf.mxu1 }
 0x1e3   :  { %v670_v14 = vadd.f32 %v669_v12, %v436_v54  ;;  %v460_v46 = vpop.f32.mrf.mxu0  ;;  %v177_v54 = vld [vmem:[%s4853_s30 + $0x28] sm:$0xff]  ;;  %v160_v12 = vld [vmem:[%s4852_s27 + $0x1e0] sm:$0xff] }
 0x1e4   :  { %1200 = vmatpush.msra.mxu3 %v177_v54 }
 0x1e5   :  { %716 = vmatmul.f32.gmra.mxu1 %v277_v11  ;;  %3229 = vmatmul.msk.f32.gmra.mxu3 %vm795_vm0, %v670_v14 }
 0x1e6   :  { %507 = vmatmul.f32.gmra.mxu0 %v292_v47 }
 0x1ea   :  { %v672_v19 = vpop.f32.mrf.mxu1 }
 0x1eb   :  { %v673_v22 = vadd.f32 %v672_v19, %v439_v60  ;;  %v463_v53 = vpop.f32.mrf.mxu0  ;;  %v161_v19 = vld [vmem:[%s4852_s27 + $0x1e8] sm:$0xff] }
 0x1ed   :  { %719 = vmatmul.f32.gmra.mxu1 %v279_v18  ;;  %3230 = vmatmul.msk.f32.vlgmr.msra.gmra.mxu2 %vm795_vm0, %v673_v22 }
 0x1ee   :  { %510 = vmatmul.f32.gmra.mxu0 %v294_v55  ;;  %v307_v55 = vunpack.c.h.bf16 %v162_v28 }
 0x1f2   :  { %v675_v27 = vpop.f32.mrf.mxu1 }
 0x1f3   :  { %v676_v30 = vadd.f32 %v675_v27, %v442_v3  ;;  %v466_v60 = vpop.f32.mrf.mxu0  ;;  %v298_v3 = vunpack.c.l.bf16 %v158_v0 }
 0x1f5   :  { %722 = vmatmul.f32.gmra.mxu1 %v281_v26  ;;  %3231 = vmatmul.msk.f32.gmra.mxu2 %vm795_vm0, %v676_v30  ;;  %v299_v26 = vunpack.c.h.bf16 %v158_v0  ;;  %v3550_v0 = vld [vmem:[%s4852_s27 + $0x200] sm:$0xff] }
 0x1f6   :  { %513 = vmatmul.f32.gmra.mxu0 %v296_v61 }
 0x1fa   :  { %v678_v35 = vpop.f32.mrf.mxu1 }
 0x1fb   :  { %v679_v37 = vadd.f32 %v678_v35, %v445_v9  ;;  %v469_v2 = vpop.f32.mrf.mxu0  ;;  %v300_v9 = vunpack.c.l.bf16 %v159_v6  ;;  %v301_v35 = vunpack.c.h.bf16 %v159_v6 }
 0x1fd   :  { %725 = vmatmul.f32.gmra.mxu1 %v283_v33  ;;  %3232 = vmatmul.msk.f32.gmra.mxu2 %vm795_vm0, %v679_v37  ;;  %v4058_v33 = vpop.f32.mrf.mxu2  ;;  %v163_v37 = vld [vmem:[%s4852_s27 + $0x1f8] sm:$0xff] }
 0x1fe   :  { %516 = vmatmul.f32.gmra.mxu0 %v298_v3 }
 0x202   :  { %v681_v42 = vpop.f32.mrf.mxu1 }
 0x203   :  { %v682_v44 = vadd.f32 %v681_v42, %v448_v15  ;;  %v472_v8 = vpop.f32.mrf.mxu0  ;;  %v302_v15 = vunpack.c.l.bf16 %v160_v12  ;;  %v303_v42 = vunpack.c.h.bf16 %v160_v12  ;;  %v3552_v12 = vld [vmem:[%s4852_s27 + $0x210] sm:$0xff] }
 0x205   :  { %728 = vmatmul.f32.gmra.mxu1 %v285_v41  ;;  %3233 = vmatmul.msk.f32.gmra.mxu2 %vm795_vm0, %v682_v44  ;;  %v308_v41 = vunpack.c.l.bf16 %v163_v37  ;;  %v4064_v44 = vpop.f32.mrf.mxu2 }
 0x206   :  { %519 = vmatmul.f32.gmra.mxu0 %v300_v9 }
 0x20a   :  { %v684_v49 = vpop.f32.mrf.mxu1 }
 0x20b   :  { %v685_v52 = vadd.f32 %v684_v49, %v451_v23  ;;  %v475_v14 = vpop.f32.mrf.mxu0  ;;  %v304_v23 = vunpack.c.l.bf16 %v161_v19  ;;  %v305_v49 = vunpack.c.h.bf16 %v161_v19 }
 0x20d   :  { %731 = vmatmul.f32.gmra.mxu1 %v287_v48  ;;  %3234 = vmatmul.msk.f32.gmra.mxu2 %vm795_vm0, %v685_v52  ;;  %v178_v48 = vld [vmem:[%s4853_s30 + $0x30] sm:$0xff]  ;;  %v4070_v54 = vpop.f32.mrf.mxu2 }
 0x20e   :  { %522 = vmatmul.f32.gmra.mxu0 %v302_v15  ;;  %1273 = vmatpush.msrb.mxu2 %v178_v48  ;;  %v3556_v48 = vld [vmem:[%s4852_s27 + $0x230] sm:$0xff] }
 0x212   :  { %v687_v57 = vpop.f32.mrf.mxu1 }
 0x213   :  { %v688_v59 = vadd.f32 %v687_v57, %v454_v31  ;;  %v478_v22 = vpop.f32.mrf.mxu0 }
 0x215   :  { %734 = vmatmul.f32.gmra.mxu1 %v289_v56  ;;  %3235 = vmatmul.msk.f32.gmra.mxu2 %vm795_vm0, %v688_v59  ;;  %v4074_v59 = vpop.f32.mrf.mxu2 }
 0x216   :  { %525 = vmatmul.f32.gmra.mxu0 %v304_v23 }
 0x21a   :  { %v690_v63 = vpop.f32.mrf.mxu1 }
 0x21b   :  { %v691_v1 = vadd.f32 %v690_v63, %v457_v38  ;;  %v481_v31 = vpop.f32.mrf.mxu0 }
 0x21d   :  { %737 = vmatmul.f32.gmra.mxu1 %v291_v62  ;;  %3236 = vmatmul.msk.f32.gmra.mxu2 %vm795_vm0, %v691_v1  ;;  %v311_v1 = vunpack.c.h.bf16 %v3550_v0 }
 0x21e   :  { %528 = vmatmul.f32.gmra.mxu0 %v306_v32 }
 0x222   :  { %v693_v5 = vpop.f32.mrf.mxu1 }
 0x223   :  { %v694_v7 = vadd.f32 %v693_v5, %v460_v46  ;;  %v484_v39 = vpop.f32.mrf.mxu0  ;;  %v3551_v5 = vld [vmem:[%s4852_s27 + $0x208] sm:$0xff] }
 0x224   :  { %v313_v6 = vunpack.c.h.bf16 %v3551_v5 }
 0x225   :  { %740 = vmatmul.f32.gmra.mxu1 %v293_v4  ;;  %3237 = vmatmul.msk.f32.gmra.mxu2 %vm795_vm0, %v694_v7 }
 0x226   :  { %531 = vmatmul.f32.gmra.mxu0 %v308_v41  ;;  %v3555_v41 = vld [vmem:[%s4852_s27 + $0x228] sm:$0xff] }
 0x22a   :  { %v696_v11 = vpop.f32.mrf.mxu1 }
 0x22b   :  { %v697_v13 = vadd.f32 %v696_v11, %v463_v53  ;;  %v487_v47 = vpop.f32.mrf.mxu0 }
 0x22d   :  { %743 = vmatmul.f32.gmra.mxu1 %v295_v10  ;;  %3238 = vmatmul.msk.f32.vlgmr.msra.gmra.mxu3 %vm795_vm0, %v697_v13  ;;  %v4088_v10 = vpop.f32.mrf.mxu3  ;;  %v315_v13 = vunpack.c.h.bf16 %v3552_v12 }
 0x232   :  { %v699_v18 = vpop.f32.mrf.mxu1 }
 0x233   :  { %v700_v20 = vadd.f32 %v699_v18, %v466_v60  ;;  %v490_v53 = vpop.f32.mrf.mxu0  ;;  %v309_v60 = vunpack.c.h.bf16 %v163_v37  ;;  %v179_v37 = vld [vmem:[%s4853_s30 + $0x38] sm:$0xff] }
 0x234   :  { %1346 = vmatpush.msrb.mxu3 %v179_v37 }
 0x235   :  { %746 = vmatmul.f32.gmra.mxu1 %v297_v16  ;;  %3239 = vmatmul.msk.f32.gmra.mxu3 %vm795_vm0, %v700_v20  ;;  %v4096_v19 = vpop.f32.mrf.mxu3  ;;  %v3553_v20 = vld [vmem:[%s4852_s27 + $0x218] sm:$0xff] }
 0x23a   :  { %v702_v27 = vpop.f32.mrf.mxu1 }
 0x23b   :  { %v703_v30 = vadd.f32 %v702_v27, %v469_v2  ;;  %v493_v58 = vpop.f32.mrf.mxu0  ;;  %v4080_v2 = vpop.f32.mrf.mxu2 }
 0x23d   :  { %749 = vmatmul.f32.gmra.mxu1 %v299_v26  ;;  %3240 = vmatmul.msk.f32.gmra.mxu3 %vm795_vm0, %v703_v30  ;;  %v4105_v30 = vpop.f32.mrf.mxu3 }
 0x242   :  { %v705_v36 = vpop.f32.mrf.mxu1 }
 0x243   :  { %v706_v38 = vadd.f32 %v705_v36, %v472_v8  ;;  %v496_v63 = vpop.f32.mrf.mxu0  ;;  %v4086_v9 = vpop.f32.mrf.mxu2 }
 0x245   :  { %752 = vmatmul.f32.gmra.mxu1 %v301_v35  ;;  %3241 = vmatmul.msk.f32.gmra.mxu3 %vm795_vm0, %v706_v38 }
 0x24a   :  { %v708_v43 = vpop.f32.mrf.mxu1 }
 0x24b   :  { %v709_v46 = vadd.f32 %v708_v43, %v475_v14  ;;  %v499_v8 = vpop.f32.mrf.mxu0  ;;  %v4094_v18 = vpop.f32.mrf.mxu2 }
 0x24c   :  { %v4119_v43 = vpop.f32.mrf.mxu3 }
 0x24d   :  { %755 = vmatmul.f32.gmra.mxu1 %v303_v42  ;;  %3242 = vmatmul.msk.f32.gmra.mxu3 %vm795_vm0, %v709_v46  ;;  %v321_v42 = vunpack.c.h.bf16 %v3555_v41 }
 0x252   :  { %v711_v51 = vpop.f32.mrf.mxu1 }
 0x253   :  { %v712_v52 = vadd.f32 %v711_v51, %v478_v22  ;;  %v502_v16 = vpop.f32.mrf.mxu0  ;;  %v317_v22 = vunpack.c.h.bf16 %v3553_v20  ;;  %v4102_v27 = vpop.f32.mrf.mxu2 }
 0x255   :  { %758 = vmatmul.f32.gmra.mxu1 %v305_v49  ;;  %3243 = vmatmul.msk.f32.gmra.mxu3 %vm795_vm0, %v712_v52  ;;  %v323_v49 = vunpack.c.h.bf16 %v3556_v48 }
 0x25a   :  { %v714_v56 = vpop.f32.mrf.mxu1 }
 0x25b   :  { %v715_v57 = vadd.f32 %v714_v56, %v481_v31  ;;  %v505_v28 = vpop.f32.mrf.mxu0  ;;  %v3554_v31 = vld [vmem:[%s4852_s27 + $0x220] sm:$0xff]  ;;  %v4114_v38 = vpop.f32.mrf.mxu2 }
 0x25c   :  { %v319_v32 = vunpack.c.h.bf16 %v3554_v31 }
 0x25d   :  { %761 = vmatmul.f32.gmra.mxu1 %v307_v55  ;;  %3244 = vmatmul.msk.f32.gmra.mxu3 %vm795_vm0, %v715_v57  ;;  %v4127_v55 = vpop.f32.mrf.mxu3  ;;  %v3557_v57 = vld [vmem:[%s4852_s27 + $0x238] sm:$0xff] }
 0x262   :  { %v717_v61 = vpop.f32.mrf.mxu1 }
 0x263   :  { %v718_v62 = vadd.f32 %v717_v61, %v484_v39  ;;  %v508_v39 = vpop.f32.mrf.mxu0  ;;  %v4125_v51 = vpop.f32.mrf.mxu2 }
 0x265   :  { %764 = vmatmul.f32.gmra.mxu1 %v309_v60  ;;  %3245 = vmatmul.msk.f32.gmra.mxu3 %vm795_vm0, %v718_v62  ;;  %v4135_v0 = vpop.f32.mrf.mxu3 }
 0x26a   :  { %v720_v3 = vpop.f32.mrf.mxu1 }
 0x26b   :  { %v721_v4 = vadd.f32 %v720_v3, %v487_v47  ;;  %v4133_v61 = vpop.f32.mrf.mxu2 }
 0x26d   :  { %767 = vmatmul.f32.gmra.mxu1 %v311_v1  ;;  %3246 = vmatmul.msk.f32.vlgmr.msrb.gmra.mxu2 %vm795_vm0, %v721_v4 }
 0x272   :  { %v723_v7 = vpop.f32.mrf.mxu1 }
 0x273   :  { %v724_v11 = vadd.f32 %v723_v7, %v490_v53  ;;  %v511_v53 = vpop.f32.mrf.mxu0  ;;  %v4138_v4 = vpop.f32.mrf.mxu2 }
 0x275   :  { %770 = vmatmul.f32.gmra.mxu1 %v313_v6  ;;  %3247 = vmatmul.msk.f32.gmra.mxu2 %vm795_vm0, %v724_v11  ;;  %v4141_v6 = vpop.f32.mrf.mxu3 }
 0x27a   :  { %v726_v14 = vpop.f32.mrf.mxu1 }
 0x27b   :  { %v727_v15 = vadd.f32 %v726_v14, %v493_v58  ;;  %v325_v58 = vunpack.c.h.bf16 %v3557_v57  ;;  %v4144_v11 = vpop.f32.mrf.mxu2 }
 0x27d   :  { %773 = vmatmul.f32.gmra.mxu1 %v315_v13  ;;  %3248 = vmatmul.msk.f32.gmra.mxu2 %vm795_vm0, %v727_v15  ;;  %v4146_v13 = vpop.f32.mrf.mxu3 }
 0x282   :  { %v729_v23 = vpop.f32.mrf.mxu1 }
 0x283   :  { %v730_v26 = vadd.f32 %v729_v23, %v496_v63  ;;  %v514_v63 = vpop.f32.mrf.mxu0 }
 0x285   :  { %776 = vmatmul.f32.gmra.mxu1 %v317_v22  ;;  %3249 = vmatmul.msk.f32.gmra.mxu2 %vm795_vm0, %v730_v26  ;;  %v4151_v20 = vpop.f32.mrf.mxu3 }
 0x28a   :  { %v732_v35 = vpop.f32.mrf.mxu1 }
 0x28b   :  { %v733_v36 = vadd.f32 %v732_v35, %v499_v8  ;;  %v517_v5 = vpop.f32.mrf.mxu0  ;;  %v180_v35 = vld [vmem:[%s4853_s30 + $0x40] sm:$0xff] }
 0x28c   :  { %1419 = vmatpush.msra.mxu2 %v180_v35 }
 0x28d   :  { %779 = vmatmul.f32.gmra.mxu1 %v319_v32  ;;  %3250 = vmatmul.msk.f32.gmra.mxu2 %vm795_vm0, %v733_v36  ;;  %v4159_v36 = vpop.f32.mrf.mxu3 }
 0x292   :  { %v735_v46 = vpop.f32.mrf.mxu1 }
 0x293   :  { %v736_v47 = vadd.f32 %v735_v46, %v502_v16  ;;  %v520_v12 = vpop.f32.mrf.mxu0  ;;  %v4149_v16 = vpop.f32.mrf.mxu2 }
 0x295   :  { %782 = vmatmul.f32.gmra.mxu1 %v321_v42  ;;  %3251 = vmatmul.msk.f32.gmra.mxu2 %vm795_vm0, %v736_v47  ;;  %v4165_v46 = vpop.f32.mrf.mxu3 }
 0x29a   :  { %v738_v52 = vpop.f32.mrf.mxu1 }
 0x29b   :  { %v739_v56 = vadd.f32 %v738_v52, %v505_v28  ;;  %v523_v23 = vpop.f32.mrf.mxu0  ;;  %v4154_v31 = vpop.f32.mrf.mxu2 }
 0x29c   :  { %4854 = vst [vmem:[#allocation2_spill] sm:$0xff] %v4154_v31 }
 0x29d   :  { %785 = vmatmul.f32.gmra.mxu1 %v323_v49  ;;  %3252 = vmatmul.msk.f32.gmra.mxu2 %vm795_vm0, %v739_v56 }
 0x2a2   :  { %v741_v60 = vpop.f32.mrf.mxu1 }
 0x2a3   :  { %v742_v62 = vadd.f32 %v741_v60, %v508_v39  ;;  %v526_v37 = vpop.f32.mrf.mxu0  ;;  %v4162_v41 = vpop.f32.mrf.mxu2 }
 0x2a5   :  { %788 = vmatmul.f32.gmra.mxu1 %v325_v58  ;;  %3253 = vmatmul.msk.f32.gmra.mxu2 %vm795_vm0, %v742_v62 }
 0x2aa   :  { %v744_v1 = vpop.f32.mrf.mxu1 }
 0x2ab   :  { %v745_v3 = vadd.f32 %v744_v1, %v511_v53  ;;  %v529_v47 = vpop.f32.mrf.mxu0  ;;  %v4167_v52 = vpop.f32.mrf.mxu2 }
 0x2ac   :  { %v4170_v53 = vpop.f32.mrf.mxu3 }
 0x2ad   :  { %3254 = vmatmul.msk.f32.vlgmr.msrb.gmra.mxu3 %vm795_vm0, %v745_v3 }
 0x2b2   :  { %v747_v7 = vpop.f32.mrf.mxu1 }
 0x2b3   :  { %v748_v8 = vadd.f32 %v747_v7, %v514_v63  ;;  %v532_v56 = vpop.f32.mrf.mxu0  ;;  %v4173_v60 = vpop.f32.mrf.mxu2 }
 0x2b4   :  { %v4175_v62 = vpop.f32.mrf.mxu3 }
 0x2b5   :  { %3255 = vmatmul.msk.f32.gmra.mxu3 %vm795_vm0, %v748_v8 }
 0x2ba   :  { %v750_v14 = vpop.f32.mrf.mxu1 }
 0x2bb   :  { %v751_v15 = vadd.f32 %v750_v14, %v517_v5  ;;  %v4179_v3 = vpop.f32.mrf.mxu2 }
 0x2bc   :  { %v4182_v8 = vpop.f32.mrf.mxu3 }
 0x2bd   :  { %3256 = vmatmul.msk.f32.gmra.mxu3 %vm795_vm0, %v751_v15 }
 0x2c2   :  { %v753_v22 = vpop.f32.mrf.mxu1 }
 0x2c3   :  { %v754_v26 = vadd.f32 %v753_v22, %v520_v12  ;;  %v4185_v14 = vpop.f32.mrf.mxu2 }
 0x2c4   :  { %v4189_v22 = vpop.f32.mrf.mxu3 }
 0x2c5   :  { %3257 = vmatmul.msk.f32.gmra.mxu3 %vm795_vm0, %v754_v26 }
 0x2ca   :  { %v756_v28 = vpop.f32.mrf.mxu1 }
 0x2cb   :  { %v757_v32 = vadd.f32 %v756_v28, %v523_v23  ;;  %v4192_v26 = vpop.f32.mrf.mxu2 }
 0x2cd   :  { %3258 = vmatmul.msk.f32.gmra.mxu3 %vm795_vm0, %v757_v32 }
 0x2d2   :  { %v759_v39 = vpop.f32.mrf.mxu1 }
 0x2d3   :  { %v760_v42 = vadd.f32 %v759_v39, %v526_v37  ;;  %v4199_v35 = vpop.f32.mrf.mxu2 }
 0x2d5   :  { %3259 = vmatmul.msk.f32.gmra.mxu3 %vm795_vm0, %v760_v42 }
 0x2da   :  { %v762_v48 = vpop.f32.mrf.mxu1 }
 0x2db   :  { %v763_v49 = vadd.f32 %v762_v48, %v529_v47 }
 0x2dd   :  { %3260 = vmatmul.msk.f32.gmra.mxu3 %vm795_vm0, %v763_v49 }
 0x2e2   :  { %v765_v57 = vpop.f32.mrf.mxu1 }
 0x2e3   :  { %v766_v58 = vadd.f32 %v765_v57, %v532_v56 }
 0x2e5   :  { %3261 = vmatmul.msk.f32.gmra.mxu3 %vm795_vm0, %v766_v58 }
 0x2ea   :  { %v768_v63 = vpop.f32.mrf.mxu1 }
 0x2eb   :  { %v769_v1 = vadd.f32 %v768_v63, %v3826_v17 }
 0x2ed   :  { %3262 = vmatmul.msk.f32.vlgmr.msra.gmra.mxu2 %vm795_vm0, %v769_v1 }
 0x2f2   :  { %v771_v5 = vpop.f32.mrf.mxu1 }
 0x2f3   :  { %v772_v7 = vadd.f32 %v771_v5, %v3831_v21  ;;  %v4195_v21 = vpop.f32.mrf.mxu3 }
 0x2f4   :  { %4855 = vst [vmem:[#allocation3_spill] sm:$0xff] %v4195_v21 }
 0x2f5   :  { %3263 = vmatmul.msk.f32.gmra.mxu2 %vm795_vm0, %v772_v7 }
 0x2fa   :  { %v774_v12 = vpop.f32.mrf.mxu1 }
 0x2fb   :  { %v775_v15 = vadd.f32 %v774_v12, %v3836_v25  ;;  %v4201_v25 = vpop.f32.mrf.mxu3 }
 0x2fd   :  { %3264 = vmatmul.msk.f32.gmra.mxu2 %vm795_vm0, %v775_v15 }
 0x302   :  { %v777_v17 = vpop.f32.mrf.mxu1 }
 0x303   :  { %v778_v23 = vadd.f32 %v777_v17, %v3841_v29  ;;  %v4205_v29 = vpop.f32.mrf.mxu2  ;;  %v1205_v42 = vpop.f32.mrf.mxu3 }
 0x304   :  { %4856 = vst [vmem:[#allocation4_spill] sm:$0xff] %v4205_v29  ;;  %v3536_v29 = vld [vmem:[%s4865_s28] ss:$0 sm:$0xff] }
 0x305   :  { %3265 = vmatmul.msk.f32.gmra.mxu2 %vm795_vm0, %v778_v23 }
 0x30a   :  { %v780_v28 = vpop.f32.mrf.mxu1 }
 0x30b   :  { %v781_v32 = vadd.f32 %v780_v28, %v3846_v34  ;;  %v4209_v34 = vpop.f32.mrf.mxu2  ;;  %v1208_v57 = vpop.f32.mrf.mxu3 }
 0x30d   :  { %3266 = vmatmul.msk.f32.gmra.mxu2 %vm795_vm0, %v781_v32 }
 0x312   :  { %v783_v37 = vpop.f32.mrf.mxu1 }
 0x313   :  { %v784_v39 = vadd.f32 %v783_v37, %v3854_v40  ;;  %v1278_v58 = vpop.f32.mrf.mxu2  ;;  %v1211_v40 = vpop.f32.mrf.mxu3 }
 0x315   :  { %3267 = vmatmul.msk.f32.gmra.mxu2 %vm795_vm0, %v784_v39 }
 0x31a   :  { %v786_v47 = vpop.f32.mrf.mxu1 }
 0x31b   :  { %v787_v48 = vadd.f32 %v786_v47, %v3859_v45  ;;  %v1281_v63 = vpop.f32.mrf.mxu2  ;;  %v4213_v1 = vpop.f32.mrf.mxu3 }
 0x31d   :  { %3268 = vmatmul.msk.f32.gmra.mxu2 %vm795_vm0, %v787_v48 }
 0x322   :  { %v789_v49 = vpop.f32.mrf.mxu1 }
 0x323   :  { %v790_v56 = vadd.f32 %v789_v49, %v3864_v50  ;;  %v4215_v5 = vpop.f32.mrf.mxu2  ;;  %v4217_v7 = vpop.f32.mrf.mxu3 }
 0x325   :  { %3269 = vmatmul.msk.f32.gmra.mxu2 %vm795_vm0, %v790_v56 }
 0x32b   :  { %v4219_v45 = vpop.f32.mrf.mxu2  ;;  %v4221_v12 = vpop.f32.mrf.mxu3 }
 0x32c   :  { %4857 = vst [vmem:[#allocation5_spill] sm:$0xff] %v4219_v45  ;;  %v865_v45 = vadd.f32 %v3536_v29, %v4074_v59 }
 0x32d   :  { %4858 = vst [vmem:[#allocation6_spill] sm:$0xff] %v4221_v12  ;;  %v864_v12 = vadd.f32 %v3536_v29, %v4070_v54 }
 0x32e   :  { %v938_v54 = vadd.f32 %v4127_v55, %v865_v45 }
 0x333   :  { %v4223_v15 = vpop.f32.mrf.mxu2  ;;  %v4225_v17 = vpop.f32.mrf.mxu3 }
 0x334   :  { %4859 = vst [vmem:[#allocation7_spill] sm:$0xff] %v4223_v15 }
 0x335   :  { %4860 = vst [vmem:[#allocation8_spill] sm:$0xff] %v4225_v17  ;;  %v862_v17 = vadd.f32 %v3536_v29, %v4058_v33 }
 0x337   :  { %v935_v15 = vadd.f32 %v4096_v19, %v862_v17  ;;  %v866_v19 = vadd.f32 %v3536_v29, %v4080_v2 }
 0x33b   :  { %v4227_v50 = vpop.f32.mrf.mxu2  ;;  %v1348_v23 = vpop.f32.mrf.mxu3 }
 0x33c   :  { %4861 = vst [vmem:[#allocation9_spill] sm:$0xff] %v4227_v50  ;;  %v861_v50 = vadd.f32 %v3536_v29, %v4052_v24 }
 0x33e   :  { %v934_v31 = vadd.f32 %v4088_v10, %v861_v50 }
 0x340   :  { %v1007_v33 = vadd.f32 %v4102_v27, %v934_v31  ;;  %v867_v27 = vadd.f32 %v3536_v29, %v4086_v9  ;;  %v1011_v31 = vadd.f32 %v4138_v4, %v938_v54 }
 0x343   :  { %v4229_v28 = vpop.f32.mrf.mxu2  ;;  %v1351_v32 = vpop.f32.mrf.mxu3 }
 0x344   :  { %4862 = vst [vmem:[#allocation10_spill] sm:$0xff] %v4229_v28  ;;  %v863_v28 = vadd.f32 %v3536_v29, %v4064_v44 }
 0x34b   :  { %v1354_v39 = vpop.f32.mrf.mxu3 }
 0x353   :  { %v1357_v48 = vpop.f32.mrf.mxu3 }
 0x35b   :  { %v4233_v56 = vpop.f32.mrf.mxu3 }
 0x35c   :  { %4864 = vst [vmem:[#allocation12_spill] sm:$0xff] %v4233_v56  ;;  %v936_v56 = vadd.f32 %v4105_v30, %v863_v28 }
 0x35e   :  { %v1009_v24 = vadd.f32 %v4125_v51, %v936_v56  ;;  %v939_v51 = vadd.f32 %v4135_v0, %v866_v19  ;;  %v3558_v19 = vmov 64.0  }
 0x35f   :  { %3542 = vrcp.f32 %v3558_v19 }
 0x360   :  { %v1082_v59 = vadd.f32 %v4165_v46, %v1009_v24  ;;  %v1084_v46 = vadd.f32 %v4175_v62, %v1011_v31 }
 0x363   :  { %v1363_v17 = vpop.f32.mrf.mxu3 }
 0x370   :  { %v4231_v37 = vpop.f32.mrf.mxu2 }
 0x371   :  { %4863 = vst [vmem:[#allocation11_spill] sm:$0xff] %v4231_v37  ;;  %v1008_v37 = vadd.f32 %v4114_v38, %v935_v15  ;;  %v1080_v38 = vadd.f32 %v4151_v20, %v1007_v33  ;;  %v1012_v20 = vadd.f32 %v4144_v11, %v939_v51  ;;  %v868_v11 = vadd.f32 %v3536_v29, %v4094_v18  ;;  %v1366_v29 = vpop.f32.mrf.mxu3  ;;  %v4874_v33 = vld [vmem:[#allocation3_spill] sm:$0xff] }
 0x373   :  { %v1081_v44 = vadd.f32 %v4159_v36, %v1008_v37  ;;  %v1153_v55 = vadd.f32 %v4162_v41, %v1080_v38  ;;  %v1155_v36 = vadd.f32 %v4173_v60, %v1082_v59  ;;  %v1157_v41 = vadd.f32 %v4185_v14, %v1084_v46  ;;  %v4870_v37 = vld [vmem:[#allocation6_spill] sm:$0xff] }
 0x374   :  { %v941_v14 = vadd.f32 %v4146_v13, %v868_v11 }
 0x375   :  { %v1226_v9 = vadd.f32 %v4201_v25, %v1153_v55  ;;  %v1228_v0 = vadd.f32 %v1208_v57, %v1155_v36  ;;  %v1230_v25 = vadd.f32 %v4213_v1, %v1157_v41  ;;  %v4869_v1 = vld [vmem:[#allocation2_spill] sm:$0xff] }
 0x378   :  { %v1424_v47 = vpop.f32.mrf.mxu2  ;;  %v4868_v50 = vld [vmem:[#allocation11_spill] sm:$0xff] }
 0x380   :  { %v1427_v49 = vpop.f32.mrf.mxu2 }
 0x388   :  { %v4238_v21 = vpop.f32.mrf.mxu2 }
 0x389   :  { %4866 = vst [vmem:[#allocation13_spill] sm:$0xff] %v4238_v21  ;;  %v937_v21 = vadd.f32 %v4119_v43, %v864_v12  ;;  %v1154_v43 = vadd.f32 %v4167_v52, %v1081_v44  ;;  %v4875_v44 = vld [vmem:[#allocation9_spill] sm:$0xff] }
 0x38b   :  { %v1010_v30 = vadd.f32 %v4133_v61, %v937_v21  ;;  %v1227_v45 = vadd.f32 %v1205_v42, %v1154_v43  ;;  %v940_v61 = vadd.f32 %v4141_v6, %v867_v27  ;;  %v1299_v42 = vadd.f32 %v4209_v34, %v1226_v9  ;;  %v4876_v27 = vld [vmem:[#allocation4_spill] sm:$0xff] }
 0x38c   :  { %v1301_v6 = vadd.f32 %v1281_v63, %v1228_v0  ;;  %v4867_v63 = vld [vmem:[#allocation5_spill] sm:$0xff]  ;;  %v4878_v0 = vld [vmem:[#allocation10_spill] sm:$0xff] }
 0x38d   :  { %v1083_v2 = vadd.f32 %v4170_v53, %v1010_v30  ;;  %v1300_v21 = vadd.f32 %v1278_v58, %v1227_v45  ;;  %v1013_v4 = vadd.f32 %v4149_v16, %v940_v61  ;;  %v1085_v53 = vadd.f32 %v4182_v8, %v1012_v20  ;;  %v4877_v45 = vld [vmem:[#allocation8_spill] sm:$0xff] }
 0x38e   :  { %v1372_v58 = vadd.f32 %v1348_v23, %v1299_v42  ;;  %v1374_v8 = vadd.f32 %v1354_v39, %v1301_v6  ;;  %v1303_v18 = vadd.f32 %v4867_v63, %v1230_v25  ;;  %v4871_v23 = vld [vmem:[#allocation7_spill] sm:$0xff] }
 0x38f   :  { %v1156_v52 = vadd.f32 %v4179_v3, %v1083_v2  ;;  %v1373_v12 = vadd.f32 %v1351_v32, %v1300_v21  ;;  %v1086_v62 = vadd.f32 %v4189_v22, %v1013_v4  ;;  %v1158_v3 = vadd.f32 %v4192_v26, %v1085_v53 }
 0x390   :  { %v1433_v10 = vpop.f32.mrf.mxu2  ;;  %v1445_v26 = vadd.f32 %v4868_v50, %v1372_v58  ;;  %v1447_v28 = vadd.f32 %v1427_v49, %v1374_v8  ;;  %v1014_v32 = vadd.f32 %v4869_v1, %v941_v14  ;;  %v4873_v56 = vld [vmem:[#allocation13_spill] sm:$0xff] }
 0x391   :  { %v1229_v60 = vadd.f32 %v1211_v40, %v1156_v52  ;;  %v1446_v15 = vadd.f32 %v1424_v47, %v1373_v12  ;;  %v1159_v34 = vadd.f32 %v4199_v35, %v1086_v62  ;;  %v1231_v40 = vadd.f32 %v4217_v7, %v1158_v3  ;;  %v4872_v47 = vld [vmem:[#allocation12_spill] sm:$0xff]  ;;  %v1369_v52 = vpop.f32.mrf.mxu3 }
 0x392   :  { %v1376_v13 = vadd.f32 %v4872_v47, %v1303_v18  ;;  %v1087_v24 = vadd.f32 %v4874_v33, %v1014_v32  ;;  %v1454_v54 = vsel %vm1453_vm1, %v1445_v26, 0.0  ;;  %v1457_v30 = vsel %vm1453_vm1, %v1447_v28, 0.0 }
 0x393   :  { %v1302_v16 = vadd.f32 %v4215_v5, %v1229_v60  ;;  %v1232_v5 = vadd.f32 %v4870_v37, %v1159_v34  ;;  %v1304_v39 = vadd.f32 %v4871_v23, %v1231_v40  ;;  %v1455_v35 = vsel %vm1453_vm1, %v1446_v15, 0.0 }
 0x394   :  { %v1449_v38 = vadd.f32 %v1433_v10, %v1376_v13  ;;  %v1456_v59 = vadd.f32 %v1455_v35, %v1454_v54  ;;  %v1160_v51 = vadd.f32 %v4876_v27, %v1087_v24 }
 0x395   :  { %v1375_v22 = vadd.f32 %v1357_v48, %v1302_v16  ;;  %v1305_v48 = vadd.f32 %v4875_v44, %v1232_v5  ;;  %v1377_v49 = vadd.f32 %v1363_v17, %v1304_v39  ;;  %v3543_v17 = vpop.eup %3542 }
 0x396   :  { %v1458_v36 = vadd.f32 %v1457_v30, %v1456_v59  ;;  %v1233_v61 = vadd.f32 %v4877_v45, %v1160_v51  ;;  %v1461_v20 = vsel %vm1453_vm1, %v1449_v38, 0.0  ;;  %v1476_v60 = vmul.f32 64.0, %v3543_v17 }
 0x397   :  { %v1448_v7 = vadd.f32 %v4873_v56, %v1375_v22  ;;  %v1378_v31 = vadd.f32 %v1366_v29, %v1305_v48  ;;  %vm1480_vm2 = vweird.f32 %v3543_v17 }
 0x398   :  { %v1436_v57 = vpop.f32.mrf.mxu2  ;;  %v1306_v21 = vadd.f32 %v4878_v0, %v1233_v61  ;;  %v1477_v3 = vsub.f32 1.0, %v1476_v60 }
 0x399   :  { %v1459_v2 = vsel %vm1453_vm1, %v1448_v7, 0.0  ;;  %v1450_v55 = vadd.f32 %v1436_v57, %v1377_v49 }
 0x39a   :  { %v1460_v9 = vadd.f32 %v1459_v2, %v1458_v36  ;;  %v1379_v53 = vadd.f32 %v1369_v52, %v1306_v21  ;;  %v1478_v16 = vmul.f32 %v3543_v17, %v1477_v3 }
 0x39b   :  { %v1463_v10 = vsel %vm1453_vm1, %v1450_v55, 0.0 }
 0x39c   :  { %v1462_v4 = vadd.f32 %v1461_v20, %v1460_v9  ;;  %v1479_v14 = vadd.f32 %v3543_v17, %v1478_v16 }
 0x39e   :  { %v1464_v42 = vadd.f32 %v1463_v10, %v1462_v4  ;;  %v1481_v63 = vsel %vm1480_vm2, %v3543_v17, %v1479_v14 }
 0x3a0   :  { %v1439_v43 = vpop.f32.mrf.mxu2 }
 0x3a1   :  { %v1451_v46 = vadd.f32 %v1439_v43, %v1378_v31 }
 0x3a3   :  { %v1465_v41 = vsel %vm1453_vm1, %v1451_v46, 0.0 }
 0x3a4   :  { %v1466_v11 = vadd.f32 %v1465_v41, %v1464_v42 }
 0x3a8   :  { %v1442_v6 = vpop.f32.mrf.mxu2 }
 0x3a9   :  { %v1452_v12 = vadd.f32 %v1442_v6, %v1379_v53 }
 0x3ab   :  { %v1467_v62 = vsel %vm1453_vm1, %v1452_v12, 0.0 }
 0x3ac   :  { %v1468_v25 = vadd.f32 %v1467_v62, %v1466_v11 }
 0x3ae   :  { %v1469_v57 = vrot.slane %v1468_v25, 4 }
 0x3b0   :  { %v1470_v58 = vadd.f32 %v1469_v57, %v1468_v25 }
 0x3b2   :  { %v1471_v8 = vrot.slane %v1470_v58, 2 }
 0x3b4   :  { %v1472_v34 = vadd.f32 %v1471_v8, %v1470_v58 }
 0x3b6   :  { %v1473_v40 = vrot.slane %v1472_v34, 1 }
 0x3b8   :  { %v1474_v18 = vadd.f32 %v1473_v40, %v1472_v34 }
 0x3ba   :  { %v1482_v29 = vmul.f32 %v1481_v63, %v1474_v18 }
 0x3bc   :  { %v4302_v22 = vsub.f32 %v1445_v26, %v1482_v29  ;;  %v4304_v50 = vsub.f32 %v1446_v15, %v1482_v29  ;;  %v4306_v1 = vsub.f32 %v1447_v28, %v1482_v29  ;;  %v1486_v32 = vsub.f32 %v1448_v7, %v1482_v29 }
 0x3bd   :  { %v1487_v37 = vsub.f32 %v1449_v38, %v1482_v29  ;;  %v1488_v47 = vsub.f32 %v1450_v55, %v1482_v29  ;;  %v1489_v28 = vsub.f32 %v1451_v46, %v1482_v29  ;;  %v1490_v24 = vsub.f32 %v1452_v12, %v1482_v29 }
 0x3be   :  { %v1491_v5 = vmul.f32 %v4302_v22, %v4302_v22  ;;  %v1492_v23 = vmul.f32 %v4304_v50, %v4304_v50  ;;  %v1493_v39 = vmul.f32 %v4306_v1, %v4306_v1  ;;  %v1494_v13 = vmul.f32 %v1486_v32, %v1486_v32 }
 0x3bf   :  { %v1495_v56 = vmul.f32 %v1487_v37, %v1487_v37  ;;  %v1496_v44 = vmul.f32 %v1488_v47, %v1488_v47  ;;  %v1497_v49 = vmul.f32 %v1489_v28, %v1489_v28  ;;  %v1498_v38 = vmul.f32 %v1490_v24, %v1490_v24 }
 0x3c0   :  { %v1499_v26 = vsel %vm1453_vm1, %v1491_v5, 0.0  ;;  %v1500_v15 = vsel %vm1453_vm1, %v1492_v23, 0.0  ;;  %v1502_v7 = vsel %vm1453_vm1, %v1493_v39, 0.0  ;;  %v1504_v48 = vsel %vm1453_vm1, %v1494_v13, 0.0  ;;  %v3494_v13 = vld [vmem:[%s4879_s2 + $0x8] sm:$0xff]  }
 0x3c1   :  { %v1501_v35 = vadd.f32 %v1500_v15, %v1499_v26  ;;  %v1506_v54 = vsel %vm1453_vm1, %v1495_v56, 0.0  ;;  %v1508_v59 = vsel %vm1453_vm1, %v1496_v44, 0.0  ;;  %v1510_v27 = vsel %vm1453_vm1, %v1497_v49, 0.0  ;;  %v3497_v44 = vld [vmem:[%s4879_s2 + $0x20] sm:$0xff]   ;;  %v3498_v49 = vld [vmem:[%s4879_s2 + $0x28] sm:$0xff]  }
 0x3c2   :  { %v1512_v31 = vsel %vm1453_vm1, %v1498_v38, 0.0  ;;  %v3392_v26 = vunpack.c.l.bf16 %v3494_v13  ;;  %v3393_v15 = vunpack.c.h.bf16 %v3494_v13  ;;  %v3499_v38 = vld [vmem:[%s4879_s2 + $0x30] sm:$0xff]  }
 0x3c3   :  { %v1503_v33 = vadd.f32 %v1502_v7, %v1501_v35  ;;  %v3495_v35 = vld [vmem:[%s4879_s2 + $0x10] sm:$0xff]   ;;  %v3496_v7 = vld [vmem:[%s4879_s2 + $0x18] sm:$0xff]  }
 0x3c4   :  { %v3397_v56 = vunpack.c.h.bf16 %v3495_v35 }
 0x3c5   :  { %v1505_v19 = vadd.f32 %v1504_v48, %v1503_v33  ;;  %v3400_v33 = vunpack.c.l.bf16 %v3496_v7  ;;  %v3404_v48 = vunpack.c.l.bf16 %v3497_v44 }
 0x3c7   :  { %v1507_v30 = vadd.f32 %v1506_v54, %v1505_v19  ;;  %v3405_v19 = vunpack.c.h.bf16 %v3497_v44  ;;  %v3408_v54 = vunpack.c.l.bf16 %v3498_v49  ;;  %v2073_v44 = vld [vmem:[%s4825_s11] sm:$0xff] }
 0x3c9   :  { %v1509_v43 = vadd.f32 %v1508_v59, %v1507_v30  ;;  %v3409_v30 = vunpack.c.h.bf16 %v3498_v49  ;;  %v3412_v59 = vunpack.c.l.bf16 %v3499_v38 }
 0x3cb   :  { %v1511_v51 = vadd.f32 %v1510_v27, %v1509_v43  ;;  %v1583_v43 = vld [vmem:[%s4880_s7 + $0x8] sm:$0xff]  ;;  %v1582_v27 = vld [vmem:[%s4880_s7] sm:$0xff] }
 0x3cc   :  { %1768 = vmatpush.msrb.mxu2 %v1583_v43 }
 0x3cd   :  { %v1513_v2 = vadd.f32 %v1512_v31, %v1511_v51  ;;  %v3413_v51 = vunpack.c.h.bf16 %v3499_v38  ;;  %v3500_v31 = vld [vmem:[%s4879_s2 + $0x38] sm:$0xff]  }
 0x3ce   :  { %1769 = vmatpush.msrb.mxu2 %v1582_v27 }
 0x3cf   :  { %v1514_v55 = vrot.slane %v1513_v2, 4 }
 0x3d1   :  { %v1515_v36 = vadd.f32 %v1514_v55, %v1513_v2  ;;  %v3416_v2 = vunpack.c.l.bf16 %v3500_v31  ;;  %v1585_v55 = vld [vmem:[%s4880_s7 + $0x18] sm:$0xff] }
 0x3d2   :  { %1799 = vmatpush.msra.mxu2 %v1585_v55 }
 0x3d3   :  { %v1516_v45 = vrot.slane %v1515_v36, 2 }
 0x3d5   :  { %v1517_v61 = vadd.f32 %v1516_v45, %v1515_v36  ;;  %v1584_v36 = vld [vmem:[%s4880_s7 + $0x10] sm:$0xff]  ;;  %v3417_v45 = vunpack.c.h.bf16 %v3500_v31 }
 0x3d6   :  { %1800 = vmatpush.msra.mxu2 %v1584_v36 }
 0x3d7   :  { %v1518_v20 = vrot.slane %v1517_v61, 1 }
 0x3d9   :  { %v1519_v46 = vadd.f32 %v1518_v20, %v1517_v61  ;;  %v3501_v61 = vld [vmem:[%s4879_s2 + $0x40] sm:$0xff]  }
 0x3da   :  { %v3420_v20 = vunpack.c.l.bf16 %v3501_v61 }
 0x3db   :  { %v1520_v17 = vmul.f32 %v1519_v46, %v1481_v63  ;;  %v1587_v46 = vld [vmem:[%s4880_s7 + $0x28] sm:$0xff] }
 0x3dd   :  { %v1521_v52 = vadd.f32 1e-05, %v1520_v17 }
 0x3df   :  { %3544 = vrsqrt.f32 %v1521_v52  ;;  %vm1528_vm4 = vweird.f32 %v1521_v52 }
 0x3e5   :  { %v3545_v9 = vpop.eup %3544 }
 0x3e6   :  { %v1523_v0 = vmul.f32 %v3545_v9, %v1521_v52  ;;  %vm1529_vm3 = vweird.f32 %v3545_v9  ;;  %v3421_v52 = vunpack.c.h.bf16 %v3501_v61 }
 0x3e7   :  { %vm1530_vm5 = vmor %vm1528_vm4, %vm1529_vm3 }
 0x3e8   :  { %v1524_v21 = vmul.f32 %v3545_v9, %v1523_v0 }
 0x3ea   :  { %v1525_v10 = vmul.f32 0.5, %v1524_v21  ;;  %v1589_v21 = vld [vmem:[%s4880_s7 + $0x38] sm:$0xff] }
 0x3ec   :  { %v1526_v4 = vsub.f32 1.5, %v1525_v10 }
 0x3ee   :  { %v1527_v53 = vmul.f32 %v3545_v9, %v1526_v4  ;;  %v1588_v4 = vld [vmem:[%s4880_s7 + $0x30] sm:$0xff] }
 0x3f0   :  { %v1531_v41 = vsel %vm1530_vm5, %v3545_v9, %v1527_v53  ;;  %v1586_v9 = vld [vmem:[%s4880_s7 + $0x20] sm:$0xff] }
 0x3f1   :  { %v1539_v60 = vmul.f32 %v1531_v41, %v1490_v24  ;;  %v1538_v42 = vmul.f32 %v1531_v41, %v1489_v28  ;;  %v1537_v6 = vmul.f32 %v1531_v41, %v1488_v47  ;;  %v1536_v62 = vmul.f32 %v1531_v41, %v1487_v37 }
 0x3f2   :  { %v1535_v57 = vmul.f32 %v1531_v41, %v1486_v32  ;;  %v1534_v8 = vmul.f32 %v1531_v41, %v4306_v1  ;;  %v1533_v40 = vmul.f32 %v1531_v41, %v4304_v50  ;;  %v1532_v29 = vmul.f32 %v1531_v41, %v4302_v22  ;;  %v3387_v1 = vld [vmem:[%s4879_s2] sm:$0xff]   ;;  %v1591_v41 = vld [vmem:[%s4880_s7 + $0x48] sm:$0xff] }
 0x3f3   :  { %vm1547_vm6 = vcmp.gt.f32.partialorder %v1539_v60, 0.0  ;;  %v1555_v12 = vmul.f32 0.2, %v1539_v60  ;;  %v1554_v11 = vmul.f32 0.2, %v1538_v42  ;;  %vm1546_vm7 = vcmp.gt.f32.partialorder %v1538_v42, 0.0 }
 0x3f4   :  { %v1553_v25 = vmul.f32 0.2, %v1537_v6  ;;  %vm1545_vm8 = vcmp.gt.f32.partialorder %v1537_v6, 0.0  ;;  %v1552_v58 = vmul.f32 0.2, %v1536_v62  ;;  %vm1544_vm9 = vcmp.gt.f32.partialorder %v1536_v62, 0.0 }
 0x3f5   :  { %v1563_v3 = vsel %vm1547_vm6, %v1539_v60, %v1555_v12  ;;  %v1562_v16 = vsel %vm1546_vm7, %v1538_v42, %v1554_v11  ;;  %v1551_v34 = vmul.f32 0.2, %v1535_v57  ;;  %vm1543_vm10 = vcmp.gt.f32.partialorder %v1535_v57, 0.0  ;;  %v1590_v42 = vld [vmem:[%s4880_s7 + $0x40] sm:$0xff]  ;;  %v1593_v12 = vld [vmem:[%s4880_s7 + $0x58] sm:$0xff] }
 0x3f6   :  { %1682 = vmatpush.msra.mxu3 %v1563_v3  ;;  %v1561_v14 = vsel %vm1545_vm8, %v1537_v6, %v1553_v25  ;;  %v1560_v63 = vsel %vm1544_vm9, %v1536_v62, %v1552_v58  ;;  %v1550_v18 = vmul.f32 0.2, %v1534_v8  ;;  %vm1542_vm11 = vcmp.gt.f32.partialorder %v1534_v8, 0.0  ;;  %v1592_v62 = vld [vmem:[%s4880_s7 + $0x50] sm:$0xff]  ;;  %v1595_v25 = vld [vmem:[%s4880_s7 + $0x68] sm:$0xff] }
 0x3f7   :  { %v1559_v32 = vsel %vm1543_vm10, %v1535_v57, %v1551_v34  ;;  %v1549_v37 = vmul.f32 0.2, %v1533_v40  ;;  %vm1541_vm12 = vcmp.gt.f32.partialorder %v1533_v40, 0.0  ;;  %v1548_v23 = vmul.f32 0.2, %v1532_v29  ;;  %v1596_v34 = vld [vmem:[%s4880_s7 + $0x70] sm:$0xff] }
 0x3f8   :  { %1683 = vmatpush.msra.mxu3 %v1562_v16  ;;  %v1558_v5 = vsel %vm1542_vm11, %v1534_v8, %v1550_v18  ;;  %vm1540_vm13 = vcmp.gt.f32.partialorder %v1532_v29, 0.0  ;;  %v3388_v39 = vunpack.c.l.bf16 %v3387_v1  ;;  %v3389_v22 = vunpack.c.h.bf16 %v3387_v1  ;;  %v1594_v16 = vld [vmem:[%s4880_s7 + $0x60] sm:$0xff]  ;;  %v1597_v8 = vld [vmem:[%s4880_s7 + $0x78] sm:$0xff] }
 0x3f9   :  { %v1557_v50 = vsel %vm1541_vm12, %v1533_v40, %v1549_v37  ;;  %v1556_v47 = vsel %vm1540_vm13, %v1532_v29, %v1548_v23  ;;  %v3396_v28 = vunpack.c.l.bf16 %v3495_v35  ;;  %v3401_v24 = vunpack.c.h.bf16 %v3496_v7  ;;  %v1598_v29 = vld [vmem:[%s4880_s7 + $0x80] sm:$0xff]  ;;  %v2075_v7 = vld [vmem:[%s4825_s11 + $0x10] sm:$0xff] }
 0x3fa   :  { %1684 = vmatpush.msra.mxu3 %v1561_v14 }
 0x3fc   :  { %1685 = vmatpush.msra.mxu3 %v1560_v63  ;;  %v1599_v63 = vld [vmem:[%s4880_s7 + $0x88] sm:$0xff] }
 0x3fe   :  { %1686 = vmatpush.msra.mxu3 %v1559_v32 }
 0x400   :  { %1687 = vmatpush.msra.mxu3 %v1558_v5 }
 0x402   :  { %1688 = vmatpush.msra.mxu3 %v1557_v50 }
 0x404   :  { %1689 = vmatpush.msra.mxu3 %v1556_v47 }
 0x405   :  { %3270 = vmatmul.msk.f32.vlgmr.msra.gmra.mxu3 %vm1619_vm14, %v3388_v39 }
 0x406   :  { %1954 = vmatpush.msrb.mxu3 %v1595_v25 }
 0x408   :  { %1955 = vmatpush.msrb.mxu3 %v1594_v16 }
 0x40a   :  { %2016 = vmatpush.msra.mxu3 %v1599_v63 }
 0x40c   :  { %2017 = vmatpush.msra.mxu3 %v1598_v29 }
 0x40d   :  { %3271 = vmatmul.msk.f32.gmra.mxu3 %vm1619_vm14, %v3389_v22 }
 0x415   :  { %3272 = vmatmul.msk.f32.gmra.mxu3 %vm1619_vm14, %v3392_v26 }
 0x41d   :  { %3273 = vmatmul.msk.f32.gmra.mxu3 %vm1619_vm14, %v3393_v15 }
 0x425   :  { %3274 = vmatmul.msk.f32.gmra.mxu3 %vm1619_vm14, %v3396_v28 }
 0x42d   :  { %3275 = vmatmul.msk.f32.gmra.mxu3 %vm1619_vm14, %v3397_v56  ;;  %v2076_v56 = vld [vmem:[%s4825_s11 + $0x18] sm:$0xff] }
 0x435   :  { %3276 = vmatmul.msk.f32.gmra.mxu3 %vm1619_vm14, %v3400_v33 }
 0x43d   :  { %3277 = vmatmul.msk.f32.gmra.mxu3 %vm1619_vm14, %v3401_v24  ;;  %v2074_v24 = vld [vmem:[%s4825_s11 + $0x8] sm:$0xff] }
 0x445   :  { %3278 = vmatmul.msk.f32.gmra.mxu3 %vm1619_vm14, %v3404_v48  ;;  %v2048_v48 = vld [vmem:[%s4826_s9 + $0x18] sm:$0xff] }
 0x44d   :  { %3279 = vmatmul.msk.f32.gmra.mxu3 %vm1619_vm14, %v3405_v19  ;;  %v2047_v19 = vld [vmem:[%s4826_s9 + $0x10] sm:$0xff] }
 0x455   :  { %3280 = vmatmul.msk.f32.gmra.mxu3 %vm1619_vm14, %v3408_v54  ;;  %v2046_v54 = vld [vmem:[%s4826_s9 + $0x8] sm:$0xff] }
 0x45d   :  { %3281 = vmatmul.msk.f32.gmra.mxu3 %vm1619_vm14, %v3409_v30  ;;  %v3537_v30 = vld [vmem:[%s4824_s8] ss:$0 sm:$0xff] }
 0x465   :  { %3282 = vmatmul.msk.f32.gmra.mxu3 %vm1619_vm14, %v3412_v59  ;;  %v2045_v59 = vld [vmem:[%s4826_s9] sm:$0xff] }
 0x46d   :  { %3283 = vmatmul.msk.f32.gmra.mxu3 %vm1619_vm14, %v3413_v51 }
 0x475   :  { %3284 = vmatmul.msk.f32.gmra.mxu3 %vm1619_vm14, %v3416_v2 }
 0x47d   :  { %3285 = vmatmul.msk.f32.gmra.mxu3 %vm1619_vm14, %v3417_v45 }
 0x485   :  { %3286 = vmatmul.msk.f32.gmra.mxu3 %vm1619_vm14, %v3420_v20 }
 0x488   :  { %v1691_v17 = vpop.f32.mrf.mxu3 }
 0x489   :  { %3288 = vmatmul.msk.f32.vlgmr.msrb.gmra.mxu2 %vm1453_vm1, %v1691_v17 }
 0x48a   :  { %1830 = vmatpush.msrb.mxu2 %v1587_v46 }
 0x48c   :  { %1831 = vmatpush.msrb.mxu2 %v1586_v9  ;;  %v3559_v9 = vmov 16.0  }
 0x48d   :  { %3287 = vmatmul.msk.f32.gmra.mxu3 %vm1619_vm14, %v3421_v52  ;;  %3546 = vrcp.f32 %v3559_v9 }
 0x490   :  { %v1694_v0 = vpop.f32.mrf.mxu3 }
 0x491   :  { %3289 = vmatmul.msk.f32.gmra.mxu2 %vm1453_vm1, %v1694_v0 }
 0x498   :  { %v1697_v10 = vpop.f32.mrf.mxu3 }
 0x499   :  { %3290 = vmatmul.msk.f32.vlgmr.msra.gmra.mxu2 %vm1453_vm1, %v1697_v10 }
 0x49a   :  { %1861 = vmatpush.msra.mxu2 %v1589_v21 }
 0x49c   :  { %1862 = vmatpush.msra.mxu2 %v1588_v4 }
 0x4a0   :  { %v1700_v53 = vpop.f32.mrf.mxu3 }
 0x4a1   :  { %3291 = vmatmul.msk.f32.gmra.mxu2 %vm1453_vm1, %v1700_v53 }
 0x4a8   :  { %v1703_v60 = vpop.f32.mrf.mxu3 }
 0x4a9   :  { %3292 = vmatmul.msk.f32.vlgmr.msrb.gmra.mxu2 %vm1453_vm1, %v1703_v60  ;;  %v3547_v60 = vpop.eup %3546 }
 0x4aa   :  { %1892 = vmatpush.msrb.mxu2 %v1591_v41  ;;  %vm2042_vm0 = vweird.f32 %v3547_v60 }
 0x4ac   :  { %1893 = vmatpush.msrb.mxu2 %v1590_v42 }
 0x4b0   :  { %v1706_v6 = vpop.f32.mrf.mxu3 }
 0x4b1   :  { %3293 = vmatmul.msk.f32.gmra.mxu2 %vm1453_vm1, %v1706_v6 }
 0x4b8   :  { %v1709_v11 = vpop.f32.mrf.mxu3 }
 0x4b9   :  { %3294 = vmatmul.msk.f32.vlgmr.msra.gmra.mxu2 %vm1453_vm1, %v1709_v11  ;;  %v2038_v11 = vmul.f32 16.0, %v3547_v60 }
 0x4ba   :  { %1923 = vmatpush.msra.mxu2 %v1593_v12 }
 0x4bb   :  { %v2039_v16 = vsub.f32 1.0, %v2038_v11 }
 0x4bc   :  { %1924 = vmatpush.msra.mxu2 %v1592_v62 }
 0x4c0   :  { %v1712_v3 = vpop.f32.mrf.mxu3 }
 0x4c1   :  { %3295 = vmatmul.msk.f32.gmra.mxu2 %vm1453_vm1, %v1712_v3 }
 0x4c8   :  { %v1715_v57 = vpop.f32.mrf.mxu3 }
 0x4c9   :  { %3296 = vmatmul.msk.f32.vlgmr.msrb.gmra.mxu2 %vm1453_vm1, %v1715_v57 }
 0x4ca   :  { %1985 = vmatpush.msrb.mxu2 %v1597_v8 }
 0x4cc   :  { %1986 = vmatpush.msrb.mxu2 %v1596_v34 }
 0x4d0   :  { %v1718_v58 = vpop.f32.mrf.mxu3 }
 0x4d1   :  { %3297 = vmatmul.msk.f32.gmra.mxu2 %vm1453_vm1, %v1718_v58 }
 0x4d8   :  { %v1721_v14 = vpop.f32.mrf.mxu3 }
 0x4d9   :  { %3298 = vmatmul.msk.f32.vlgmr.msra.gmra.mxu2 %vm1453_vm1, %v1721_v14  ;;  %v2040_v14 = vmul.f32 %v3547_v60, %v2039_v16  ;;  %v2144_v16 = vld [vmem:[%s4829_s13 + $0x80] sm:$0xff] }
 0x4da   :  { %2065 = vmatpush.msra.mxu2 %v2048_v48 }
 0x4db   :  { %v2041_v63 = vadd.f32 %v3547_v60, %v2040_v14 }
 0x4dc   :  { %2066 = vmatpush.msra.mxu2 %v2047_v19 }
 0x4de   :  { %2067 = vmatpush.msra.mxu2 %v2046_v54 }
 0x4e0   :  { %v1724_v40 = vpop.f32.mrf.mxu3  ;;  %2068 = vmatpush.msra.mxu2 %v2045_v59  ;;  %v2129_v59 = vld [vmem:[%s4829_s13 + $0x8] sm:$0xff] }
 0x4e1   :  { %3299 = vmatmul.msk.f32.gmra.mxu2 %vm1453_vm1, %v1724_v40 }
 0x4e8   :  { %v1727_v18 = vpop.f32.mrf.mxu3 }
 0x4e9   :  { %3300 = vmatmul.msk.f32.vlgmr.msrb.gmra.mxu3 %vm1453_vm1, %v1727_v18 }
 0x4ea   :  { %2099 = vmatpush.msrb.mxu3 %v2076_v56 }
 0x4ec   :  { %2100 = vmatpush.msrb.mxu3 %v2075_v7  ;;  %v3505_v7 = vld [vmem:[%s4828_s3 + $0x20] sm:$0xff]  }
 0x4ee   :  { %2101 = vmatpush.msrb.mxu3 %v2074_v24  ;;  %v3441_v24 = vunpack.c.h.bf16 %v3505_v7 }
 0x4f0   :  { %v1730_v32 = vpop.f32.mrf.mxu3  ;;  %2102 = vmatpush.msrb.mxu3 %v2073_v44  ;;  %v3506_v44 = vld [vmem:[%s4828_s3 + $0x28] sm:$0xff]  }
 0x4f1   :  { %3301 = vmatmul.msk.f32.gmra.mxu3 %vm1453_vm1, %v1730_v32  ;;  %v4473_v32 = vsel %vm2042_vm0, %v3547_v60, %v2041_v63  ;;  %v3444_v48 = vunpack.c.l.bf16 %v3506_v44  ;;  %v3445_v19 = vunpack.c.h.bf16 %v3506_v44  ;;  %v2148_v63 = vld [vmem:[%s4829_s13 + $0xa0] sm:$0xff]  ;;  %v2591_v44 = vld [vmem:[%s4831_s16 + $0x8] sm:$0xff] }
 0x4f8   :  { %v1733_v37 = vpop.f32.mrf.mxu3 }
 0x4f9   :  { %3302 = vmatmul.msk.f32.vlgmr.msrb.gmra.mxu2 %vm1453_vm1, %v1733_v37 }
 0x500   :  { %v1736_v1 = vpop.f32.mrf.mxu3 }
 0x501   :  { %3303 = vmatmul.msk.f32.gmra.mxu2 %vm1453_vm1, %v1736_v1 }
 0x508   :  { %v1739_v5 = vpop.f32.mrf.mxu3 }
 0x509   :  { %3304 = vmatmul.msk.f32.vlgmr.msra.gmra.mxu3 %vm1453_vm1, %v1739_v5  ;;  %v3423_v5 = vld [vmem:[%s4828_s3] sm:$0xff]  }
 0x50c   :  { %v1771_v23 = vpop.f32.mrf.mxu2 }
 0x50d   :  { %v1777_v43 = vadd.f32 %v3537_v30, %v1771_v23  ;;  %v3424_v23 = vunpack.c.l.bf16 %v3423_v5 }
 0x510   :  { %v1742_v50 = vpop.f32.mrf.mxu3 }
 0x511   :  { %3305 = vmatmul.msk.f32.gmra.mxu3 %vm1453_vm1, %v1742_v50  ;;  %v3425_v50 = vunpack.c.h.bf16 %v3423_v5  ;;  %v2153_v5 = vld [vmem:[%s4829_s13 + $0xc8] sm:$0xff] }
 0x514   :  { %v1774_v39 = vpop.f32.mrf.mxu2 }
 0x515   :  { %v1778_v36 = vadd.f32 %v3537_v30, %v1774_v39  ;;  %v3502_v39 = vld [vmem:[%s4828_s3 + $0x8] sm:$0xff]   ;;  %v2131_v30 = vld [vmem:[%s4829_s13 + $0x18] sm:$0xff] }
 0x516   :  { %2329 = vmatpush.msra.mxu3 %v2131_v30 }
 0x51c   :  { %v1802_v47 = vpop.f32.mrf.mxu2 }
 0x51d   :  { %v1808_v51 = vadd.f32 %v1802_v47, %v1777_v43  ;;  %v3428_v47 = vunpack.c.l.bf16 %v3502_v39  ;;  %v2128_v43 = vld [vmem:[%s4829_s13] sm:$0xff] }
 0x524   :  { %v1805_v22 = vpop.f32.mrf.mxu2 }
 0x525   :  { %v1809_v20 = vadd.f32 %v1805_v22, %v1778_v36  ;;  %v3429_v22 = vunpack.c.h.bf16 %v3502_v39  ;;  %v2133_v36 = vld [vmem:[%s4829_s13 + $0x28] sm:$0xff]  ;;  %v2159_v39 = vld [vmem:[%s4829_s13 + $0xf8] sm:$0xff] }
 0x52c   :  { %v1833_v13 = vpop.f32.mrf.mxu2 }
 0x52d   :  { %v1839_v31 = vadd.f32 %v1833_v13, %v1808_v51  ;;  %v3503_v13 = vld [vmem:[%s4828_s3 + $0x10] sm:$0xff]   ;;  %v3508_v51 = vld [vmem:[%s4828_s3 + $0x38] sm:$0xff]  }
 0x534   :  { %v1836_v26 = vpop.f32.mrf.mxu2 }
 0x535   :  { %v1840_v17 = vadd.f32 %v1836_v26, %v1809_v20  ;;  %v3432_v26 = vunpack.c.l.bf16 %v3503_v13  ;;  %v3509_v20 = vld [vmem:[%s4828_s3 + $0x40] sm:$0xff]  }
 0x53c   :  { %v1864_v15 = vpop.f32.mrf.mxu2 }
 0x53d   :  { %v1870_v2 = vadd.f32 %v1864_v15, %v1839_v31  ;;  %v3433_v15 = vunpack.c.h.bf16 %v3503_v13  ;;  %v3452_v31 = vunpack.c.l.bf16 %v3508_v51  ;;  %v2157_v13 = vld [vmem:[%s4829_s13 + $0xe8] sm:$0xff] }
 0x544   :  { %v1867_v35 = vpop.f32.mrf.mxu2 }
 0x545   :  { %v1871_v0 = vadd.f32 %v1867_v35, %v1840_v17  ;;  %v3504_v35 = vld [vmem:[%s4828_s3 + $0x18] sm:$0xff]   ;;  %v3456_v17 = vunpack.c.l.bf16 %v3509_v20 }
 0x546   :  { %v3437_v56 = vunpack.c.h.bf16 %v3504_v35 }
 0x54c   :  { %v1895_v28 = vpop.f32.mrf.mxu2 }
 0x54d   :  { %v1901_v45 = vadd.f32 %v1895_v28, %v1870_v2  ;;  %v3436_v28 = vunpack.c.l.bf16 %v3504_v35  ;;  %v2135_v2 = vld [vmem:[%s4829_s13 + $0x38] sm:$0xff] }
 0x54e   :  { %v2163_v35 = vld [vmem:[%s4829_s13 + $0x118] sm:$0xff] }
 0x554   :  { %v1898_v33 = vpop.f32.mrf.mxu2 }
 0x555   :  { %v1902_v4 = vadd.f32 %v1898_v33, %v1871_v0  ;;  %v3440_v33 = vunpack.c.l.bf16 %v3505_v7  ;;  %v3457_v0 = vunpack.c.h.bf16 %v3509_v20  ;;  %v2161_v7 = vld [vmem:[%s4829_s13 + $0x108] sm:$0xff] }
 0x55c   :  { %v1926_v49 = vpop.f32.mrf.mxu2 }
 0x55d   :  { %v1932_v46 = vadd.f32 %v1926_v49, %v1901_v45  ;;  %v3507_v49 = vld [vmem:[%s4828_s3 + $0x30] sm:$0xff]   ;;  %v2132_v45 = vld [vmem:[%s4829_s13 + $0x20] sm:$0xff] }
 0x55e   :  { %v3448_v54 = vunpack.c.l.bf16 %v3507_v49 }
 0x564   :  { %v1929_v27 = vpop.f32.mrf.mxu2 }
 0x565   :  { %v1933_v41 = vadd.f32 %v1929_v27, %v1902_v4  ;;  %v3449_v27 = vunpack.c.h.bf16 %v3507_v49  ;;  %v2136_v4 = vld [vmem:[%s4829_s13 + $0x40] sm:$0xff] }
 0x56c   :  { %v1957_v38 = vpop.f32.mrf.mxu3 }
 0x56d   :  { %v1963_v52 = vadd.f32 %v1957_v38, %v1932_v46  ;;  %v2130_v38 = vld [vmem:[%s4829_s13 + $0x10] sm:$0xff] }
 0x56e   :  { %2330 = vmatpush.msra.mxu3 %v2130_v38 }
 0x570   :  { %2331 = vmatpush.msra.mxu3 %v2129_v59 }
 0x572   :  { %2332 = vmatpush.msra.mxu3 %v2128_v43 }
 0x574   :  { %v1960_v55 = vpop.f32.mrf.mxu3 }
 0x575   :  { %v1964_v6 = vadd.f32 %v1960_v55, %v1933_v41  ;;  %v2134_v55 = vld [vmem:[%s4829_s13 + $0x30] sm:$0xff]  ;;  %v2143_v41 = vld [vmem:[%s4829_s13 + $0x78] sm:$0xff] }
 0x57c   :  { %v1988_v61 = vpop.f32.mrf.mxu2 }
 0x57d   :  { %v1994_v21 = vadd.f32 %v1988_v61, %v1963_v52  ;;  %v3453_v61 = vunpack.c.h.bf16 %v3508_v51  ;;  %v2139_v52 = vld [vmem:[%s4829_s13 + $0x58] sm:$0xff] }
 0x584   :  { %v1991_v42 = vpop.f32.mrf.mxu2 }
 0x585   :  { %v1995_v12 = vadd.f32 %v1991_v42, %v1964_v6  ;;  %v2142_v42 = vld [vmem:[%s4829_s13 + $0x70] sm:$0xff]  ;;  %v2141_v6 = vld [vmem:[%s4829_s13 + $0x68] sm:$0xff] }
 0x58c   :  { %v2019_v10 = vpop.f32.mrf.mxu3 }
 0x58d   :  { %v2025_v53 = vadd.f32 %v2019_v10, %v1994_v21  ;;  %v2138_v21 = vld [vmem:[%s4829_s13 + $0x50] sm:$0xff]  ;;  %v2137_v10 = vld [vmem:[%s4829_s13 + $0x48] sm:$0xff] }
 0x58f   :  { %3307 = vmatmul.msk.f32.vlgmr.msrb.gmra.mxu3 %vm2027_vm15, %v2025_v53  ;;  %v2028_v25 = vsel %vm2027_vm15, %v2025_v53, 0.0 }
 0x590   :  { %2360 = vmatpush.msrb.mxu3 %v2135_v2 }
 0x592   :  { %2361 = vmatpush.msrb.mxu3 %v2134_v55 }
 0x594   :  { %v2022_v62 = vpop.f32.mrf.mxu3  ;;  %2362 = vmatpush.msrb.mxu3 %v2133_v36 }
 0x595   :  { %v2026_v3 = vadd.f32 %v2022_v62, %v1995_v12  ;;  %v2140_v12 = vld [vmem:[%s4829_s13 + $0x60] sm:$0xff]  ;;  %v2147_v62 = vld [vmem:[%s4829_s13 + $0x98] sm:$0xff] }
 0x596   :  { %2363 = vmatpush.msrb.mxu3 %v2132_v45 }
 0x597   :  { %v2029_v57 = vsel %vm2027_vm15, %v2026_v3, 0.0  ;;  %3308 = vmatmul.msk.f32.gmra.mxu3 %vm2027_vm15, %v2026_v3  ;;  %2251 = vmatpush.msrb.mxu2 %v2026_v3 }
 0x598   :  { %v2030_v58 = vadd.f32 %v2029_v57, %v2028_v25  ;;  %v2146_v25 = vld [vmem:[%s4829_s13 + $0x90] sm:$0xff]  ;;  %v2145_v57 = vld [vmem:[%s4829_s13 + $0x88] sm:$0xff] }
 0x599   :  { %2252 = vmatpush.msrb.mxu2 %v2025_v53 }
 0x59a   :  { %v2031_v8 = vrot.slane %v2030_v58, 4 }
 0x59c   :  { %v2032_v34 = vadd.f32 %v2031_v8, %v2030_v58  ;;  %v2151_v8 = vld [vmem:[%s4829_s13 + $0xb8] sm:$0xff] }
 0x59e   :  { %v2033_v40 = vrot.slane %v2032_v34, 2 }
 0x5a0   :  { %v2034_v18 = vadd.f32 %v2033_v40, %v2032_v34  ;;  %v2150_v34 = vld [vmem:[%s4829_s13 + $0xb0] sm:$0xff]  ;;  %v2149_v40 = vld [vmem:[%s4829_s13 + $0xa8] sm:$0xff] }
 0x5a2   :  { %v2035_v29 = vrot.slane %v2034_v18, 1 }
 0x5a4   :  { %v2036_v37 = vadd.f32 %v2035_v29, %v2034_v18  ;;  %v2155_v29 = vld [vmem:[%s4829_s13 + $0xd8] sm:$0xff] }
 0x5a6   :  { %v2044_v1 = vmul.f32 %v4473_v32, %v2036_v37 }
 0x5a8   :  { %3306 = vmatmul.msk.f32.vlgmr.msra.gmra.mxu2 %vm2027_vm15, %v2044_v1  ;;  %v2154_v1 = vld [vmem:[%s4829_s13 + $0xd0] sm:$0xff] }
 0x5b0   :  { %3309 = vmatmul.msk.f32.vlgmr.msrb.gmra.mxu2 %vm1453_vm1, %v3424_v23  ;;  %v2152_v23 = vld [vmem:[%s4829_s13 + $0xc0] sm:$0xff] }
 0x5b8   :  { %3310 = vmatmul.msk.f32.gmra.mxu2 %vm1453_vm1, %v3425_v50 }
 0x5c0   :  { %3311 = vmatmul.msk.f32.gmra.mxu2 %vm1453_vm1, %v3428_v47 }
 0x5c8   :  { %3312 = vmatmul.msk.f32.gmra.mxu2 %vm1453_vm1, %v3429_v22  ;;  %v2158_v22 = vld [vmem:[%s4829_s13 + $0xf0] sm:$0xff] }
 0x5d0   :  { %3313 = vmatmul.msk.f32.gmra.mxu2 %vm1453_vm1, %v3432_v26  ;;  %v2156_v26 = vld [vmem:[%s4829_s13 + $0xe0] sm:$0xff] }
 0x5d8   :  { %3314 = vmatmul.msk.f32.gmra.mxu2 %vm1453_vm1, %v3433_v15 }
 0x5e0   :  { %3315 = vmatmul.msk.f32.gmra.mxu2 %vm1453_vm1, %v3436_v28 }
 0x5e8   :  { %3316 = vmatmul.msk.f32.gmra.mxu2 %vm1453_vm1, %v3437_v56  ;;  %v2162_v56 = vld [vmem:[%s4829_s13 + $0x110] sm:$0xff] }
 0x5f0   :  { %3317 = vmatmul.msk.f32.gmra.mxu2 %vm1453_vm1, %v3440_v33  ;;  %v2160_v33 = vld [vmem:[%s4829_s13 + $0x100] sm:$0xff] }
 0x5f8   :  { %3318 = vmatmul.msk.f32.gmra.mxu2 %vm1453_vm1, %v3441_v24 }
 0x600   :  { %3319 = vmatmul.msk.f32.gmra.mxu2 %vm1453_vm1, %v3444_v48 }
 0x608   :  { %3320 = vmatmul.msk.f32.gmra.mxu2 %vm1453_vm1, %v3445_v19  ;;  %v2590_v19 = vld [vmem:[%s4831_s16] sm:$0xff] }
 0x610   :  { %3321 = vmatmul.msk.f32.gmra.mxu2 %vm1453_vm1, %v3448_v54 }
 0x612   :  { %v2104_v49 = vpop.f32.mrf.mxu3 }
 0x618   :  { %3322 = vmatmul.msk.f32.gmra.mxu2 %vm1453_vm1, %v3449_v27  ;;  %v3538_v27 = vld [vmem:[%s4827_s12] ss:$0 sm:$0xff] }
 0x61a   :  { %v2107_v30 = vpop.f32.mrf.mxu3 }
 0x61b   :  { %v2108_v55 = vadd.f32 %v3538_v27, %v2107_v30 }
 0x620   :  { %3323 = vmatmul.msk.f32.gmra.mxu2 %vm1453_vm1, %v3452_v31  ;;  %v2105_v31 = vadd.f32 %v3538_v27, %v2104_v49 }
 0x628   :  { %3324 = vmatmul.msk.f32.gmra.mxu2 %vm1453_vm1, %v3453_v61  ;;  %v3539_v61 = vld [vmem:[%s4830_s14] ss:$0 sm:$0xff] }
 0x62b   :  { %v4544_v46 = vpop.f32.mrf.mxu2 }
 0x630   :  { %3325 = vmatmul.msk.f32.gmra.mxu2 %vm1453_vm1, %v3456_v17 }
 0x633   :  { %v2254_v9 = vpop.f32.mrf.mxu2 }
 0x634   :  { %3327 = vmatmul.msk.f32.vlgmr.msra.gmra.mxu3 %vm2027_vm15, %v2254_v9 }
 0x635   :  { %2391 = vmatpush.msra.mxu3 %v2139_v52 }
 0x637   :  { %2392 = vmatpush.msra.mxu3 %v2138_v21 }
 0x638   :  { %3326 = vmatmul.msk.f32.gmra.mxu2 %vm1453_vm1, %v3457_v0 }
 0x639   :  { %2393 = vmatpush.msra.mxu3 %v2137_v10 }
 0x63b   :  { %v2257_v53 = vpop.f32.mrf.mxu2  ;;  %2394 = vmatpush.msra.mxu3 %v2136_v4 }
 0x63c   :  { %3328 = vmatmul.msk.f32.gmra.mxu3 %vm2027_vm15, %v2257_v53 }
 0x643   :  { %v2260_v60 = vpop.f32.mrf.mxu2 }
 0x644   :  { %3329 = vmatmul.msk.f32.vlgmr.msrb.gmra.mxu3 %vm2027_vm15, %v2260_v60 }
 0x645   :  { %2422 = vmatpush.msrb.mxu3 %v2143_v41 }
 0x647   :  { %2423 = vmatpush.msrb.mxu3 %v2142_v42 }
 0x649   :  { %2424 = vmatpush.msrb.mxu3 %v2141_v6 }
 0x64b   :  { %v2263_v11 = vpop.f32.mrf.mxu2  ;;  %2425 = vmatpush.msrb.mxu3 %v2140_v12 }
 0x64c   :  { %3330 = vmatmul.msk.f32.gmra.mxu3 %vm2027_vm15, %v2263_v11 }
 0x653   :  { %v2266_v3 = vpop.f32.mrf.mxu2 }
 0x654   :  { %3331 = vmatmul.msk.f32.vlgmr.msra.gmra.mxu3 %vm2027_vm15, %v2266_v3  ;;  %v2593_v3 = vld [vmem:[%s4832_s17 + $0x8] sm:$0xff] }
 0x655   :  { %2453 = vmatpush.msra.mxu3 %v2147_v62  ;;  %2614 = vmatpush.msra.mxu2 %v2593_v3 }
 0x657   :  { %2454 = vmatpush.msra.mxu3 %v2146_v25  ;;  %v2592_v25 = vld [vmem:[%s4832_s17] sm:$0xff] }
 0x658   :  { %2615 = vmatpush.msra.mxu2 %v2592_v25 }
 0x659   :  { %2455 = vmatpush.msra.mxu3 %v2145_v57 }
 0x65b   :  { %v2269_v58 = vpop.f32.mrf.mxu2  ;;  %2456 = vmatpush.msra.mxu3 %v2144_v16 }
 0x65c   :  { %3332 = vmatmul.msk.f32.gmra.mxu3 %vm2027_vm15, %v2269_v58  ;;  %v2653_v58 = vld [vmem:[%s4833_s15 + $0x8] sm:$0xff] }
 0x65d   :  { %2671 = vmatpush.msrb.mxu2 %v2653_v58 }
 0x663   :  { %v2272_v14 = vpop.f32.mrf.mxu2 }
 0x664   :  { %3333 = vmatmul.msk.f32.vlgmr.msrb.gmra.mxu3 %vm2027_vm15, %v2272_v14 }
 0x665   :  { %2484 = vmatpush.msrb.mxu3 %v2151_v8  ;;  %v2652_v8 = vld [vmem:[%s4833_s15] sm:$0xff] }
 0x666   :  { %2672 = vmatpush.msrb.mxu2 %v2652_v8 }
 0x667   :  { %2485 = vmatpush.msrb.mxu3 %v2150_v34 }
 0x669   :  { %2486 = vmatpush.msrb.mxu3 %v2149_v40 }
 0x66b   :  { %v2275_v18 = vpop.f32.mrf.mxu2  ;;  %2487 = vmatpush.msrb.mxu3 %v2148_v63 }
 0x66c   :  { %3334 = vmatmul.msk.f32.gmra.mxu3 %vm2027_vm15, %v2275_v18 }
 0x673   :  { %v2278_v37 = vpop.f32.mrf.mxu2 }
 0x674   :  { %3335 = vmatmul.msk.f32.vlgmr.msra.gmra.mxu3 %vm2027_vm15, %v2278_v37 }
 0x675   :  { %2515 = vmatpush.msra.mxu3 %v2155_v29 }
 0x677   :  { %2516 = vmatpush.msra.mxu3 %v2154_v1 }
 0x679   :  { %2517 = vmatpush.msra.mxu3 %v2153_v5 }
 0x67b   :  { %v2281_v50 = vpop.f32.mrf.mxu2  ;;  %2518 = vmatpush.msra.mxu3 %v2152_v23 }
 0x67c   :  { %3336 = vmatmul.msk.f32.gmra.mxu3 %vm2027_vm15, %v2281_v50 }
 0x683   :  { %v2284_v47 = vpop.f32.mrf.mxu2 }
 0x684   :  { %3337 = vmatmul.msk.f32.vlgmr.msrb.gmra.mxu3 %vm2027_vm15, %v2284_v47 }
 0x685   :  { %2546 = vmatpush.msrb.mxu3 %v2159_v39 }
 0x687   :  { %2547 = vmatpush.msrb.mxu3 %v2158_v22  ;;  %v2049_v22 = vld [vmem:[%s4834_s10] sm:$0x1] }
 0x689   :  { %2548 = vmatpush.msrb.mxu3 %v2157_v13  ;;  %v2071_v13 = vadd.f32 %v4544_v46, %v2049_v22 }
 0x68b   :  { %v2287_v15 = vpop.f32.mrf.mxu2  ;;  %2549 = vmatpush.msrb.mxu3 %v2156_v26 }
 0x68c   :  { %3338 = vmatmul.msk.f32.gmra.mxu3 %vm2027_vm15, %v2287_v15 }
 0x693   :  { %v2290_v28 = vpop.f32.mrf.mxu2 }
 0x694   :  { %3339 = vmatmul.msk.f32.vlgmr.msra.gmra.mxu3 %vm2027_vm15, %v2290_v28 }
 0x695   :  { %2577 = vmatpush.msra.mxu3 %v2163_v35 }
 0x697   :  { %2578 = vmatpush.msra.mxu3 %v2162_v56 }
 0x699   :  { %2579 = vmatpush.msra.mxu3 %v2161_v7 }
 0x69b   :  { %v2293_v24 = vpop.f32.mrf.mxu2  ;;  %2580 = vmatpush.msra.mxu3 %v2160_v33 }
 0x69c   :  { %3340 = vmatmul.msk.f32.gmra.mxu3 %vm2027_vm15, %v2293_v24 }
 0x6a3   :  { %v2296_v48 = vpop.f32.mrf.mxu2 }
 0x6a4   :  { %3341 = vmatmul.msk.f32.vlgmr.msrb.gmra.mxu3 %vm2027_vm15, %v2296_v48 }
 0x6a5   :  { %2643 = vmatpush.msrb.mxu3 %v2591_v44  ;;  %v3540_v44 = vld [vmem:[%s4835_s18] ss:$0 sm:$0xff] }
 0x6a7   :  { %2644 = vmatpush.msrb.mxu3 %v2590_v19 }
 0x6ab   :  { %v2299_v54 = vpop.f32.mrf.mxu2 }
 0x6ac   :  { %3342 = vmatmul.msk.f32.gmra.mxu3 %vm2027_vm15, %v2299_v54 }
 0x6b3   :  { %v2302_v38 = vpop.f32.mrf.mxu2 }
 0x6b4   :  { %3343 = vmatmul.msk.f32.vlgmr.msra.gmra.mxu3 %vm2027_vm15, %v2302_v38 }
 0x6b7   :  { %v2334_v59 = vpop.f32.mrf.mxu3 }
 0x6b8   :  { %v2340_v17 = vadd.f32 %v3539_v61, %v2334_v59 }
 0x6bb   :  { %v2305_v43 = vpop.f32.mrf.mxu2 }
 0x6bc   :  { %3344 = vmatmul.msk.f32.gmra.mxu3 %vm2027_vm15, %v2305_v43 }
 0x6bf   :  { %v2337_v51 = vpop.f32.mrf.mxu3 }
 0x6c0   :  { %v2341_v10 = vadd.f32 %v3539_v61, %v2337_v51 }
 0x6c4   :  { %3347 = vmatmul.msk.f32.vlgmr.msrb.gmra.mxu3 %vm1453_vm1, %v2105_v31 }
 0x6c7   :  { %v2365_v2 = vpop.f32.mrf.mxu3 }
 0x6c8   :  { %v2371_v52 = vadd.f32 %v2365_v2, %v2340_v17 }
 0x6cc   :  { %3348 = vmatmul.msk.f32.gmra.mxu3 %vm1453_vm1, %v2108_v55 }
 0x6cf   :  { %v2368_v36 = vpop.f32.mrf.mxu3 }
 0x6d0   :  { %v2372_v4 = vadd.f32 %v2368_v36, %v2341_v10 }
 0x6d7   :  { %v2396_v45 = vpop.f32.mrf.mxu3 }
 0x6d8   :  { %v2402_v9 = vadd.f32 %v2396_v45, %v2371_v52 }
 0x6df   :  { %v2399_v20 = vpop.f32.mrf.mxu3 }
 0x6e0   :  { %v2403_v53 = vadd.f32 %v2399_v20, %v2372_v4 }
 0x6e7   :  { %v2427_v0 = vpop.f32.mrf.mxu3 }
 0x6e8   :  { %v2433_v21 = vadd.f32 %v2427_v0, %v2402_v9 }
 0x6ef   :  { %v2430_v41 = vpop.f32.mrf.mxu3 }
 0x6f0   :  { %v2434_v60 = vadd.f32 %v2430_v41, %v2403_v53  ;;  %v2760_v41 = vld [vmem:[%s4836_s19 + $0x68] sm:$0xff] }
 0x6f1   :  { %3118 = vmatpush.msra.mxu1 %v2760_v41 }
 0x6f7   :  { %v2458_v42 = vpop.f32.mrf.mxu3 }
 0x6f8   :  { %v2464_v34 = vadd.f32 %v2458_v42, %v2433_v21 }
 0x6ff   :  { %v2461_v6 = vpop.f32.mrf.mxu3 }
 0x700   :  { %v2465_v37 = vadd.f32 %v2461_v6, %v2434_v60 }
 0x707   :  { %v2489_v12 = vpop.f32.mrf.mxu3 }
 0x708   :  { %v2495_v40 = vadd.f32 %v2489_v12, %v2464_v34 }
 0x70f   :  { %v2492_v11 = vpop.f32.mrf.mxu3 }
 0x710   :  { %v2496_v5 = vadd.f32 %v2492_v11, %v2465_v37  ;;  %v3510_v37 = vld [vmem:[%s4837_s4 + $0x8] sm:$0xff]  }
 0x717   :  { %v2520_v62 = vpop.f32.mrf.mxu3 }
 0x718   :  { %v2526_v63 = vadd.f32 %v2520_v62, %v2495_v40 }
 0x71f   :  { %v2523_v57 = vpop.f32.mrf.mxu3 }
 0x720   :  { %v2527_v23 = vadd.f32 %v2523_v57, %v2496_v5  ;;  %v3465_v5 = vunpack.c.h.bf16 %v3510_v37 }
 0x727   :  { %v2551_v16 = vpop.f32.mrf.mxu3 }
 0x728   :  { %v2557_v18 = vadd.f32 %v2551_v16, %v2526_v63 }
 0x72f   :  { %v2554_v14 = vpop.f32.mrf.mxu3 }
 0x730   :  { %v2558_v50 = vadd.f32 %v2554_v14, %v2527_v23  ;;  %v3459_v14 = vld [vmem:[%s4837_s4] sm:$0xff]   ;;  %v3511_v23 = vld [vmem:[%s4837_s4 + $0x10] sm:$0xff]  }
 0x731   :  { %v3460_v63 = vunpack.c.l.bf16 %v3459_v14 }
 0x737   :  { %v2582_v29 = vpop.f32.mrf.mxu3 }
 0x738   :  { %v2588_v1 = vadd.f32 %v2582_v29, %v2557_v18  ;;  %v3461_v29 = vunpack.c.h.bf16 %v3459_v14 }
 0x73a   :  { %3345 = vmatmul.msk.f32.vlgmr.msra.gmra.mxu2 %vm1453_vm1, %v2588_v1  ;;  %v3464_v1 = vunpack.c.l.bf16 %v3510_v37 }
 0x73f   :  { %v2585_v39 = vpop.f32.mrf.mxu3 }
 0x740   :  { %v2589_v47 = vadd.f32 %v2585_v39, %v2558_v50  ;;  %v3468_v50 = vunpack.c.l.bf16 %v3511_v23  ;;  %v3469_v39 = vunpack.c.h.bf16 %v3511_v23 }
 0x742   :  { %3346 = vmatmul.msk.f32.gmra.mxu2 %vm1453_vm1, %v2589_v47  ;;  %v3512_v47 = vld [vmem:[%s4837_s4 + $0x18] sm:$0xff]  }
 0x743   :  { %v3472_v22 = vunpack.c.l.bf16 %v3512_v47 }
 0x747   :  { %v2646_v15 = vpop.f32.mrf.mxu3 }
 0x74a   :  { %3349 = vmatmul.msk.f32.vlgmr.msrb.gmra.mxu2 %vm1453_vm1, %v2071_v13  ;;  %v2759_v13 = vld [vmem:[%s4836_s19 + $0x60] sm:$0xff] }
 0x74b   :  { %3119 = vmatpush.msra.mxu1 %v2759_v13 }
 0x74f   :  { %v2649_v28 = vpop.f32.mrf.mxu3 }
 0x7bd   :  { %v2617_v26 = vpop.f32.mrf.mxu2 }
 0x7be   :  { %v2647_v7 = vadd.f32 %v2646_v15, %v2617_v26  ;;  %v3473_v26 = vunpack.c.h.bf16 %v3512_v47  ;;  %v3513_v15 = vld [vmem:[%s4837_s4 + $0x20] sm:$0xff]  }
 0x7c5   :  { %v2620_v35 = vpop.f32.mrf.mxu2 }
 0x7c6   :  { %v2650_v33 = vadd.f32 %v2649_v28, %v2620_v35  ;;  %v3476_v35 = vunpack.c.l.bf16 %v3513_v15  ;;  %v3477_v28 = vunpack.c.h.bf16 %v3513_v15 }
 0x7cd   :  { %v2674_v56 = vpop.f32.mrf.mxu2 }
 0x7ce   :  { %v2677_v24 = vperm.slane %v2674_v56, 0  ;;  %v3514_v56 = vld [vmem:[%s4837_s4 + $0x28] sm:$0xff]  }
 0x7d0   :  { %v2678_v48 = vadd.f32 %v2677_v24, %v2647_v7  ;;  %v2679_v19 = vadd.f32 %v2677_v24, %v2650_v33  ;;  %v3480_v7 = vunpack.c.l.bf16 %v3514_v56  ;;  %v3481_v33 = vunpack.c.h.bf16 %v3514_v56  ;;  %v3515_v24 = vld [vmem:[%s4837_s4 + $0x30] sm:$0xff]  }
 0x7d2   :  { %v2684_v49 = vadd.f32 %v3540_v44, %v2678_v48  ;;  %v2685_v54 = vadd.f32 %v3540_v44, %v2679_v19  ;;  %v3484_v44 = vunpack.c.l.bf16 %v3515_v24  ;;  %v2748_v48 = vld [vmem:[%s4836_s19 + $0x8] sm:$0xff]  ;;  %v2747_v19 = vld [vmem:[%s4836_s19] sm:$0xff] }
 0x7d3   :  { %2932 = vmatpush.msra.mxu2 %v2748_v48 }
 0x7d4   :  { %v2686_v46 = vsel %vm1453_vm1, %v2684_v49, 0.0  ;;  %v2687_v30 = vsel %vm1453_vm1, %v2685_v54, 0.0 }
 0x7d5   :  { %v2688_v38 = vadd.f32 %v2687_v30, %v2686_v46  ;;  %2933 = vmatpush.msra.mxu2 %v2747_v19  ;;  %v2750_v30 = vld [vmem:[%s4836_s19 + $0x18] sm:$0xff] }
 0x7d7   :  { %v2689_v59 = vrot.slane %v2688_v38, 4  ;;  %2963 = vmatpush.msrb.mxu2 %v2750_v30 }
 0x7d9   :  { %v2690_v43 = vadd.f32 %v2689_v59, %v2688_v38  ;;  %v2749_v38 = vld [vmem:[%s4836_s19 + $0x10] sm:$0xff] }
 0x7da   :  { %2964 = vmatpush.msrb.mxu2 %v2749_v38 }
 0x7db   :  { %v2691_v27 = vrot.slane %v2690_v43, 2 }
 0x7dd   :  { %v2692_v51 = vadd.f32 %v2691_v27, %v2690_v43  ;;  %v3517_v43 = vld [vmem:[%s4837_s4 + $0x40] sm:$0xff]  }
 0x7de   :  { %v3492_v27 = vunpack.c.l.bf16 %v3517_v43 }
 0x7df   :  { %v2693_v31 = vrot.slane %v2692_v51, 1 }
 0x7e1   :  { %v2694_v2 = vadd.f32 %v2693_v31, %v2692_v51  ;;  %v2752_v31 = vld [vmem:[%s4836_s19 + $0x28] sm:$0xff] }
 0x7e2   :  { %2994 = vmatpush.msra.mxu3 %v2752_v31 }
 0x7e3   :  { %v2695_v55 = vmul.f32 %v2694_v2, %v4473_v32  ;;  %v2751_v2 = vld [vmem:[%s4836_s19 + $0x20] sm:$0xff] }
 0x7e4   :  { %2995 = vmatpush.msra.mxu3 %v2751_v2 }
 0x7e5   :  { %v2696_v36 = vsub.f32 %v2684_v49, %v2695_v55  ;;  %v2697_v45 = vsub.f32 %v2685_v54, %v2695_v55  ;;  %v3485_v49 = vunpack.c.h.bf16 %v3515_v24  ;;  %v3516_v54 = vld [vmem:[%s4837_s4 + $0x38] sm:$0xff]   ;;  %v3493_v55 = vunpack.c.h.bf16 %v3517_v43 }
 0x7e6   :  { %v3488_v46 = vunpack.c.l.bf16 %v3516_v54  ;;  %v3489_v59 = vunpack.c.h.bf16 %v3516_v54 }
 0x7e7   :  { %v2698_v61 = vmul.f32 %v2696_v36, %v2696_v36  ;;  %v2699_v20 = vmul.f32 %v2697_v45, %v2697_v45 }
 0x7e9   :  { %v2700_v17 = vsel %vm1453_vm1, %v2698_v61, 0.0  ;;  %v2701_v52 = vsel %vm1453_vm1, %v2699_v20, 0.0  ;;  %v2754_v61 = vld [vmem:[%s4836_s19 + $0x38] sm:$0xff]  ;;  %v2753_v20 = vld [vmem:[%s4836_s19 + $0x30] sm:$0xff] }
 0x7ea   :  { %v2702_v9 = vadd.f32 %v2701_v52, %v2700_v17  ;;  %3025 = vmatpush.msrb.mxu3 %v2754_v61 }
 0x7ec   :  { %v2703_v0 = vrot.slane %v2702_v9, 4  ;;  %3026 = vmatpush.msrb.mxu3 %v2753_v20 }
 0x7ee   :  { %v2704_v21 = vadd.f32 %v2703_v0, %v2702_v9  ;;  %v2756_v9 = vld [vmem:[%s4836_s19 + $0x48] sm:$0xff]  ;;  %v2755_v0 = vld [vmem:[%s4836_s19 + $0x40] sm:$0xff] }
 0x7f0   :  { %v2705_v10 = vrot.slane %v2704_v21, 2 }
 0x7f2   :  { %v2706_v4 = vadd.f32 %v2705_v10, %v2704_v21 }
 0x7f4   :  { %v2707_v53 = vrot.slane %v2706_v4, 1 }
 0x7f6   :  { %v2708_v60 = vadd.f32 %v2707_v53, %v2706_v4  ;;  %v2758_v4 = vld [vmem:[%s4836_s19 + $0x58] sm:$0xff]  ;;  %v2757_v53 = vld [vmem:[%s4836_s19 + $0x50] sm:$0xff] }
 0x7f8   :  { %v2709_v42 = vmul.f32 %v2708_v60, %v4473_v32 }
 0x7fa   :  { %v2710_v6 = vadd.f32 1e-05, %v2709_v42 }
 0x7fc   :  { %3548 = vrsqrt.f32 %v2710_v6  ;;  %vm2717_vm3 = vweird.f32 %v2710_v6 }
 0x802   :  { %v3549_v12 = vpop.eup %3548 }
 0x803   :  { %v2712_v11 = vmul.f32 %v3549_v12, %v2710_v6  ;;  %vm2718_vm2 = vweird.f32 %v3549_v12 }
 0x804   :  { %vm2719_vm4 = vmor %vm2717_vm3, %vm2718_vm2 }
 0x805   :  { %v2713_v62 = vmul.f32 %v3549_v12, %v2712_v11  ;;  %v2761_v11 = vld [vmem:[%s4836_s19 + $0x70] sm:$0xff] }
 0x807   :  { %v2714_v3 = vmul.f32 0.5, %v2713_v62 }
 0x809   :  { %v2715_v25 = vsub.f32 1.5, %v2714_v3  ;;  %v2764_v3 = vld [vmem:[%s4836_s19 + $0x88] sm:$0xff] }
 0x80b   :  { %v2716_v57 = vmul.f32 %v3549_v12, %v2715_v25 }
 0x80d   :  { %v2720_v16 = vsel %vm2719_vm4, %v3549_v12, %v2716_v57  ;;  %v2762_v12 = vld [vmem:[%s4836_s19 + $0x78] sm:$0xff]  ;;  %v2763_v57 = vld [vmem:[%s4836_s19 + $0x80] sm:$0xff] }
 0x80e   :  { %v2722_v58 = vmul.f32 %v2720_v16, %v2697_v45  ;;  %v2721_v8 = vmul.f32 %v2720_v16, %v2696_v36 }
 0x810   :  { %vm2724_vm5 = vcmp.gt.f32.partialorder %v2722_v58, 0.0  ;;  %v2726_v32 = vmul.f32 0.2, %v2722_v58  ;;  %v2725_v34 = vmul.f32 0.2, %v2721_v8  ;;  %vm2723_vm6 = vcmp.gt.f32.partialorder %v2721_v8, 0.0 }
 0x812   :  { %v2728_v40 = vsel %vm2724_vm5, %v2722_v58, %v2726_v32  ;;  %v2727_v18 = vsel %vm2723_vm6, %v2721_v8, %v2725_v34 }
 0x813   :  { %2852 = vmatpush.msrb.mxu0 %v2728_v40 }
 0x815   :  { %2853 = vmatpush.msrb.mxu0 %v2727_v18 }
 0x816   :  { %3350 = vmatmul.msk.f32.vlgmr.msrb.gmra.mxu0 %vm1453_vm1, %v3460_v63 }
 0x81e   :  { %3351 = vmatmul.msk.f32.gmra.mxu0 %vm1453_vm1, %v3461_v29 }
 0x826   :  { %3352 = vmatmul.msk.f32.gmra.mxu0 %vm1453_vm1, %v3464_v1 }
 0x82e   :  { %3353 = vmatmul.msk.f32.gmra.mxu0 %vm1453_vm1, %v3465_v5 }
 0x836   :  { %3354 = vmatmul.msk.f32.gmra.mxu0 %vm1453_vm1, %v3468_v50  ;;  %v3541_v50 = vld [vmem:[%s4838_s20] ss:$0 sm:$0xff] }
 0x83e   :  { %3355 = vmatmul.msk.f32.gmra.mxu0 %vm1453_vm1, %v3469_v39 }
 0x846   :  { %3356 = vmatmul.msk.f32.gmra.mxu0 %vm1453_vm1, %v3472_v22 }
 0x84e   :  { %3357 = vmatmul.msk.f32.gmra.mxu0 %vm1453_vm1, %v3473_v26 }
 0x856   :  { %3358 = vmatmul.msk.f32.gmra.mxu0 %vm1453_vm1, %v3476_v35 }
 0x85e   :  { %3359 = vmatmul.msk.f32.gmra.mxu0 %vm1453_vm1, %v3477_v28 }
 0x866   :  { %3360 = vmatmul.msk.f32.gmra.mxu0 %vm1453_vm1, %v3480_v7 }
 0x86e   :  { %3361 = vmatmul.msk.f32.gmra.mxu0 %vm1453_vm1, %v3481_v33 }
 0x876   :  { %3362 = vmatmul.msk.f32.gmra.mxu0 %vm1453_vm1, %v3484_v44 }
 0x87e   :  { %3363 = vmatmul.msk.f32.gmra.mxu0 %vm1453_vm1, %v3485_v49 }
 0x886   :  { %3364 = vmatmul.msk.f32.gmra.mxu0 %vm1453_vm1, %v3488_v46 }
 0x88e   :  { %3365 = vmatmul.msk.f32.gmra.mxu0 %vm1453_vm1, %v3489_v59 }
 0x893   :  { %v2855_v51 = vpop.f32.mrf.mxu0 }
 0x894   :  { %3368 = vmatmul.msk.f32.vlgmr.msra.gmra.mxu2 %vm1453_vm1, %v2855_v51 }
 0x895   :  { %3056 = vmatpush.msra.mxu2 %v2756_v9 }
 0x896   :  { %3366 = vmatmul.msk.f32.gmra.mxu0 %vm1453_vm1, %v3492_v27 }
 0x897   :  { %3057 = vmatpush.msra.mxu2 %v2755_v0 }
 0x89b   :  { %v2858_v36 = vpop.f32.mrf.mxu0 }
 0x89c   :  { %3369 = vmatmul.msk.f32.gmra.mxu2 %vm1453_vm1, %v2858_v36 }
 0x89e   :  { %3367 = vmatmul.msk.f32.gmra.mxu0 %vm1453_vm1, %v3493_v55 }
 0x8a3   :  { %v2861_v45 = vpop.f32.mrf.mxu0 }
 0x8a4   :  { %3370 = vmatmul.msk.f32.vlgmr.msrb.gmra.mxu2 %vm1453_vm1, %v2861_v45 }
 0x8a5   :  { %3149 = vmatpush.msrb.mxu2 %v2762_v12 }
 0x8a7   :  { %3150 = vmatpush.msrb.mxu2 %v2761_v11 }
 0x8ab   :  { %v2864_v17 = vpop.f32.mrf.mxu0 }
 0x8ac   :  { %3371 = vmatmul.msk.f32.gmra.mxu2 %vm1453_vm1, %v2864_v17 }
 0x8b3   :  { %v2867_v52 = vpop.f32.mrf.mxu0 }
 0x8b4   :  { %3372 = vmatmul.msk.f32.vlgmr.msra.gmra.mxu3 %vm1453_vm1, %v2867_v52 }
 0x8b5   :  { %3087 = vmatpush.msra.mxu3 %v2758_v4 }
 0x8b7   :  { %3088 = vmatpush.msra.mxu3 %v2757_v53 }
 0x8bb   :  { %v2870_v21 = vpop.f32.mrf.mxu0 }
 0x8bc   :  { %3373 = vmatmul.msk.f32.gmra.mxu3 %vm1453_vm1, %v2870_v21 }
 0x8c3   :  { %v2873_v10 = vpop.f32.mrf.mxu0 }
 0x8c4   :  { %3374 = vmatmul.msk.f32.vlgmr.msrb.gmra.mxu3 %vm1453_vm1, %v2873_v10 }
 0x8c5   :  { %3180 = vmatpush.msrb.mxu3 %v2764_v3 }
 0x8c7   :  { %3181 = vmatpush.msrb.mxu3 %v2763_v57 }
 0x8cb   :  { %v2876_v41 = vpop.f32.mrf.mxu0 }
 0x8cc   :  { %3375 = vmatmul.msk.f32.gmra.mxu3 %vm1453_vm1, %v2876_v41 }
 0x8d3   :  { %v2879_v60 = vpop.f32.mrf.mxu0 }
 0x8d4   :  { %3376 = vmatmul.msk.f32.vlgmr.msra.gmra.mxu2 %vm1453_vm1, %v2879_v60 }
 0x8db   :  { %v2882_v42 = vpop.f32.mrf.mxu0 }
 0x8dc   :  { %3377 = vmatmul.msk.f32.gmra.mxu2 %vm1453_vm1, %v2882_v42 }
 0x8e3   :  { %v2885_v6 = vpop.f32.mrf.mxu0 }
 0x8e4   :  { %3378 = vmatmul.msk.f32.vlgmr.msra.gmra.mxu3 %vm1453_vm1, %v2885_v6 }
 0x8eb   :  { %v2888_v62 = vpop.f32.mrf.mxu0 }
 0x8ec   :  { %3379 = vmatmul.msk.f32.gmra.mxu3 %vm1453_vm1, %v2888_v62 }
 0x8f3   :  { %v2891_v25 = vpop.f32.mrf.mxu0 }
 0x8f4   :  { %3380 = vmatmul.msk.f32.vlgmr.msra.gmra.mxu1 %vm1453_vm1, %v2891_v25 }
 0x8fb   :  { %v2894_v16 = vpop.f32.mrf.mxu0 }
 0x8fc   :  { %3381 = vmatmul.msk.f32.gmra.mxu1 %vm1453_vm1, %v2894_v16 }
 0x903   :  { %v2897_v58 = vpop.f32.mrf.mxu0 }
 0x904   :  { %3382 = vmatmul.msk.f32.vlgmr.msrb.gmra.mxu2 %vm1453_vm1, %v2897_v58 }
 0x90b   :  { %v2900_v8 = vpop.f32.mrf.mxu0 }
 0x90c   :  { %3383 = vmatmul.msk.f32.gmra.mxu2 %vm1453_vm1, %v2900_v8 }
 0x913   :  { %v2903_v14 = vpop.f32.mrf.mxu0 }
 0x914   :  { %3384 = vmatmul.msk.f32.vlgmr.msrb.gmra.mxu3 %vm1453_vm1, %v2903_v14 }
 0x917   :  { %v2935_v34 = vpop.f32.mrf.mxu2 }
 0x918   :  { %v2941_v47 = vadd.f32 %v3541_v50, %v2935_v34 }
 0x91b   :  { %v2906_v32 = vpop.f32.mrf.mxu0 }
 0x91c   :  { %3385 = vmatmul.msk.f32.gmra.mxu3 %vm1453_vm1, %v2906_v32  ;;  %vm3191_vm1 = vcmask 15360  }
 0x91f   :  { %v2938_v63 = vpop.f32.mrf.mxu2 }
 0x920   :  { %v2942_v56 = vadd.f32 %v3541_v50, %v2938_v63 }
 0x927   :  { %v2966_v29 = vpop.f32.mrf.mxu2 }
 0x928   :  { %v2972_v13 = vadd.f32 %v2966_v29, %v2941_v47 }
 0x92f   :  { %v2969_v1 = vpop.f32.mrf.mxu2 }
 0x930   :  { %v2973_v24 = vadd.f32 %v2969_v1, %v2942_v56 }
 0x937   :  { %v2997_v40 = vpop.f32.mrf.mxu3 }
 0x938   :  { %v3003_v26 = vadd.f32 %v2997_v40, %v2972_v13 }
 0x93f   :  { %v3000_v18 = vpop.f32.mrf.mxu3 }
 0x940   :  { %v3004_v48 = vadd.f32 %v3000_v18, %v2973_v24 }
 0x947   :  { %v3028_v37 = vpop.f32.mrf.mxu3 }
 0x948   :  { %v3034_v15 = vadd.f32 %v3028_v37, %v3003_v26 }
 0x94f   :  { %v3031_v5 = vpop.f32.mrf.mxu3 }
 0x950   :  { %v3035_v49 = vadd.f32 %v3031_v5, %v3004_v48 }
 0x957   :  { %v3059_v23 = vpop.f32.mrf.mxu2 }
 0x958   :  { %v3065_v7 = vadd.f32 %v3059_v23, %v3034_v15 }
 0x95f   :  { %v3062_v22 = vpop.f32.mrf.mxu2 }
 0x960   :  { %v3066_v30 = vadd.f32 %v3062_v22, %v3035_v49 }
 0x967   :  { %v3090_v39 = vpop.f32.mrf.mxu3 }
 0x968   :  { %v3096_v44 = vadd.f32 %v3090_v39, %v3065_v7 }
 0x96f   :  { %v3093_v35 = vpop.f32.mrf.mxu3 }
 0x970   :  { %v3097_v43 = vadd.f32 %v3093_v35, %v3066_v30 }
 0x971   :  { %v3121_v28 = vpop.f32.mrf.mxu1 }
 0x972   :  { %v3127_v19 = vadd.f32 %v3121_v28, %v3096_v44 }
 0x979   :  { %v3124_v59 = vpop.f32.mrf.mxu1 }
 0x97a   :  { %v3128_v51 = vadd.f32 %v3124_v59, %v3097_v43 }
 0x987   :  { %v3152_v33 = vpop.f32.mrf.mxu2 }
 0x988   :  { %v3158_v54 = vadd.f32 %v3152_v33, %v3127_v19 }
 0x98f   :  { %v3155_v27 = vpop.f32.mrf.mxu2 }
 0x990   :  { %v3159_v31 = vadd.f32 %v3155_v27, %v3128_v51 }
 0x997   :  { %v3183_v46 = vpop.f32.mrf.mxu3 }
 0x998   :  { %v3189_v38 = vadd.f32 %v3183_v46, %v3158_v54 }
 0x99a   :  { %3192 = vst.msk [vmem:[%s4839_s21] sm:$0xff] %vm3191_vm1, %v3189_v38 }
 0x99f   :  { %v3186_v2 = vpop.f32.mrf.mxu3 }
 0x9a0   :  { %v3190_v55 = vadd.f32 %v3186_v2, %v3159_v31 }
 0x9a2   :  { %3193 = vst.msk [vmem:[%s4839_s21 + $0x8] sm:$0xff] %vm3191_vm1, %v3190_v55 }

</bundles_post_ra>
